<compile_context>
chip_gen: v7x
topology: tpu7x:2x2x1
jax: 0.10.0
libtpu: 0.0.40
codegen_flags: <defaults>
</compile_context>

<pallas_src>
import jax
import jax.numpy as jnp
from jax.experimental import pallas as pl
from jax.experimental.pallas import tpu as pltpu


_BB = 8                   # images per grid step (batch block), multiple of 8
_M1 = _BB * 32 - 4        # 252: conv1 acc rows (covers every valid h < 28 of every image)
_M2 = _M1 - 9             # 243: conv2 acc rows (covers every valid r = b*32 + 2*h2, h2 < 10)
_M3 = _M2 - 18            # 225: fc1  acc rows (covers every valid r = b*32)


# ----------------------------------------------------------------------------
# The fused LeNet5 kernel (one grid step == one block of _BB images)
# ----------------------------------------------------------------------------
def _lenet5_kernel(x_ref,                          # (_BB*32, 96) f32, row=b*32+h, lane=c*32+w
                   band1_ref, bias1_ref,           # conv1 banded weights / bias
                   band2_ref, bias2_ref,           # conv2 banded weights / bias
                   wfc1_ref, bfc1_ref,             # fc1 (flatten folded in, rows padded to 128)
                   wfc2_ref, bfc2_ref,             # fc2
                   wfc3_ref, bfc3_ref,             # fc3 (padded to 128 cols)
                   out_ref,                        # (_BB, 128) f32 logits (padded)
                   s1_ref, s2_ref):                # VMEM scratch (w-pooled relu conv1/conv2)
    f32, bf16 = jnp.float32, jnp.bfloat16

    # ---- conv1 (3->6, 5x5, valid): 5 matmuls, batch stacked along M ----------
    # acc row r = b*32 + h holds conv1 pre-activation for image b at height h
    # (valid for h < 28); column o*14+j sits at w=2j in lanes [0,84) and at
    # w=2j+1 in lanes [128,212).  Rows with h >= 28 are harmless garbage.
    acc = jnp.zeros((_M1, 256), f32)
    for kh in range(5):
        slab = x_ref[kh:kh + _M1, :].astype(bf16)               # (252, 96)
        acc = acc + jnp.dot(slab, band1_ref[kh], preferred_element_type=f32)
    # Fused bias + ReLU + w-half of the 2x2 max-pool
    # (relu(max(a,b)+bias) == max(relu(a+bias), relu(b+bias)), shared bias).
    s1_ref[0:_M1, :] = jnp.maximum(
        jnp.maximum(acc[:, :128], acc[:, 128:]) + bias1_ref[...], 0.0)

    # ---- conv2 (6->16, 5x5) on the 2x2-pooled conv1 output -------------------
    # pool1 rows are formed lazily with contiguous slices:
    #   slab_kh[r] = max(s1[r + 2*kh], s1[r + 2*kh + 1])  ->  pool1 row (h2 + kh)
    # Valid conv2 rows are r = b*32 + 2*h2 (h2 < 10); other rows are never read.
    acc = jnp.zeros((_M2, 256), f32)
    for kh in range(5):
        slab = jnp.maximum(s1_ref[2 * kh:2 * kh + _M2, :],
                           s1_ref[2 * kh + 1:2 * kh + 1 + _M2, :]).astype(bf16)
        acc = acc + jnp.dot(slab, band2_ref[kh], preferred_element_type=f32)
    s2_ref[0:_M2, :] = jnp.maximum(
        jnp.maximum(acc[:, :128], acc[:, 128:]) + bias2_ref[...], 0.0)

    # ---- pool2 (rows) + PyTorch NCHW flatten + fc1 (5 slab matmuls) ----------
    # p2 row i2 of image b = max(s2[b*32 + 4*i2], s2[b*32 + 4*i2 + 2]); the
    # flatten permutation (o*25 + i2*5 + j2) is folded into wfc1[i2].
    accf = jnp.zeros((_M3, 120), f32)
    for i2 in range(5):
        slab = jnp.maximum(s2_ref[4 * i2:4 * i2 + _M3, :],
                           s2_ref[4 * i2 + 2:4 * i2 + 2 + _M3, :]).astype(bf16)
        accf = accf + jnp.dot(slab, wfc1_ref[i2], preferred_element_type=f32)

    # Compact to one dense row per image: the valid fc1 rows sit at r = b*32
    # (32-row-aligned, hence sublane-aligned, static offsets).
    h = jnp.concatenate([accf[32 * b:32 * b + 1, :] for b in range(_BB)], axis=0)
    h = jnp.maximum(h + bfc1_ref[...], 0.0)                              # (_BB, 120)

    # ---- fc2 / fc3 ------------------------------------------------------------
    h = jnp.maximum(
        jnp.dot(h.astype(bf16), wfc2_ref[...], preferred_element_type=f32)
        + bfc2_ref[...], 0.0)                                            # (_BB, 84)
    out_ref[...] = (jnp.dot(h.astype(bf16), wfc3_ref[...],
                            preferred_element_type=f32) + bfc3_ref[...])  # (_BB, 128)


# ----------------------------------------------------------------------------
# One-time parameter preparation (banded matrices / parity merge / padding)
# ----------------------------------------------------------------------------
def prepare_params(params):
    f32, bf16 = jnp.float32, jnp.bfloat16

    def conv_band(w, in_w, out_w, parity):
        # w: (O, C, 5, 5) -> (5, C*in_w, O*out_w) banded matrix for one output
        # column parity.  Row = c*in_w + w_in, col = o*out_w + j (output w = 2j+parity).
        O, C, K, _ = w.shape
        wi = jnp.arange(in_w)[:, None]
        jo = jnp.arange(out_w)[None, :]
        kw = wi - 2 * jo - parity
        valid = (kw >= 0) & (kw < K)
        kwc = jnp.clip(kw, 0, K - 1)
        wt = jnp.transpose(w, (2, 1, 0, 3))            # (kh, c, o, kw)
        g = wt[:, :, :, kwc]                           # (kh, c, o, in_w, out_w)
        g = jnp.where(valid[None, None, None], g, 0.0)
        g = jnp.transpose(g, (0, 1, 3, 2, 4))          # (kh, c, in_w, o, out_w)
        return g.reshape(K, C * in_w, O * out_w)

    def merge_parity(be, bo, rows_pad):
        # -> (5, rows_pad, 256): even parity in lanes [0, N), odd in [128, 128+N).
        K, R, N = be.shape
        out = jnp.zeros((K, rows_pad, 256), f32)
        out = out.at[:, :R, :N].set(be)
        out = out.at[:, :R, 128:128 + N].set(bo)
        return out

    w1, b1 = params["conv1_w"], params["conv1_b"]
    w2, b2 = params["conv2_w"], params["conv2_b"]

    band1 = merge_parity(conv_band(w1, 32, 14, 0), conv_band(w1, 32, 14, 1), 96)
    band2 = merge_parity(conv_band(w2, 14, 5, 0), conv_band(w2, 14, 5, 1), 128)

    bias1 = jnp.zeros((1, 128), f32).at[0, :84].set(jnp.repeat(b1, 14))
    bias2 = jnp.zeros((1, 128), f32).at[0, :80].set(jnp.repeat(b2, 5))

    # fc1 with the PyTorch NCHW flatten (index = o*25 + i*5 + j) folded in and
    # rows zero-padded to the 128 lanes of the pooled-conv2 scratch.
    wfc1 = params["fc1_w"].reshape(120, 16, 5, 5)      # (n, o, i, j)
    wfc1 = jnp.transpose(wfc1, (2, 1, 3, 0)).reshape(5, 80, 120)
    wfc1 = jnp.zeros((5, 128, 120), f32).at[:, :80, :].set(wfc1)

    # fc3 padded to a lane-dense 128 output columns (zeros beyond 100).
    wfc3 = jnp.zeros((84, 128), f32).at[:, :100].set(params["fc3_w"].T)
    bfc3 = jnp.zeros((1, 128), f32).at[0, :100].set(params["fc3_b"])

    return {
        "band1": band1.astype(bf16),                 # (5, 96, 256)
        "bias1": bias1,                              # (1, 128)
        "band2": band2.astype(bf16),                 # (5, 128, 256)
        "bias2": bias2,                              # (1, 128)
        "wfc1": wfc1.astype(bf16),                   # (5, 128, 120)
        "bfc1": params["fc1_b"].reshape(1, 120).astype(f32),
        "wfc2": params["fc2_w"].T.astype(bf16),      # (120, 84)
        "bfc2": params["fc2_b"].reshape(1, 84).astype(f32),
        "wfc3": wfc3.astype(bf16),                   # (84, 128)
        "bfc3": bfc3,                                # (1, 128)
    }


# ----------------------------------------------------------------------------
# Forward wrapper: one fused pallas_call, grid over batch blocks of _BB images
# ----------------------------------------------------------------------------
def lenet5_forward(prep, img_nchw):
    B = img_nchw.shape[0]
    nblk = pl.cdiv(B, _BB)
    b_pad = nblk * _BB

    # One-time input prep: pad batch, channel-interleave lanes (lane = c*32 + w),
    # stack rows across the batch (row = b*32 + h).
    x = jnp.pad(img_nchw.astype(jnp.float32),
                ((0, b_pad - B), (0, 0), (0, 0), (0, 0)))
    x = jnp.transpose(x, (0, 2, 1, 3)).reshape(b_pad * 32, 96)

    flops_per_blk = 2 * (5 * _M1 * 96 * 256 + 5 * _M2 * 128 * 256
                         + 5 * _M3 * 128 * 120 + _BB * 120 * 84 + _BB * 84 * 128)
    weight_bytes = 2 * (5 * 96 * 256 + 5 * 128 * 256 + 5 * 128 * 120
                        + 120 * 84 + 84 * 128) + 4 * (128 + 128 + 120 + 84 + 128)
    bytes_accessed = b_pad * 32 * 96 * 4 + b_pad * 128 * 4 + weight_bytes

    const2 = lambda b: (0, 0)
    const3 = lambda b: (0, 0, 0)

    grid_spec = pltpu.PrefetchScalarGridSpec(
        num_scalar_prefetch=0,
        grid=(nblk,),
        in_specs=[
            pl.BlockSpec((_BB * 32, 96), lambda b: (b, 0)),     # image block
            pl.BlockSpec((5, 96, 256), const3),                  # band1
            pl.BlockSpec((1, 128), const2),                      # bias1
            pl.BlockSpec((5, 128, 256), const3),                 # band2
            pl.BlockSpec((1, 128), const2),                      # bias2
            pl.BlockSpec((5, 128, 120), const3),                 # wfc1
            pl.BlockSpec((1, 120), const2),                      # bfc1
            pl.BlockSpec((120, 84), const2),                     # wfc2
            pl.BlockSpec((1, 84), const2),                       # bfc2
            pl.BlockSpec((84, 128), const2),                     # wfc3
            pl.BlockSpec((1, 128), const2),                      # bfc3
        ],
        out_specs=pl.BlockSpec((_BB, 128), lambda b: (b, 0)),
        scratch_shapes=[pltpu.VMEM((_BB * 32, 128), jnp.float32),   # s1: relu+w-pooled conv1
                        pltpu.VMEM((_BB * 32, 128), jnp.float32)],  # s2: relu+w-pooled conv2
    )

    out = pl.pallas_call(
        _lenet5_kernel,
        out_shape=jax.ShapeDtypeStruct((b_pad, 128), jnp.float32),
        grid_spec=grid_spec,
        compiler_params=pltpu.CompilerParams(
            dimension_semantics=("parallel",),      # independent batch blocks
            vmem_limit_bytes=32 * 1024 * 1024,      # safe on v5e/v6e/v7x
        ),
        cost_estimate=pl.CostEstimate(
            flops=nblk * flops_per_blk,
            transcendentals=0,
            bytes_accessed=bytes_accessed,
        ),
    )(x, prep["band1"], prep["bias1"], prep["band2"], prep["bias2"],
      prep["wfc1"], prep["bfc1"], prep["wfc2"], prep["bfc2"],
      prep["wfc3"], prep["bfc3"])

    return out[:B, :100]


# ----------------------------------------------------------------------------
# Pure-JAX reference (PyTorch semantics) for a numerical sanity check
# ----------------------------------------------------------------------------
def lenet5_reference(params, img):
    x = img.astype(jnp.float32)

    def conv(x, w, b):
        y = jax.lax.conv_general_dilated(
            x, w, (1, 1), "VALID",
            dimension_numbers=("NCHW", "OIHW", "NCHW"))
        return jax.nn.relu(y + b[None, :, None, None])

    def pool(x):
        B, C, H, W = x.shape
        return x.reshape(B, C, H // 2, 2, W // 2, 2).max(axis=(3, 5))

    x = pool(conv(x, params["conv1_w"], params["conv1_b"]))
    x = pool(conv(x, params["conv2_w"], params["conv2_b"]))
    x = x.reshape(x.shape[0], -1)                       # PyTorch view(B, -1)
    x = jax.nn.relu(x @ params["fc1_w"].T + params["fc1_b"])
    x = jax.nn.relu(x @ params["fc2_w"].T + params["fc2_b"])
    return x @ params["fc3_w"].T + params["fc3_b"]


# ----------------------------------------------------------------------------
# Deterministic synthetic parameters (PyTorch default uniform init bounds)
# ----------------------------------------------------------------------------
def init_params(key):
    ks = jax.random.split(key, 10)

    def u(k, shape, fan_in):
        bound = 1.0 / float(fan_in) ** 0.5
        return jax.random.uniform(k, shape, jnp.float32, -bound, bound)

    return {
        "conv1_w": u(ks[0], (6, 3, 5, 5), 3 * 25),
        "conv1_b": u(ks[1], (6,), 3 * 25),
        "conv2_w": u(ks[2], (16, 6, 5, 5), 6 * 25),
        "conv2_b": u(ks[3], (16,), 6 * 25),
        "fc1_w": u(ks[4], (120, 400), 400),
        "fc1_b": u(ks[5], (120,), 400),
        "fc2_w": u(ks[6], (84, 120), 120),
        "fc2_b": u(ks[7], (84,), 120),
        "fc3_w": u(ks[8], (100, 84), 84),
        "fc3_b": u(ks[9], (100,), 84),
    }


if __name__ == "__main__":
    key = jax.random.PRNGKey(0)
    pkey, xkey = jax.random.split(key)
    params = init_params(pkey)
    prep = prepare_params(params)          # one-time weight prep (bf16, folded layouts)

    # LeNet5 with a 16*5*5 flatten implies 32x32 RGB input; B=10 exercises both
    # the batch-padding path (10 -> 16) and a multi-step grid (grid=(2,)).
    img = jax.random.normal(xkey, (10, 3, 32, 32), dtype=jnp.float32)

    out = jax.jit(lenet5_forward)(prep, img)
    out = jax.block_until_ready(out)
    assert out.shape == (10, 100), out.shape
    assert out.dtype == jnp.float32

    # Sanity check vs. a pure-JAX f32 reference (loose tol: bf16 weights/activations).
    ref = lenet5_reference(params, img)
    assert bool(jnp.allclose(out, ref, rtol=5e-2, atol=5e-2)), (
        float(jnp.max(jnp.abs(out - ref))))

    print("KERNEL_OK")
</pallas_src>

<mosaic_0001>
module attributes {stable_mosaic.version = 11 : i64} {
  func.func @_lenet5_kernel(%arg0: i32, %arg1: memref<256x96xf32, #tpu.memory_space<vmem>>, %arg2: memref<5x96x256xbf16, #tpu.memory_space<vmem>>, %arg3: memref<1x128xf32, #tpu.memory_space<vmem>>, %arg4: memref<5x128x256xbf16, #tpu.memory_space<vmem>>, %arg5: memref<1x128xf32, #tpu.memory_space<vmem>>, %arg6: memref<5x128x120xbf16, #tpu.memory_space<vmem>>, %arg7: memref<1x120xf32, #tpu.memory_space<vmem>>, %arg8: memref<120x84xbf16, #tpu.memory_space<vmem>>, %arg9: memref<1x84xf32, #tpu.memory_space<vmem>>, %arg10: memref<84x128xbf16, #tpu.memory_space<vmem>>, %arg11: memref<1x128xf32, #tpu.memory_space<vmem>>, %arg12: memref<8x128xf32, #tpu.memory_space<vmem>>, %arg13: memref<256x128xf32, #tpu.memory_space<vmem>>, %arg14: memref<256x128xf32, #tpu.memory_space<vmem>>) attributes {dimension_semantics = [#tpu.dimension_semantics<parallel>], iteration_bounds = array<i64: 2>, scalar_prefetch = 0 : i64, scratch_operands = 2 : i64, tpu.core_type = #tpu.core_type<tc>, window_params = [{transform_indices = @transform_0, window_bounds = array<i64: 256, 96>}, {pipeline_mode = #tpu.pipeline_mode<synchronous>, transform_indices = @transform_1, window_bounds = array<i64: 5, 96, 256>}, {pipeline_mode = #tpu.pipeline_mode<synchronous>, transform_indices = @transform_2, window_bounds = array<i64: 1, 128>}, {pipeline_mode = #tpu.pipeline_mode<synchronous>, transform_indices = @transform_3, window_bounds = array<i64: 5, 128, 256>}, {pipeline_mode = #tpu.pipeline_mode<synchronous>, transform_indices = @transform_4, window_bounds = array<i64: 1, 128>}, {pipeline_mode = #tpu.pipeline_mode<synchronous>, transform_indices = @transform_5, window_bounds = array<i64: 5, 128, 120>}, {pipeline_mode = #tpu.pipeline_mode<synchronous>, transform_indices = @transform_6, window_bounds = array<i64: 1, 120>}, {pipeline_mode = #tpu.pipeline_mode<synchronous>, transform_indices = @transform_7, window_bounds = array<i64: 120, 84>}, {pipeline_mode = #tpu.pipeline_mode<synchronous>, transform_indices = @transform_8, window_bounds = array<i64: 1, 84>}, {pipeline_mode = #tpu.pipeline_mode<synchronous>, transform_indices = @transform_9, window_bounds = array<i64: 84, 128>}, {pipeline_mode = #tpu.pipeline_mode<synchronous>, transform_indices = @transform_10, window_bounds = array<i64: 1, 128>}, {transform_indices = @transform_11, window_bounds = array<i64: 8, 128>}]} {
    %cst = arith.constant 0.000000e+00 : f32
    %0 = vector.broadcast %cst : f32 to vector<252x256xf32>
    %c0 = arith.constant 0 : index
    %c0_0 = arith.constant 0 : index
    %1 = vector.load %arg1[%c0, %c0_0] : memref<256x96xf32, #tpu.memory_space<vmem>>, vector<252x96xf32>
    %2 = arith.truncf %1 : vector<252x96xf32> to vector<252x96xbf16>
    %c0_1 = arith.constant 0 : index
    %c0_2 = arith.constant 0 : index
    %c0_3 = arith.constant 0 : index
    %3 = vector.load %arg2[%c0_1, %c0_2, %c0_3] : memref<5x96x256xbf16, #tpu.memory_space<vmem>>, vector<1x96x256xbf16>
    %4 = vector.shape_cast %3 : vector<1x96x256xbf16> to vector<96x256xbf16>
    %cst_4 = arith.constant dense<0.000000e+00> : vector<252x256xf32>
    %5 = tpu.matmul %2, %4, %cst_4 {dimension_numbers = #tpu.dot_dimension_numbers<[1], [0], [0], [1], [0, 0, 1, 1], [], []>} : vector<252x96xbf16>, vector<96x256xbf16>, vector<252x256xf32> -> vector<252x256xf32>
    %6 = arith.addf %0, %5 : vector<252x256xf32>
    %c1 = arith.constant 1 : index
    %c0_5 = arith.constant 0 : index
    %7 = vector.load %arg1[%c1, %c0_5] : memref<256x96xf32, #tpu.memory_space<vmem>>, vector<252x96xf32>
    %8 = arith.truncf %7 : vector<252x96xf32> to vector<252x96xbf16>
    %c1_6 = arith.constant 1 : index
    %c0_7 = arith.constant 0 : index
    %c0_8 = arith.constant 0 : index
    %9 = vector.load %arg2[%c1_6, %c0_7, %c0_8] : memref<5x96x256xbf16, #tpu.memory_space<vmem>>, vector<1x96x256xbf16>
    %10 = vector.shape_cast %9 : vector<1x96x256xbf16> to vector<96x256xbf16>
    %cst_9 = arith.constant dense<0.000000e+00> : vector<252x256xf32>
    %11 = tpu.matmul %8, %10, %cst_9 {dimension_numbers = #tpu.dot_dimension_numbers<[1], [0], [0], [1], [0, 0, 1, 1], [], []>} : vector<252x96xbf16>, vector<96x256xbf16>, vector<252x256xf32> -> vector<252x256xf32>
    %12 = arith.addf %6, %11 : vector<252x256xf32>
    %c2 = arith.constant 2 : index
    %c0_10 = arith.constant 0 : index
    %13 = vector.load %arg1[%c2, %c0_10] : memref<256x96xf32, #tpu.memory_space<vmem>>, vector<252x96xf32>
    %14 = arith.truncf %13 : vector<252x96xf32> to vector<252x96xbf16>
    %c2_11 = arith.constant 2 : index
    %c0_12 = arith.constant 0 : index
    %c0_13 = arith.constant 0 : index
    %15 = vector.load %arg2[%c2_11, %c0_12, %c0_13] : memref<5x96x256xbf16, #tpu.memory_space<vmem>>, vector<1x96x256xbf16>
    %16 = vector.shape_cast %15 : vector<1x96x256xbf16> to vector<96x256xbf16>
    %cst_14 = arith.constant dense<0.000000e+00> : vector<252x256xf32>
    %17 = tpu.matmul %14, %16, %cst_14 {dimension_numbers = #tpu.dot_dimension_numbers<[1], [0], [0], [1], [0, 0, 1, 1], [], []>} : vector<252x96xbf16>, vector<96x256xbf16>, vector<252x256xf32> -> vector<252x256xf32>
    %18 = arith.addf %12, %17 : vector<252x256xf32>
    %c3 = arith.constant 3 : index
    %c0_15 = arith.constant 0 : index
    %19 = vector.load %arg1[%c3, %c0_15] : memref<256x96xf32, #tpu.memory_space<vmem>>, vector<252x96xf32>
    %20 = arith.truncf %19 : vector<252x96xf32> to vector<252x96xbf16>
    %c3_16 = arith.constant 3 : index
    %c0_17 = arith.constant 0 : index
    %c0_18 = arith.constant 0 : index
    %21 = vector.load %arg2[%c3_16, %c0_17, %c0_18] : memref<5x96x256xbf16, #tpu.memory_space<vmem>>, vector<1x96x256xbf16>
    %22 = vector.shape_cast %21 : vector<1x96x256xbf16> to vector<96x256xbf16>
    %cst_19 = arith.constant dense<0.000000e+00> : vector<252x256xf32>
    %23 = tpu.matmul %20, %22, %cst_19 {dimension_numbers = #tpu.dot_dimension_numbers<[1], [0], [0], [1], [0, 0, 1, 1], [], []>} : vector<252x96xbf16>, vector<96x256xbf16>, vector<252x256xf32> -> vector<252x256xf32>
    %24 = arith.addf %18, %23 : vector<252x256xf32>
    %c4 = arith.constant 4 : index
    %c0_20 = arith.constant 0 : index
    %25 = vector.load %arg1[%c4, %c0_20] : memref<256x96xf32, #tpu.memory_space<vmem>>, vector<252x96xf32>
    %26 = arith.truncf %25 : vector<252x96xf32> to vector<252x96xbf16>
    %c4_21 = arith.constant 4 : index
    %c0_22 = arith.constant 0 : index
    %c0_23 = arith.constant 0 : index
    %27 = vector.load %arg2[%c4_21, %c0_22, %c0_23] : memref<5x96x256xbf16, #tpu.memory_space<vmem>>, vector<1x96x256xbf16>
    %28 = vector.shape_cast %27 : vector<1x96x256xbf16> to vector<96x256xbf16>
    %cst_24 = arith.constant dense<0.000000e+00> : vector<252x256xf32>
    %29 = tpu.matmul %26, %28, %cst_24 {dimension_numbers = #tpu.dot_dimension_numbers<[1], [0], [0], [1], [0, 0, 1, 1], [], []>} : vector<252x96xbf16>, vector<96x256xbf16>, vector<252x256xf32> -> vector<252x256xf32>
    %30 = arith.addf %24, %29 : vector<252x256xf32>
    %31 = vector.extract_strided_slice %30 {offsets = [0, 0], sizes = [252, 128], strides = [1, 1]} : vector<252x256xf32> to vector<252x128xf32>
    %32 = vector.extract_strided_slice %30 {offsets = [0, 128], sizes = [252, 128], strides = [1, 1]} : vector<252x256xf32> to vector<252x128xf32>
    %33 = arith.maximumf %31, %32 : vector<252x128xf32>
    %c0_25 = arith.constant 0 : index
    %c0_26 = arith.constant 0 : index
    %34 = vector.load %arg3[%c0_25, %c0_26] : memref<1x128xf32, #tpu.memory_space<vmem>>, vector<1x128xf32>
    %35 = vector.broadcast %34 : vector<1x128xf32> to vector<252x128xf32>
    %36 = arith.addf %33, %35 : vector<252x128xf32>
    %cst_27 = arith.constant 0.000000e+00 : f32
    %37 = vector.broadcast %cst_27 : f32 to vector<252x128xf32>
    %38 = arith.maximumf %36, %37 : vector<252x128xf32>
    %c0_28 = arith.constant 0 : index
    %c0_29 = arith.constant 0 : index
    %39 = vector.load %arg13[%c0_28, %c0_29] : memref<256x128xf32, #tpu.memory_space<vmem>>, vector<252x128xf32>
    tpu.vector_store %arg13[%c0_28, %c0_29], %38 {strides = array<i32>} : memref<256x128xf32, #tpu.memory_space<vmem>>, vector<252x128xf32>,
    %cst_30 = arith.constant 0.000000e+00 : f32
    %40 = vector.broadcast %cst_30 : f32 to vector<243x256xf32>
    %c0_31 = arith.constant 0 : index
    %c0_32 = arith.constant 0 : index
    %41 = vector.load %arg13[%c0_31, %c0_32] : memref<256x128xf32, #tpu.memory_space<vmem>>, vector<243x128xf32>
    %c1_33 = arith.constant 1 : index
    %c0_34 = arith.constant 0 : index
    %42 = vector.load %arg13[%c1_33, %c0_34] : memref<256x128xf32, #tpu.memory_space<vmem>>, vector<243x128xf32>
    %43 = arith.maximumf %41, %42 : vector<243x128xf32>
    %44 = arith.truncf %43 : vector<243x128xf32> to vector<243x128xbf16>
    %c0_35 = arith.constant 0 : index
    %c0_36 = arith.constant 0 : index
    %c0_37 = arith.constant 0 : index
    %45 = vector.load %arg4[%c0_35, %c0_36, %c0_37] : memref<5x128x256xbf16, #tpu.memory_space<vmem>>, vector<1x128x256xbf16>
    %46 = vector.shape_cast %45 : vector<1x128x256xbf16> to vector<128x256xbf16>
    %cst_38 = arith.constant dense<0.000000e+00> : vector<243x256xf32>
    %47 = tpu.matmul %44, %46, %cst_38 {dimension_numbers = #tpu.dot_dimension_numbers<[1], [0], [0], [1], [0, 0, 1, 1], [], []>} : vector<243x128xbf16>, vector<128x256xbf16>, vector<243x256xf32> -> vector<243x256xf32>
    %48 = arith.addf %40, %47 : vector<243x256xf32>
    %c2_39 = arith.constant 2 : index
    %c0_40 = arith.constant 0 : index
    %49 = vector.load %arg13[%c2_39, %c0_40] : memref<256x128xf32, #tpu.memory_space<vmem>>, vector<243x128xf32>
    %c3_41 = arith.constant 3 : index
    %c0_42 = arith.constant 0 : index
    %50 = vector.load %arg13[%c3_41, %c0_42] : memref<256x128xf32, #tpu.memory_space<vmem>>, vector<243x128xf32>
    %51 = arith.maximumf %49, %50 : vector<243x128xf32>
    %52 = arith.truncf %51 : vector<243x128xf32> to vector<243x128xbf16>
    %c1_43 = arith.constant 1 : index
    %c0_44 = arith.constant 0 : index
    %c0_45 = arith.constant 0 : index
    %53 = vector.load %arg4[%c1_43, %c0_44, %c0_45] : memref<5x128x256xbf16, #tpu.memory_space<vmem>>, vector<1x128x256xbf16>
    %54 = vector.shape_cast %53 : vector<1x128x256xbf16> to vector<128x256xbf16>
    %cst_46 = arith.constant dense<0.000000e+00> : vector<243x256xf32>
    %55 = tpu.matmul %52, %54, %cst_46 {dimension_numbers = #tpu.dot_dimension_numbers<[1], [0], [0], [1], [0, 0, 1, 1], [], []>} : vector<243x128xbf16>, vector<128x256xbf16>, vector<243x256xf32> -> vector<243x256xf32>
    %56 = arith.addf %48, %55 : vector<243x256xf32>
    %c4_47 = arith.constant 4 : index
    %c0_48 = arith.constant 0 : index
    %57 = vector.load %arg13[%c4_47, %c0_48] : memref<256x128xf32, #tpu.memory_space<vmem>>, vector<243x128xf32>
    %c5 = arith.constant 5 : index
    %c0_49 = arith.constant 0 : index
    %58 = vector.load %arg13[%c5, %c0_49] : memref<256x128xf32, #tpu.memory_space<vmem>>, vector<243x128xf32>
    %59 = arith.maximumf %57, %58 : vector<243x128xf32>
    %60 = arith.truncf %59 : vector<243x128xf32> to vector<243x128xbf16>
    %c2_50 = arith.constant 2 : index
    %c0_51 = arith.constant 0 : index
    %c0_52 = arith.constant 0 : index
    %61 = vector.load %arg4[%c2_50, %c0_51, %c0_52] : memref<5x128x256xbf16, #tpu.memory_space<vmem>>, vector<1x128x256xbf16>
    %62 = vector.shape_cast %61 : vector<1x128x256xbf16> to vector<128x256xbf16>
    %cst_53 = arith.constant dense<0.000000e+00> : vector<243x256xf32>
    %63 = tpu.matmul %60, %62, %cst_53 {dimension_numbers = #tpu.dot_dimension_numbers<[1], [0], [0], [1], [0, 0, 1, 1], [], []>} : vector<243x128xbf16>, vector<128x256xbf16>, vector<243x256xf32> -> vector<243x256xf32>
    %64 = arith.addf %56, %63 : vector<243x256xf32>
    %c6 = arith.constant 6 : index
    %c0_54 = arith.constant 0 : index
    %65 = vector.load %arg13[%c6, %c0_54] : memref<256x128xf32, #tpu.memory_space<vmem>>, vector<243x128xf32>
    %c7 = arith.constant 7 : index
    %c0_55 = arith.constant 0 : index
    %66 = vector.load %arg13[%c7, %c0_55] : memref<256x128xf32, #tpu.memory_space<vmem>>, vector<243x128xf32>
    %67 = arith.maximumf %65, %66 : vector<243x128xf32>
    %68 = arith.truncf %67 : vector<243x128xf32> to vector<243x128xbf16>
    %c3_56 = arith.constant 3 : index
    %c0_57 = arith.constant 0 : index
    %c0_58 = arith.constant 0 : index
    %69 = vector.load %arg4[%c3_56, %c0_57, %c0_58] : memref<5x128x256xbf16, #tpu.memory_space<vmem>>, vector<1x128x256xbf16>
    %70 = vector.shape_cast %69 : vector<1x128x256xbf16> to vector<128x256xbf16>
    %cst_59 = arith.constant dense<0.000000e+00> : vector<243x256xf32>
    %71 = tpu.matmul %68, %70, %cst_59 {dimension_numbers = #tpu.dot_dimension_numbers<[1], [0], [0], [1], [0, 0, 1, 1], [], []>} : vector<243x128xbf16>, vector<128x256xbf16>, vector<243x256xf32> -> vector<243x256xf32>
    %72 = arith.addf %64, %71 : vector<243x256xf32>
    %c8 = arith.constant 8 : index
    %c0_60 = arith.constant 0 : index
    %73 = vector.load %arg13[%c8, %c0_60] : memref<256x128xf32, #tpu.memory_space<vmem>>, vector<243x128xf32>
    %c9 = arith.constant 9 : index
    %c0_61 = arith.constant 0 : index
    %74 = vector.load %arg13[%c9, %c0_61] : memref<256x128xf32, #tpu.memory_space<vmem>>, vector<243x128xf32>
    %75 = arith.maximumf %73, %74 : vector<243x128xf32>
    %76 = arith.truncf %75 : vector<243x128xf32> to vector<243x128xbf16>
    %c4_62 = arith.constant 4 : index
    %c0_63 = arith.constant 0 : index
    %c0_64 = arith.constant 0 : index
    %77 = vector.load %arg4[%c4_62, %c0_63, %c0_64] : memref<5x128x256xbf16, #tpu.memory_space<vmem>>, vector<1x128x256xbf16>
    %78 = vector.shape_cast %77 : vector<1x128x256xbf16> to vector<128x256xbf16>
    %cst_65 = arith.constant dense<0.000000e+00> : vector<243x256xf32>
    %79 = tpu.matmul %76, %78, %cst_65 {dimension_numbers = #tpu.dot_dimension_numbers<[1], [0], [0], [1], [0, 0, 1, 1], [], []>} : vector<243x128xbf16>, vector<128x256xbf16>, vector<243x256xf32> -> vector<243x256xf32>
    %80 = arith.addf %72, %79 : vector<243x256xf32>
    %81 = vector.extract_strided_slice %80 {offsets = [0, 0], sizes = [243, 128], strides = [1, 1]} : vector<243x256xf32> to vector<243x128xf32>
    %82 = vector.extract_strided_slice %80 {offsets = [0, 128], sizes = [243, 128], strides = [1, 1]} : vector<243x256xf32> to vector<243x128xf32>
    %83 = arith.maximumf %81, %82 : vector<243x128xf32>
    %c0_66 = arith.constant 0 : index
    %c0_67 = arith.constant 0 : index
    %84 = vector.load %arg5[%c0_66, %c0_67] : memref<1x128xf32, #tpu.memory_space<vmem>>, vector<1x128xf32>
    %85 = vector.broadcast %84 : vector<1x128xf32> to vector<243x128xf32>
    %86 = arith.addf %83, %85 : vector<243x128xf32>
    %cst_68 = arith.constant 0.000000e+00 : f32
    %87 = vector.broadcast %cst_68 : f32 to vector<243x128xf32>
    %88 = arith.maximumf %86, %87 : vector<243x128xf32>
    %c0_69 = arith.constant 0 : index
    %c0_70 = arith.constant 0 : index
    %89 = vector.load %arg14[%c0_69, %c0_70] : memref<256x128xf32, #tpu.memory_space<vmem>>, vector<243x128xf32>
    tpu.vector_store %arg14[%c0_69, %c0_70], %88 {strides = array<i32>} : memref<256x128xf32, #tpu.memory_space<vmem>>, vector<243x128xf32>,
    %cst_71 = arith.constant 0.000000e+00 : f32
    %90 = vector.broadcast %cst_71 : f32 to vector<225x120xf32>
    %c0_72 = arith.constant 0 : index
    %c0_73 = arith.constant 0 : index
    %91 = vector.load %arg14[%c0_72, %c0_73] : memref<256x128xf32, #tpu.memory_space<vmem>>, vector<225x128xf32>
    %c2_74 = arith.constant 2 : index
    %c0_75 = arith.constant 0 : index
    %92 = vector.load %arg14[%c2_74, %c0_75] : memref<256x128xf32, #tpu.memory_space<vmem>>, vector<225x128xf32>
    %93 = arith.maximumf %91, %92 : vector<225x128xf32>
    %94 = arith.truncf %93 : vector<225x128xf32> to vector<225x128xbf16>
    %c0_76 = arith.constant 0 : index
    %c0_77 = arith.constant 0 : index
    %c0_78 = arith.constant 0 : index
    %95 = vector.load %arg6[%c0_76, %c0_77, %c0_78] : memref<5x128x120xbf16, #tpu.memory_space<vmem>>, vector<1x128x120xbf16>
    %96 = vector.shape_cast %95 : vector<1x128x120xbf16> to vector<128x120xbf16>
    %cst_79 = arith.constant dense<0.000000e+00> : vector<225x120xf32>
    %97 = tpu.matmul %94, %96, %cst_79 {dimension_numbers = #tpu.dot_dimension_numbers<[1], [0], [0], [1], [0, 0, 1, 1], [], []>} : vector<225x128xbf16>, vector<128x120xbf16>, vector<225x120xf32> -> vector<225x120xf32>
    %98 = arith.addf %90, %97 : vector<225x120xf32>
    %c4_80 = arith.constant 4 : index
    %c0_81 = arith.constant 0 : index
    %99 = vector.load %arg14[%c4_80, %c0_81] : memref<256x128xf32, #tpu.memory_space<vmem>>, vector<225x128xf32>
    %c6_82 = arith.constant 6 : index
    %c0_83 = arith.constant 0 : index
    %100 = vector.load %arg14[%c6_82, %c0_83] : memref<256x128xf32, #tpu.memory_space<vmem>>, vector<225x128xf32>
    %101 = arith.maximumf %99, %100 : vector<225x128xf32>
    %102 = arith.truncf %101 : vector<225x128xf32> to vector<225x128xbf16>
    %c1_84 = arith.constant 1 : index
    %c0_85 = arith.constant 0 : index
    %c0_86 = arith.constant 0 : index
    %103 = vector.load %arg6[%c1_84, %c0_85, %c0_86] : memref<5x128x120xbf16, #tpu.memory_space<vmem>>, vector<1x128x120xbf16>
    %104 = vector.shape_cast %103 : vector<1x128x120xbf16> to vector<128x120xbf16>
    %cst_87 = arith.constant dense<0.000000e+00> : vector<225x120xf32>
    %105 = tpu.matmul %102, %104, %cst_87 {dimension_numbers = #tpu.dot_dimension_numbers<[1], [0], [0], [1], [0, 0, 1, 1], [], []>} : vector<225x128xbf16>, vector<128x120xbf16>, vector<225x120xf32> -> vector<225x120xf32>
    %106 = arith.addf %98, %105 : vector<225x120xf32>
    %c8_88 = arith.constant 8 : index
    %c0_89 = arith.constant 0 : index
    %107 = vector.load %arg14[%c8_88, %c0_89] : memref<256x128xf32, #tpu.memory_space<vmem>>, vector<225x128xf32>
    %c10 = arith.constant 10 : index
    %c0_90 = arith.constant 0 : index
    %108 = vector.load %arg14[%c10, %c0_90] : memref<256x128xf32, #tpu.memory_space<vmem>>, vector<225x128xf32>
    %109 = arith.maximumf %107, %108 : vector<225x128xf32>
    %110 = arith.truncf %109 : vector<225x128xf32> to vector<225x128xbf16>
    %c2_91 = arith.constant 2 : index
    %c0_92 = arith.constant 0 : index
    %c0_93 = arith.constant 0 : index
    %111 = vector.load %arg6[%c2_91, %c0_92, %c0_93] : memref<5x128x120xbf16, #tpu.memory_space<vmem>>, vector<1x128x120xbf16>
    %112 = vector.shape_cast %111 : vector<1x128x120xbf16> to vector<128x120xbf16>
    %cst_94 = arith.constant dense<0.000000e+00> : vector<225x120xf32>
    %113 = tpu.matmul %110, %112, %cst_94 {dimension_numbers = #tpu.dot_dimension_numbers<[1], [0], [0], [1], [0, 0, 1, 1], [], []>} : vector<225x128xbf16>, vector<128x120xbf16>, vector<225x120xf32> -> vector<225x120xf32>
    %114 = arith.addf %106, %113 : vector<225x120xf32>
    %c12 = arith.constant 12 : index
    %c0_95 = arith.constant 0 : index
    %115 = vector.load %arg14[%c12, %c0_95] : memref<256x128xf32, #tpu.memory_space<vmem>>, vector<225x128xf32>
    %c14 = arith.constant 14 : index
    %c0_96 = arith.constant 0 : index
    %116 = vector.load %arg14[%c14, %c0_96] : memref<256x128xf32, #tpu.memory_space<vmem>>, vector<225x128xf32>
    %117 = arith.maximumf %115, %116 : vector<225x128xf32>
    %118 = arith.truncf %117 : vector<225x128xf32> to vector<225x128xbf16>
    %c3_97 = arith.constant 3 : index
    %c0_98 = arith.constant 0 : index
    %c0_99 = arith.constant 0 : index
    %119 = vector.load %arg6[%c3_97, %c0_98, %c0_99] : memref<5x128x120xbf16, #tpu.memory_space<vmem>>, vector<1x128x120xbf16>
    %120 = vector.shape_cast %119 : vector<1x128x120xbf16> to vector<128x120xbf16>
    %cst_100 = arith.constant dense<0.000000e+00> : vector<225x120xf32>
    %121 = tpu.matmul %118, %120, %cst_100 {dimension_numbers = #tpu.dot_dimension_numbers<[1], [0], [0], [1], [0, 0, 1, 1], [], []>} : vector<225x128xbf16>, vector<128x120xbf16>, vector<225x120xf32> -> vector<225x120xf32>
    %122 = arith.addf %114, %121 : vector<225x120xf32>
    %c16 = arith.constant 16 : index
    %c0_101 = arith.constant 0 : index
    %123 = vector.load %arg14[%c16, %c0_101] : memref<256x128xf32, #tpu.memory_space<vmem>>, vector<225x128xf32>
    %c18 = arith.constant 18 : index
    %c0_102 = arith.constant 0 : index
    %124 = vector.load %arg14[%c18, %c0_102] : memref<256x128xf32, #tpu.memory_space<vmem>>, vector<225x128xf32>
    %125 = arith.maximumf %123, %124 : vector<225x128xf32>
    %126 = arith.truncf %125 : vector<225x128xf32> to vector<225x128xbf16>
    %c4_103 = arith.constant 4 : index
    %c0_104 = arith.constant 0 : index
    %c0_105 = arith.constant 0 : index
    %127 = vector.load %arg6[%c4_103, %c0_104, %c0_105] : memref<5x128x120xbf16, #tpu.memory_space<vmem>>, vector<1x128x120xbf16>
    %128 = vector.shape_cast %127 : vector<1x128x120xbf16> to vector<128x120xbf16>
    %cst_106 = arith.constant dense<0.000000e+00> : vector<225x120xf32>
    %129 = tpu.matmul %126, %128, %cst_106 {dimension_numbers = #tpu.dot_dimension_numbers<[1], [0], [0], [1], [0, 0, 1, 1], [], []>} : vector<225x128xbf16>, vector<128x120xbf16>, vector<225x120xf32> -> vector<225x120xf32>
    %130 = arith.addf %122, %129 : vector<225x120xf32>
    %131 = vector.extract_strided_slice %130 {offsets = [0, 0], sizes = [1, 120], strides = [1, 1]} : vector<225x120xf32> to vector<1x120xf32>
    %132 = vector.extract_strided_slice %130 {offsets = [32, 0], sizes = [1, 120], strides = [1, 1]} : vector<225x120xf32> to vector<1x120xf32>
    %133 = vector.extract_strided_slice %130 {offsets = [64, 0], sizes = [1, 120], strides = [1, 1]} : vector<225x120xf32> to vector<1x120xf32>
    %134 = vector.extract_strided_slice %130 {offsets = [96, 0], sizes = [1, 120], strides = [1, 1]} : vector<225x120xf32> to vector<1x120xf32>
    %135 = vector.extract_strided_slice %130 {offsets = [128, 0], sizes = [1, 120], strides = [1, 1]} : vector<225x120xf32> to vector<1x120xf32>
    %136 = vector.extract_strided_slice %130 {offsets = [160, 0], sizes = [1, 120], strides = [1, 1]} : vector<225x120xf32> to vector<1x120xf32>
    %137 = vector.extract_strided_slice %130 {offsets = [192, 0], sizes = [1, 120], strides = [1, 1]} : vector<225x120xf32> to vector<1x120xf32>
    %138 = vector.extract_strided_slice %130 {offsets = [224, 0], sizes = [1, 120], strides = [1, 1]} : vector<225x120xf32> to vector<1x120xf32>
    %139 = tpu.concatenate %131, %132, %133, %134, %135, %136, %137, %138 in 0 : vector<1x120xf32>, vector<1x120xf32>, vector<1x120xf32>, vector<1x120xf32>, vector<1x120xf32>, vector<1x120xf32>, vector<1x120xf32>, vector<1x120xf32> -> vector<8x120xf32>
    %c0_107 = arith.constant 0 : index
    %c0_108 = arith.constant 0 : index
    %140 = vector.load %arg7[%c0_107, %c0_108] : memref<1x120xf32, #tpu.memory_space<vmem>>, vector<1x120xf32>
    %141 = vector.broadcast %140 : vector<1x120xf32> to vector<8x120xf32>
    %142 = arith.addf %139, %141 : vector<8x120xf32>
    %cst_109 = arith.constant 0.000000e+00 : f32
    %143 = vector.broadcast %cst_109 : f32 to vector<8x120xf32>
    %144 = arith.maximumf %142, %143 : vector<8x120xf32>
    %145 = arith.truncf %144 : vector<8x120xf32> to vector<8x120xbf16>
    %c0_110 = arith.constant 0 : index
    %c0_111 = arith.constant 0 : index
    %146 = vector.load %arg8[%c0_110, %c0_111] : memref<120x84xbf16, #tpu.memory_space<vmem>>, vector<120x84xbf16>
    %cst_112 = arith.constant dense<0.000000e+00> : vector<8x84xf32>
    %147 = tpu.matmul %145, %146, %cst_112 {dimension_numbers = #tpu.dot_dimension_numbers<[1], [0], [0], [1], [0, 0, 1, 1], [], []>} : vector<8x120xbf16>, vector<120x84xbf16>, vector<8x84xf32> -> vector<8x84xf32>
    %c0_113 = arith.constant 0 : index
    %c0_114 = arith.constant 0 : index
    %148 = vector.load %arg9[%c0_113, %c0_114] : memref<1x84xf32, #tpu.memory_space<vmem>>, vector<1x84xf32>
    %149 = vector.broadcast %148 : vector<1x84xf32> to vector<8x84xf32>
    %150 = arith.addf %147, %149 : vector<8x84xf32>
    %cst_115 = arith.constant 0.000000e+00 : f32
    %151 = vector.broadcast %cst_115 : f32 to vector<8x84xf32>
    %152 = arith.maximumf %150, %151 : vector<8x84xf32>
    %153 = arith.truncf %152 : vector<8x84xf32> to vector<8x84xbf16>
    %c0_116 = arith.constant 0 : index
    %c0_117 = arith.constant 0 : index
    %154 = vector.load %arg10[%c0_116, %c0_117] : memref<84x128xbf16, #tpu.memory_space<vmem>>, vector<84x128xbf16>
    %cst_118 = arith.constant dense<0.000000e+00> : vector<8x128xf32>
    %155 = tpu.matmul %153, %154, %cst_118 {dimension_numbers = #tpu.dot_dimension_numbers<[1], [0], [0], [1], [0, 0, 1, 1], [], []>} : vector<8x84xbf16>, vector<84x128xbf16>, vector<8x128xf32> -> vector<8x128xf32>
    %c0_119 = arith.constant 0 : index
    %c0_120 = arith.constant 0 : index
    %156 = vector.load %arg11[%c0_119, %c0_120] : memref<1x128xf32, #tpu.memory_space<vmem>>, vector<1x128xf32>
    %157 = vector.broadcast %156 : vector<1x128xf32> to vector<8x128xf32>
    %158 = arith.addf %155, %157 : vector<8x128xf32>
    %c0_121 = arith.constant 0 : index
    %c0_122 = arith.constant 0 : index
    %159 = vector.load %arg12[%c0_121, %c0_122] : memref<8x128xf32, #tpu.memory_space<vmem>>, vector<8x128xf32>
    tpu.vector_store %arg12[%c0_121, %c0_122], %158 {strides = array<i32>} : memref<8x128xf32, #tpu.memory_space<vmem>>, vector<8x128xf32>,
    return
  }
  func.func @transform_0(%arg0: i32) -> (i32, i32) {
    %c0_i32 = arith.constant 0 : i32
    %c0_i32_0 = arith.constant 0 : i32
    return %arg0, %c0_i32 : i32, i32
  }
  func.func @transform_1(%arg0: i32) -> (i32, i32, i32) {
    %c0_i32 = arith.constant 0 : i32
    %c0_i32_0 = arith.constant 0 : i32
    %c0_i32_1 = arith.constant 0 : i32
    %c0_i32_2 = arith.constant 0 : i32
    return %c0_i32, %c0_i32_0, %c0_i32_1 : i32, i32, i32
  }
  func.func @transform_2(%arg0: i32) -> (i32, i32) {
    %c0_i32 = arith.constant 0 : i32
    %c0_i32_0 = arith.constant 0 : i32
    %c0_i32_1 = arith.constant 0 : i32
    return %c0_i32, %c0_i32_0 : i32, i32
  }
  func.func @transform_3(%arg0: i32) -> (i32, i32, i32) {
    %c0_i32 = arith.constant 0 : i32
    %c0_i32_0 = arith.constant 0 : i32
    %c0_i32_1 = arith.constant 0 : i32
    %c0_i32_2 = arith.constant 0 : i32
    return %c0_i32, %c0_i32_0, %c0_i32_1 : i32, i32, i32
  }
  func.func @transform_4(%arg0: i32) -> (i32, i32) {
    %c0_i32 = arith.constant 0 : i32
    %c0_i32_0 = arith.constant 0 : i32
    %c0_i32_1 = arith.constant 0 : i32
    return %c0_i32, %c0_i32_0 : i32, i32
  }
  func.func @transform_5(%arg0: i32) -> (i32, i32, i32) {
    %c0_i32 = arith.constant 0 : i32
    %c0_i32_0 = arith.constant 0 : i32
    %c0_i32_1 = arith.constant 0 : i32
    %c0_i32_2 = arith.constant 0 : i32
    return %c0_i32, %c0_i32_0, %c0_i32_1 : i32, i32, i32
  }
  func.func @transform_6(%arg0: i32) -> (i32, i32) {
    %c0_i32 = arith.constant 0 : i32
    %c0_i32_0 = arith.constant 0 : i32
    %c0_i32_1 = arith.constant 0 : i32
    return %c0_i32, %c0_i32_0 : i32, i32
  }
  func.func @transform_7(%arg0: i32) -> (i32, i32) {
    %c0_i32 = arith.constant 0 : i32
    %c0_i32_0 = arith.constant 0 : i32
    %c0_i32_1 = arith.constant 0 : i32
    return %c0_i32, %c0_i32_0 : i32, i32
  }
  func.func @transform_8(%arg0: i32) -> (i32, i32) {
    %c0_i32 = arith.constant 0 : i32
    %c0_i32_0 = arith.constant 0 : i32
    %c0_i32_1 = arith.constant 0 : i32
    return %c0_i32, %c0_i32_0 : i32, i32
  }
  func.func @transform_9(%arg0: i32) -> (i32, i32) {
    %c0_i32 = arith.constant 0 : i32
    %c0_i32_0 = arith.constant 0 : i32
    %c0_i32_1 = arith.constant 0 : i32
    return %c0_i32, %c0_i32_0 : i32, i32
  }
  func.func @transform_10(%arg0: i32) -> (i32, i32) {
    %c0_i32 = arith.constant 0 : i32
    %c0_i32_0 = arith.constant 0 : i32
    %c0_i32_1 = arith.constant 0 : i32
    return %c0_i32, %c0_i32_0 : i32, i32
  }
  func.func @transform_11(%arg0: i32) -> (i32, i32) {
    %c0_i32 = arith.constant 0 : i32
    %c0_i32_0 = arith.constant 0 : i32
    return %arg0, %c0_i32 : i32, i32
  }
}

</mosaic_0001>

<bundles_post_ra>
// kernel: lenet5_forward.1
= control target key start
LH: loop header
LB: loop body
LE: loop exit
PB: predicated region body
PF: predicated region fallthrough
CT: control target
= control target key end

     0   :  { %16 = vsyncpa [#allocation5], 0  ;;  %s10947_s0 = inlined_call_operand.vmem [shape: f32[512,96], index: 0, kind: input, shape index: {}]   ;;  %s10948_s1 = inlined_call_operand.vmem [shape: bf16[5,96,256], index: 1, kind: input, shape index: {}]   ;;  %s10949_s2 = inlined_call_operand.vmem [shape: f32[1,128], index: 2, kind: input, shape index: {}]   ;;  %s10950_s3 = inlined_call_operand.vmem [shape: bf16[5,128,256], index: 3, kind: input, shape index: {}]   ;;  %s10951_s4 = inlined_call_operand.vmem [shape: f32[1,128], index: 4, kind: input, shape index: {}]   ;;  %s10952_s5 = inlined_call_operand.vmem [shape: bf16[5,128,120], index: 5, kind: input, shape index: {}]   ;;  %s10953_s6 = inlined_call_operand.vmem [shape: f32[1,120], index: 6, kind: input, shape index: {}]   ;;  %s10954_s7 = inlined_call_operand.vmem [shape: bf16[120,84], index: 7, kind: input, shape index: {}]   ;;  %s10955_s8 = inlined_call_operand.vmem [shape: f32[1,84], index: 8, kind: input, shape index: {}]   ;;  %s10956_s9 = inlined_call_operand.vmem [shape: bf16[84,128], index: 9, kind: input, shape index: {}]   ;;  %s10957_s10 = inlined_call_operand.vmem [shape: f32[1,128], index: 10, kind: input, shape index: {}]   ;;  %s10958_s11 = inlined_call_operand.hbm [shape: f32[16,128], index: 11, kind: output, shape index: {}]  }
   0x1   :  { %18 = vsyncpa [#allocation5 + $0x1], 0  ;;  %s8761_s17 = smov 0   ;;  %s8763_s18 = smov 0  }
   0x2   :  { %s8765_s19 = smov 0   ;;  %s8767_s20 = smov 0  }
   0x3 LB: > { %10962 = sst [smem:[#allocation7_spill]] %s8691_s19  ;;  %s8782_s21 = sadd.s32 4294967295, %s8695_s20   ;;  %s8695_s20 = sphi %s8767_s20, %s11022_s20   ;;  %s8691_s19 = sphi %s8765_s19, %s11019_s19   ;;  %s8687_s18 = sphi %s8763_s18, %s11021_s18   ;;  %s8683_s17 = sphi %s8761_s17, %s11020_s17  }
   0x4   : > { %s6672_s22 = sadd.s32 4294967294, %s8695_s20   ;;  %s8786_s23 = sadd.s32 1, %s8695_s20  }
   0x5   : > { %s267_s24 = sadd.s32 1, %s8691_s19  ;;  %s264_s25 = ssub.s32 %s8695_s20, %s8786_s23 }
   0x6   : > { %p277_p0 = scmp.ne.s32.totalorder %s8691_s19, %s8687_s18  ;;  %p265_p1 = scmp.eq.s32.totalorder %s264_s25, 0 }
   0x7   : > { %p278_p2 = scmp.eq.s32.totalorder %s8782_s21, 1  ;;  %p283_p3 = scmp.ne.s32.totalorder %s8687_s18, %s8683_s17 }
   0x8   : > { %p284_p4 = scmp.eq.s32.totalorder %s6672_s22, 1  ;;  %p6675_p7 = scmp.ge.s32.totalorder %s8695_s20, 1 }
   0x9   : > { %s8797_s26 = scalar_select %p265_p1, %s8691_s19, %s267_s24  }
   0xa   : > { %p8799_p5 = por %p278_p2, %p277_p0  ;;  %p8803_p6 = por %p284_p4, %p283_p3 }
   0xb   : > { %10963 = sst [smem:[#allocation8_spill]] %s8797_s26  ;;  %p341_p8 = scmp.lt.s32.totalorder %s8695_s20, 3 }
   0xd   : > { %p342_p9 = pnand %p6675_p7, %p341_p8 }
   0xf   : > { %345 = sbr.rel (%p342_p9) target bundleno = 2557 (0x9fd), region = 64 }
  0x16   : > { %v8369_v0 = vld [vmem:[%s10948_s1 + $0x64] ss:$8 sps:$4 sm:$0xff]   ;;  %v10960_v2 = vmov 0   ;;  %v8373_v3 = vld [vmem:[%s10948_s1 + $0x60] ss:$8 sps:$4 sm:$0xff]   ;;  %s6677_s24 = sshll.u32 %s8782_s21, 5 }
  0x17   : > { %v8371_v1 = vld [vmem:[%s10948_s1 + $0xc4] ss:$8 sps:$4 sm:$0xff]   ;;  %650 = vmatprep.mubr.bf16.mxu1 %v10960_v2  ;;  %1313 = vmatprep.mubr.bf16.mxu0 %v10960_v2  ;;  %v8374_v4 = vld [vmem:[%s10948_s1 + $0xc0] ss:$8 sps:$4 sm:$0xff]   ;;  %v8375_v5 = vld [vmem:[%s10948_s1 + $0x74] ss:$8 sps:$4 sm:$0xff]  }
  0x18   : > { %618 = vmatprep.subr.bf16.mxu1 %v8369_v0  ;;  %1281 = vmatprep.subr.bf16.mxu0 %v8371_v1  ;;  %v8377_v6 = vld [vmem:[%s10948_s1 + $0xd4] ss:$8 sps:$4 sm:$0xff]   ;;  %v8379_v7 = vld [vmem:[%s10948_s1 + $0x70] ss:$8 sps:$4 sm:$0xff]   ;;  %p382_p10 = scmp.lt.s32.totalorder %s6677_s24, 63  ;;  %vm569_vm0 = vcmask 785408  }
  0x19   : > { %619 = vmatpush1.bf16.msra.mxu1 %v8373_v3  ;;  %1282 = vmatpush1.bf16.msra.mxu0 %v8374_v4  ;;  %v8380_v8 = vld [vmem:[%s10948_s1 + $0xd0] ss:$8 sps:$4 sm:$0xff]   ;;  %v8381_v9 = vld [vmem:[%s10948_s1 + $0x84] ss:$8 sps:$4 sm:$0xff]   ;;  %v8385_v11 = vld [vmem:[%s10948_s1 + $0x80] ss:$8 sps:$4 sm:$0xff]  }
  0x1a   : > { %620 = vmatprep.subr.bf16.mxu1 %v8375_v5  ;;  %1283 = vmatprep.subr.bf16.mxu0 %v8377_v6  ;;  %v8383_v10 = vld [vmem:[%s10948_s1 + $0xe4] ss:$8 sps:$4 sm:$0xff]   ;;  %v8386_v12 = vld [vmem:[%s10948_s1 + $0xe0] ss:$8 sps:$4 sm:$0xff]   ;;  %v8387_v13 = vld [vmem:[%s10948_s1 + $0x94] ss:$8 sps:$4 sm:$0xff]  }
  0x1b   : > { %v8389_v14 = vld [vmem:[%s10948_s1 + $0xf4] ss:$8 sps:$4 sm:$0xff]   ;;  %s11024_s24 = smov (!%p382_p10, %s6677_s24), 63  ;;  %v8391_v15 = vld [vmem:[%s10948_s1 + $0x90] ss:$8 sps:$4 sm:$0xff]   ;;  %vm8699_vm1 = vmmov 0  }
  0x1c   : > { %v8392_v16 = vld [vmem:[%s10948_s1 + $0xf0] ss:$8 sps:$4 sm:$0xff]   ;;  %v8393_v17 = vld [vmem:[%s10948_s1 + $0xa4] ss:$8 sps:$4 sm:$0xff]   ;;  %s6678_s16 = sshll.u32 %s11024_s24, 3  ;;  %vm6366_vm2 = vcmask 1043456  }
  0x1d   : > { %621 = vmatpush1.bf16.msra.mxu1 %v8379_v7  ;;  %1284 = vmatpush1.bf16.msra.mxu0 %v8380_v8  ;;  %v8395_v18 = vld [vmem:[%s10948_s1 + $0x104] ss:$8 sps:$4 sm:$0xff]   ;;  %v8397_v19 = vld [vmem:[%s10948_s1 + $0xa0] ss:$8 sps:$4 sm:$0xff]   ;;  %v8399_v21 = vld [vmem:[%s10948_s1 + $0xb4] ss:$8 sps:$4 sm:$0xff]   ;;  %s8878_s14 = scalar_lea.vmem %s10947_s0, %s6678_s16 }
  0x1e   : > { %622 = vmatprep.subr.bf16.mxu1 %v8381_v9  ;;  %1285 = vmatprep.subr.bf16.mxu0 %v8383_v10  ;;  %v8398_v20 = vld [vmem:[%s10948_s1 + $0x100] ss:$8 sps:$4 sm:$0xff]   ;;  %v8401_v22 = vld [vmem:[%s10948_s1 + $0x114] ss:$8 sps:$4 sm:$0xff]   ;;  %v8403_v23 = vld [vmem:[%s10948_s1 + $0xb0] ss:$8 sps:$4 sm:$0xff]  }
  0x1f   : > { %v8404_v24 = vld [vmem:[%s10948_s1 + $0x110] ss:$8 sps:$4 sm:$0xff]   ;;  %v448_v25 = vld [vmem:[%s8878_s14 + $0x1] sm:$0xff]  ;;  %v8410_v33 = vld [vmem:[%s10948_s1 + $0x134] ss:$8 sps:$4 sm:$0xff]   ;;  %vm6360_vm3 = vcmask 1040384  }
  0x20   : > { %v449_v26 = vld [vmem:[%s8878_s14 + $0x9] sm:$0xff]  ;;  %v450_v34 = vld [vmem:[%s8878_s14 + $0x11] sm:$0xff]  ;;  %v451_v35 = vld [vmem:[%s8878_s14 + $0x19] sm:$0xff]  ;;  %vm6362_vm4 = vcmask 1041408   ;;  %vm6364_vm5 = vcmask 1042432   ;;  %vm6368_vm6 = vcmask 1044480  }
  0x21   : > { %623 = vmatpush1.bf16.msra.mxu1 %v8385_v11  ;;  %1286 = vmatpush1.bf16.msra.mxu0 %v8386_v12  ;;  %v1112_v27 = vld [vmem:[%s8878_s14 + $0x2] sm:$0xff]  ;;  %v1113_v28 = vld [vmem:[%s8878_s14 + $0xa] sm:$0xff]  ;;  %v480_v30 = vpack.c.bf16 %v449_v26, %v448_v25  ;;  %v1114_v36 = vld [vmem:[%s8878_s14 + $0x12] sm:$0xff]  ;;  %v481_v40 = vpack.c.bf16 %v451_v35, %v450_v34  ;;  %vm6370_vm7 = vcmask 1045504   ;;  %vm6372_vm8 = vcmask 1046528   ;;  %s378_s25 = sand.u32 1, %s8687_s18  }
  0x22   : > { %624 = vmatprep.subr.bf16.mxu1 %v8387_v13  ;;  %1287 = vmatprep.subr.bf16.mxu0 %v8389_v14  ;;  %v8407_v29 = vld [vmem:[%s10948_s1 + $0x124] ss:$8 sps:$4 sm:$0xff]   ;;  %v1144_v31 = vpack.c.bf16 %v1113_v28, %v1112_v27  ;;  %v8405_v32 = vld [vmem:[%s10948_s1 + $0x120] ss:$8 sps:$4 sm:$0xff]   ;;  %v8408_v38 = vld [vmem:[%s10948_s1 + $0x130] ss:$8 sps:$4 sm:$0xff]  }
  0x23   : > { %v1115_v37 = vld [vmem:[%s8878_s14 + $0x1a] sm:$0xff]  ;;  %v8413_v39 = vld [vmem:[%s10948_s1 + $0x144] ss:$8 sps:$4 sm:$0xff]   ;;  %v454_v54 = vld [vmem:[%s8878_s14 + $0x31] sm:$0xff]  ;;  %vm6451_vm9 = vcmask 982016   ;;  %vm6551_vm10 = vcmask 687104  }
  0x24   : > { %v1145_v41 = vpack.c.bf16 %v1115_v37, %v1114_v36  ;;  %v8411_v42 = vld [vmem:[%s10948_s1 + $0x140] ss:$8 sps:$4 sm:$0xff]   ;;  %v8416_v43 = vld [vmem:[%s10948_s1 + $0x154] ss:$8 sps:$4 sm:$0xff]   ;;  %v8414_v48 = vld [vmem:[%s10948_s1 + $0x150] ss:$8 sps:$4 sm:$0xff]  }
  0x25   : > { %625 = vmatpush1.bf16.msra.mxu1 %v8391_v15  ;;  %1288 = vmatpush1.bf16.msra.mxu0 %v8392_v16  ;;  %v452_v44 = vld [vmem:[%s8878_s14 + $0x21] sm:$0xff]  ;;  %v453_v45 = vld [vmem:[%s8878_s14 + $0x29] sm:$0xff]  ;;  %v455_v55 = vld [vmem:[%s8878_s14 + $0x39] sm:$0xff]  ;;  %s6676_s29 = sshll.u32 %s378_s25, 3  ;;  %s7137_s16 = sshll.u32 %s8782_s21, 7 }
  0x26   : > { %626 = vmatprep.subr.bf16.mxu1 %v8393_v17  ;;  %1289 = vmatprep.subr.bf16.mxu0 %v8395_v18  ;;  %v1116_v46 = vld [vmem:[%s8878_s14 + $0x22] sm:$0xff]  ;;  %v1117_v47 = vld [vmem:[%s8878_s14 + $0x2a] sm:$0xff]  ;;  %v482_v50 = vpack.c.bf16 %v453_v45, %v452_v44  ;;  %v1118_v57 = vld [vmem:[%s8878_s14 + $0x32] sm:$0xff]  ;;  %v483_v63 = vpack.c.bf16 %v455_v55, %v454_v54  ;;  %s380_s12 = scalar_lea.vmem [#allocation4], %s6676_s29  ;;  %s10905_s15 = scalar_lea.hbm %s10958_s11, %s7137_s16 }
  0x27   : > { %v8419_v49 = vld [vmem:[%s10948_s1 + $0x164] ss:$8 sps:$4 sm:$0xff]   ;;  %v1146_v51 = vpack.c.bf16 %v1117_v47, %v1116_v46  ;;  %v8417_v52 = vld [vmem:[%s10948_s1 + $0x160] ss:$8 sps:$4 sm:$0xff]   ;;  %v8425_v58 = vld [vmem:[%s10948_s1 + $0x174] ss:$8 sps:$4 sm:$0xff]  }
  0x28   : > { %v8422_v53 = vld [vmem:[%s10948_s1 + $0x4] ss:$8 sps:$4 sm:$0xff]   ;;  %v8420_v56 = vld [vmem:[%s10948_s1] ss:$8 sps:$4 sm:$0xff]   ;;  %v8423_v60 = vld [vmem:[%s10948_s1 + $0x170] ss:$8 sps:$4 sm:$0xff]  }
  0x29   : > { %627 = vmatpush1.bf16.msra.mxu1 %v8397_v19  ;;  %1290 = vmatpush1.bf16.msra.mxu0 %v8398_v20  ;;  %v1119_v59 = vld [vmem:[%s8878_s14 + $0x3a] sm:$0xff]  ;;  %v8431_v1 = vld [vmem:[%s10948_s1 + $0x24] ss:$8 sps:$4 sm:$0xff]   ;;  %v458_v15 = vld [vmem:[%s8878_s14 + $0x51] sm:$0xff]  ;;  %s6613_s26 = sshll.u32 %s380_s12, 4  ;;  %s8700_s22 = smov [#allocation4]   ;;  %s10907_s26 = int_to_ptr.vmem [resolvable:$true] %s6613_s26 }
  0x2a   : > { %628 = vmatprep.subr.bf16.mxu1 %v8399_v21  ;;  %1291 = vmatprep.subr.bf16.mxu0 %v8401_v22  ;;  %v8428_v61 = vld [vmem:[%s10948_s1 + $0x14] ss:$8 sps:$4 sm:$0xff]   ;;  %v8426_v62 = vld [vmem:[%s10948_s1 + $0x10] ss:$8 sps:$4 sm:$0xff]   ;;  %v1147_v0 = vpack.c.bf16 %v1119_v59, %v1118_v57  ;;  %v456_v3 = vld [vmem:[%s8878_s14 + $0x41] sm:$0xff]  ;;  %s8633_s21 = scalar_lea.vmem %s10907_s26, 128 }
  0x2b   : > { %v8429_v4 = vld [vmem:[%s10948_s1 + $0x20] ss:$8 sps:$4 sm:$0xff]   ;;  %v8434_v7 = vld [vmem:[%s10948_s1 + $0x34] ss:$8 sps:$4 sm:$0xff]   ;;  %v8432_v9 = vld [vmem:[%s10948_s1 + $0x30] ss:$8 sps:$4 sm:$0xff]   ;;  %p8634_p11 = scmp.ne.s32.totalorder %s10907_s26, %s8633_s21 }
  0x2c   : > { %v457_v5 = vld [vmem:[%s8878_s14 + $0x49] sm:$0xff]  ;;  %v8440_v16 = vld [vmem:[%s10948_s1 + $0x54] ss:$8 sps:$4 sm:$0xff]   ;;  %v464_v35 = vld [vmem:[%s8878_s14 + $0x81] sm:$0xff]  ;;  %s8637_s29 = sshll.u32 %s8700_s22, 4  ;;  %s8638_s29 = int_to_ptr.vmem [resolvable:$false] %s8637_s29 }
  0x2d   : > { %629 = vmatpush1.bf16.msra.mxu1 %v8403_v23  ;;  %1292 = vmatpush1.bf16.msra.mxu0 %v8404_v24  ;;  %v1120_v6 = vld [vmem:[%s8878_s14 + $0x42] sm:$0xff]  ;;  %v1121_v8 = vld [vmem:[%s8878_s14 + $0x4a] sm:$0xff]  ;;  %v484_v10 = vpack.c.bf16 %v457_v5, %v456_v3  ;;  %v459_v17 = vld [vmem:[%s8878_s14 + $0x59] sm:$0xff]  ;;  %p8635_p12 = pnand %p8634_p11, %p8799_p5  ;;  %s8639_s30 = scalar_lea.vmem %s8638_s29, 256 }
  0x2e   : > { %1707 = vmatprep.subr.bf16.mxu0 %v8407_v29  ;;  %919 = vmatprep.subr.bf16.mxu1 %v8422_v53  ;;  %v1148_v11 = vpack.c.bf16 %v1121_v8, %v1120_v6  ;;  %v8443_v12 = vld [vmem:[%s10948_s1 + $0x184] ss:$8 sps:$4 sm:$0xff]   ;;  %v8435_v14 = vld [vmem:[%s10948_s1 + $0x40] ss:$8 sps:$4 sm:$0xff]   ;;  %v1122_v18 = vld [vmem:[%s8878_s14 + $0x52] sm:$0xff]  ;;  %v485_v21 = vpack.c.bf16 %v459_v17, %v458_v15  ;;  %p8640_p0 = scmp.lt.s32.totalorder %s10907_s26, %s8638_s29  ;;  %p8641_p1 = scmp.lt.s32.totalorder %s8639_s30, %s8633_s21 }
  0x2f   : > { %v8437_v13 = vld [vmem:[%s10948_s1 + $0x44] ss:$8 sps:$4 sm:$0xff]   ;;  %v1123_v19 = vld [vmem:[%s8878_s14 + $0x5a] sm:$0xff]  ;;  %v462_v29 = vld [vmem:[%s8878_s14 + $0x71] sm:$0xff]  ;;  %p8636_p13 = pneg %p8635_p12 }
  0x30   : > { %6703 = vmatmul.mubr.msk.bf16.vlgmr.msra.gmra.mrb[0].mxu1 %vm569_vm0, %v480_v30  ;;  %6771 = vmatmul.mubr.msk.bf16.vlgmr.msra.gmra.mrb[0].mxu0 %vm569_vm0, %v1144_v31  ;;  %v8438_v20 = vld [vmem:[%s10948_s1 + $0x50] ss:$8 sps:$4 sm:$0xff]   ;;  %v1149_v22 = vpack.c.bf16 %v1123_v19, %v1122_v18  ;;  %v460_v23 = vld [vmem:[%s8878_s14 + $0x61] sm:$0xff]  ;;  %p8642_p2 = por %p8641_p1, %p8640_p0 }
  0x31   : > { %1708 = vmatpush1.bf16.msra.mxu0 %v8405_v32  ;;  %660 = vmatprep.mubr.bf16.mxu1 %v10960_v2  ;;  %v461_v24 = vld [vmem:[%s8878_s14 + $0x69] sm:$0xff]  ;;  %v463_v30 = vld [vmem:[%s8878_s14 + $0x79] sm:$0xff]  ;;  %v468_v47 = vld [vmem:[%s8878_s14 + $0xa1] sm:$0xff] }
  0x32   : > { %1323 = vmatprep.mubr.bf16.mxu0 %v10960_v2  ;;  %1709 = vmatprep.subr.bf16.mxu0 %v8410_v33  ;;  %v1124_v25 = vld [vmem:[%s8878_s14 + $0x62] sm:$0xff]  ;;  %v1125_v26 = vld [vmem:[%s8878_s14 + $0x6a] sm:$0xff]  ;;  %v486_v27 = vpack.c.bf16 %v461_v24, %v460_v23  ;;  %v1126_v31 = vld [vmem:[%s8878_s14 + $0x72] sm:$0xff]  ;;  %v487_v33 = vpack.c.bf16 %v463_v30, %v462_v29  ;;  %p8643_p3 = pnand %p8642_p2, %p8636_p13 }
  0x33   : > { %920 = vmatpush1.bf16.msra.mxu1 %v8420_v56  ;;  %v1150_v28 = vpack.c.bf16 %v1125_v26, %v1124_v25  ;;  %v1127_v32 = vld [vmem:[%s8878_s14 + $0x7a] sm:$0xff]  ;;  %v465_v36 = vld [vmem:[%s8878_s14 + $0x89] sm:$0xff]  ;;  %v470_v53 = vld [vmem:[%s8878_s14 + $0xb1] sm:$0xff] }
  0x34   : > { %921 = vmatprep.subr.bf16.mxu1 %v8428_v61  ;;  %v1151_v34 = vpack.c.bf16 %v1127_v32, %v1126_v31  ;;  %v1128_v37 = vld [vmem:[%s8878_s14 + $0x82] sm:$0xff]  ;;  %v1131_v44 = vld [vmem:[%s8878_s14 + $0x9a] sm:$0xff]  ;;  %v1134_v55 = vld [vmem:[%s8878_s14 + $0xb2] sm:$0xff] }
  0x35   : > { %1710 = vmatpush1.bf16.msra.mxu0 %v8408_v38  ;;  %v1129_v38 = vld [vmem:[%s8878_s14 + $0x8a] sm:$0xff]  ;;  %v471_v54 = vld [vmem:[%s8878_s14 + $0xb9] sm:$0xff]  ;;  %v472_v59 = vld [vmem:[%s8878_s14 + $0xc1] sm:$0xff] }
  0x36   : > { %1711 = vmatprep.subr.bf16.mxu0 %v8413_v39  ;;  %v488_v39 = vpack.c.bf16 %v465_v36, %v464_v35  ;;  %v1135_v56 = vld [vmem:[%s8878_s14 + $0xba] sm:$0xff]  ;;  %v491_v57 = vpack.c.bf16 %v471_v54, %v470_v53  ;;  %v1136_v61 = vld [vmem:[%s8878_s14 + $0xc2] sm:$0xff]  ;;  %v1539_v23 = vld [vmem:[%s8878_s14 + $0xb] sm:$0xff] }
  0x37   : > { %922 = vmatpush1.bf16.msra.mxu1 %v8426_v62  ;;  %v1137_v62 = vld [vmem:[%s8878_s14 + $0xca] sm:$0xff]  ;;  %v475_v3 = vld [vmem:[%s8878_s14 + $0xd9] sm:$0xff]  ;;  %v476_v8 = vld [vmem:[%s8878_s14 + $0xe1] sm:$0xff] }
  0x38   : > { %6704 = vmatmul.mubr.msk.bf16.gmra.mrb[4].mxu1 %vm569_vm0, %v481_v40  ;;  %6772 = vmatmul.mubr.msk.bf16.gmra.mrb[4].mxu0 %vm569_vm0, %v1145_v41  ;;  %v1152_v40 = vpack.c.bf16 %v1129_v38, %v1128_v37  ;;  %v466_v41 = vld [vmem:[%s8878_s14 + $0x91] sm:$0xff]  ;;  %v1139_v5 = vld [vmem:[%s8878_s14 + $0xda] sm:$0xff] }
  0x39   : > { %670 = vmatprep.mubr.bf16.mxu1 %v10960_v2  ;;  %1333 = vmatprep.mubr.bf16.mxu0 %v10960_v2  ;;  %v479_v15 = vld [vmem:[%s8878_s14 + $0xf9] sm:$0xf]  ;;  %v8441_v26 = vld [vmem:[%s10948_s1 + $0x180] ss:$8 sps:$4 sm:$0xff]  }
  0x3a   : > { %1712 = vmatpush1.bf16.msra.mxu0 %v8411_v42  ;;  %923 = vmatprep.subr.bf16.mxu1 %v8431_v1  ;;  %v467_v42 = vld [vmem:[%s8878_s14 + $0x99] sm:$0xff]  ;;  %v474_v1 = vld [vmem:[%s8878_s14 + $0xd1] sm:$0xff] }
  0x3b   : > { %1713 = vmatprep.subr.bf16.mxu0 %v8416_v43  ;;  %924 = vmatpush1.bf16.msra.mxu1 %v8429_v4  ;;  %v1130_v43 = vld [vmem:[%s8878_s14 + $0x92] sm:$0xff]  ;;  %v489_v45 = vpack.c.bf16 %v467_v42, %v466_v41  ;;  %v493_v6 = vpack.c.bf16 %v475_v3, %v474_v1  ;;  %v1143_v17 = vld [vmem:[%s8878_s14 + $0xfa] sm:$0xf]  ;;  %v8447_v36 = vld [vmem:[%s10948_s1 + $0x1a0] ss:$8 sps:$4 sm:$0xff]  }
  0x3c   : > { %925 = vmatprep.subr.bf16.mxu1 %v8434_v7  ;;  %v1153_v46 = vpack.c.bf16 %v1131_v44, %v1130_v43  ;;  %v1138_v4 = vld [vmem:[%s8878_s14 + $0xd2] sm:$0xff]  ;;  %v1541_v31 = vld [vmem:[%s8878_s14 + $0x1b] sm:$0xff]  ;;  %v8455_v43 = vld [vmem:[%s10948_s1 + $0x1c4] ss:$8 sps:$4 sm:$0xff]  }
  0x3d   : > { %v1157_v7 = vpack.c.bf16 %v1139_v5, %v1138_v4  ;;  %v391_v29 = vld [vmem:[%s8878_s14 + $0x18] sm:$0xff]  ;;  %v392_v38 = vld [vmem:[%s8878_s14 + $0x20] sm:$0xff]  ;;  %v1543_v41 = vld [vmem:[%s8878_s14 + $0x2b] sm:$0xff] }
  0x3e   : > { %1714 = vmatpush1.bf16.msra.mxu0 %v8414_v48  ;;  %v469_v48 = vld [vmem:[%s8878_s14 + $0xa9] sm:$0xff]  ;;  %v1540_v30 = vld [vmem:[%s8878_s14 + $0x13] sm:$0xff]  ;;  %v400_v4 = vld [vmem:[%s8878_s14 + $0x60] sm:$0xff] }
  0x3f   : > { %1715 = vmatprep.subr.bf16.mxu0 %v8419_v49  ;;  %926 = vmatpush1.bf16.msra.mxu1 %v8432_v9  ;;  %v1132_v49 = vld [vmem:[%s8878_s14 + $0xa2] sm:$0xff]  ;;  %v8444_v32 = vld [vmem:[%s10948_s1 + $0x190] ss:$8 sps:$4 sm:$0xff]   ;;  %v1571_v35 = vpack.c.bf16 %v1541_v31, %v1540_v30  ;;  %v8452_v37 = vld [vmem:[%s10948_s1 + $0x1b4] ss:$8 sps:$4 sm:$0xff]  }
  0x40   : > { %6705 = vmatmul.mubr.msk.bf16.gmra.mrb[8].mxu1 %vm569_vm0, %v482_v50  ;;  %6773 = vmatmul.mubr.msk.bf16.gmra.mrb[8].mxu0 %vm569_vm0, %v1146_v51  ;;  %v1133_v50 = vld [vmem:[%s8878_s14 + $0xaa] sm:$0xff]  ;;  %v490_v51 = vpack.c.bf16 %v469_v48, %v468_v47  ;;  %v8458_v47 = vld [vmem:[%s10948_s1 + $0x1d4] ss:$8 sps:$4 sm:$0xff]  }
  0x41   : > { %680 = vmatprep.mubr.bf16.mxu1 %v10960_v2  ;;  %1343 = vmatprep.mubr.bf16.mxu0 %v10960_v2  ;;  %v477_v9 = vld [vmem:[%s8878_s14 + $0xe9] sm:$0xff] }
  0x42   : > { %1716 = vmatpush1.bf16.msra.mxu0 %v8417_v52  ;;  %927 = vmatprep.subr.bf16.mxu1 %v8437_v13  ;;  %v1154_v52 = vpack.c.bf16 %v1133_v50, %v1132_v49  ;;  %v8450_v42 = vld [vmem:[%s10948_s1 + $0x1b0] ss:$8 sps:$4 sm:$0xff]   ;;  %v401_v5 = vld [vmem:[%s8878_s14 + $0x68] sm:$0xff] }
  0x43   : > { %1717 = vmatprep.subr.bf16.mxu0 %v8425_v58  ;;  %928 = vmatpush1.bf16.msra.mxu1 %v8435_v14  ;;  %v1155_v58 = vpack.c.bf16 %v1135_v56, %v1134_v55  ;;  %v478_v14 = vld [vmem:[%s8878_s14 + $0xf1] sm:$0xff]  ;;  %v396_v55 = vld [vmem:[%s8878_s14 + $0x40] sm:$0xff]  ;;  %v397_v56 = vld [vmem:[%s8878_s14 + $0x48] sm:$0xff] }
  0x44   : > { %929 = vmatprep.subr.bf16.mxu1 %v8440_v16  ;;  %v1142_v16 = vld [vmem:[%s8878_s14 + $0xf2] sm:$0xff]  ;;  %v495_v18 = vpack.c.bf16 %v479_v15, %v478_v14  ;;  %v1558_v30 = vld [vmem:[%s8878_s14 + $0xa3] sm:$0xff] }
  0x45   : > { %v1159_v19 = vpack.c.bf16 %v1143_v17, %v1142_v16  ;;  %v394_v48 = vld [vmem:[%s8878_s14 + $0x30] sm:$0xff]  ;;  %v395_v49 = vld [vmem:[%s8878_s14 + $0x38] sm:$0xff]  ;;  %v404_v16 = vld [vmem:[%s8878_s14 + $0x80] sm:$0xff] }
  0x46   : > { %1718 = vmatpush1.bf16.msra.mxu0 %v8423_v60  ;;  %v473_v60 = vld [vmem:[%s8878_s14 + $0xc9] sm:$0xff]  ;;  %v1544_v50 = vld [vmem:[%s8878_s14 + $0x33] sm:$0xff]  ;;  %v423_v53 = vpack.c.bf16 %v395_v49, %v394_v48  ;;  %v1565_v49 = vld [vmem:[%s8878_s14 + $0xdb] sm:$0xff] }
  0x47   : > { %2133 = vmatprep.subr.bf16.mxu0 %v8443_v12  ;;  %930 = vmatpush1.bf16.msra.mxu1 %v8438_v20  ;;  %v494_v12 = vpack.c.bf16 %v477_v9, %v476_v8  ;;  %v388_v20 = vld [vmem:[%s8878_s14] sm:$0xff]  ;;  %v426_v8 = vpack.c.bf16 %v401_v5, %v400_v4  ;;  %v405_v17 = vld [vmem:[%s8878_s14 + $0x88] sm:$0xff]  ;;  %v1564_v48 = vld [vmem:[%s8878_s14 + $0xd3] sm:$0xff] }
  0x48   : > { %6706 = vmatmul.mubr.msk.bf16.gmra.mrb[12].mxu1 %vm569_vm0, %v483_v63  ;;  %6774 = vmatmul.mubr.msk.bf16.gmra.mrb[12].mxu0 %vm569_vm0, %v1147_v0  ;;  %v492_v63 = vpack.c.bf16 %v473_v60, %v472_v59  ;;  %v1156_v0 = vpack.c.bf16 %v1137_v62, %v1136_v61  ;;  %v424_v59 = vpack.c.bf16 %v397_v56, %v396_v55  ;;  %v398_v61 = vld [vmem:[%s8878_s14 + $0x50] sm:$0xff]  ;;  %v399_v62 = vld [vmem:[%s8878_s14 + $0x58] sm:$0xff] }
  0x49   : > { %690 = vmatprep.mubr.bf16.mxu1 %v10960_v2  ;;  %1353 = vmatprep.mubr.bf16.mxu0 %v10960_v2  ;;  %v425_v1 = vpack.c.bf16 %v399_v62, %v398_v61  ;;  %v1559_v31 = vld [vmem:[%s8878_s14 + $0xab] sm:$0xff]  ;;  %v419_v61 = vld [vmem:[%s8878_s14 + $0xf8] sm:$0xf] }
  0x4a   : > { %v1567_v55 = vld [vmem:[%s8878_s14 + $0xeb] sm:$0xff]  ;;  %v1568_v62 = vld [vmem:[%s8878_s14 + $0xf3] sm:$0xff] }
  0x4b   : > { %v1965_v4 = vld [vmem:[%s8878_s14 + $0xc] sm:$0xff] }
  0x50   : > { %6707 = vmatmul.mubr.msk.bf16.gmra.mrb[16].mxu1 %vm569_vm0, %v484_v10  ;;  %6775 = vmatmul.mubr.msk.bf16.gmra.mrb[16].mxu0 %vm569_vm0, %v1148_v11  ;;  %v1140_v10 = vld [vmem:[%s8878_s14 + $0xe2] sm:$0xff]  ;;  %v1141_v11 = vld [vmem:[%s8878_s14 + $0xea] sm:$0xff] }
  0x51   : > { %700 = vmatprep.mubr.bf16.mxu1 %v10960_v2  ;;  %1363 = vmatprep.mubr.bf16.mxu0 %v10960_v2  ;;  %v1158_v13 = vpack.c.bf16 %v1141_v11, %v1140_v10  ;;  %v402_v10 = vld [vmem:[%s8878_s14 + $0x70] sm:$0xff]  ;;  %v403_v11 = vld [vmem:[%s8878_s14 + $0x78] sm:$0xff] }
  0x52   : > { %v427_v14 = vpack.c.bf16 %v403_v11, %v402_v10  ;;  %v1968_v11 = vld [vmem:[%s8878_s14 + $0x24] sm:$0xff] }
  0x58   : > { %6708 = vmatmul.mubr.msk.bf16.gmra.mrb[20].mxu1 %vm569_vm0, %v485_v21  ;;  %6776 = vmatmul.mubr.msk.bf16.gmra.mrb[20].mxu0 %vm569_vm0, %v1149_v22  ;;  %v389_v21 = vld [vmem:[%s8878_s14 + $0x8] sm:$0xff] }
  0x59   : > { %710 = vmatprep.mubr.bf16.mxu1 %v10960_v2  ;;  %1373 = vmatprep.mubr.bf16.mxu0 %v10960_v2  ;;  %v1538_v22 = vld [vmem:[%s8878_s14 + $0x3] sm:$0xff]  ;;  %v420_v24 = vpack.c.bf16 %v389_v21, %v388_v20  ;;  %v428_v20 = vpack.c.bf16 %v405_v17, %v404_v16  ;;  %v1970_v16 = vld [vmem:[%s8878_s14 + $0x34] sm:$0xff] }
  0x5a   : > { %v1570_v25 = vpack.c.bf16 %v1539_v23, %v1538_v22  ;;  %v406_v22 = vld [vmem:[%s8878_s14 + $0x90] sm:$0xff]  ;;  %v407_v23 = vld [vmem:[%s8878_s14 + $0x98] sm:$0xff] }
  0x5b   : > { %v1971_v17 = vld [vmem:[%s8878_s14 + $0x3c] sm:$0xff] }
  0x60   : > { %6709 = vmatmul.mubr.msk.bf16.gmra.mrb[24].mxu1 %vm569_vm0, %v486_v27  ;;  %6777 = vmatmul.mubr.msk.bf16.gmra.mrb[24].mxu0 %vm569_vm0, %v1150_v28  ;;  %v8446_v27 = vld [vmem:[%s10948_s1 + $0x194] ss:$8 sps:$4 sm:$0xff]  }
  0x61   : > { %720 = vmatprep.mubr.bf16.mxu1 %v10960_v2  ;;  %1383 = vmatprep.mubr.bf16.mxu0 %v10960_v2  ;;  %v390_v28 = vld [vmem:[%s8878_s14 + $0x10] sm:$0xff] }
  0x68   : > { %6710 = vmatmul.mubr.msk.bf16.gmra.mrb[28].mxu1 %vm569_vm0, %v487_v33  ;;  %6778 = vmatmul.mubr.msk.bf16.gmra.mrb[28].mxu0 %vm569_vm0, %v1151_v34  ;;  %v8449_v33 = vld [vmem:[%s10948_s1 + $0x1a4] ss:$8 sps:$4 sm:$0xff]   ;;  %v421_v34 = vpack.c.bf16 %v391_v29, %v390_v28 }
  0x69   : > { %730 = vmatprep.mubr.bf16.mxu1 %v10960_v2  ;;  %1393 = vmatprep.mubr.bf16.mxu0 %v10960_v2  ;;  %v408_v28 = vld [vmem:[%s8878_s14 + $0xa0] sm:$0xff]  ;;  %v409_v29 = vld [vmem:[%s8878_s14 + $0xa8] sm:$0xff] }
  0x70   : > { %6711 = vmatmul.mubr.msk.bf16.gmra.mrb[32].mxu1 %vm569_vm0, %v488_v39  ;;  %6779 = vmatmul.mubr.msk.bf16.gmra.mrb[32].mxu0 %vm569_vm0, %v1152_v40  ;;  %v393_v39 = vld [vmem:[%s8878_s14 + $0x28] sm:$0xff] }
  0x71   : > { %740 = vmatprep.mubr.bf16.mxu1 %v10960_v2  ;;  %1403 = vmatprep.mubr.bf16.mxu0 %v10960_v2  ;;  %v1542_v40 = vld [vmem:[%s8878_s14 + $0x23] sm:$0xff]  ;;  %v422_v44 = vpack.c.bf16 %v393_v39, %v392_v38 }
  0x78   : > { %6712 = vmatmul.mubr.msk.bf16.gmra.mrb[36].mxu1 %vm569_vm0, %v489_v45  ;;  %6780 = vmatmul.mubr.msk.bf16.gmra.mrb[36].mxu0 %vm569_vm0, %v1153_v46  ;;  %v1572_v45 = vpack.c.bf16 %v1543_v41, %v1542_v40  ;;  %v8453_v46 = vld [vmem:[%s10948_s1 + $0x1c0] ss:$8 sps:$4 sm:$0xff]  }
  0x79   : > { %750 = vmatprep.mubr.bf16.mxu1 %v10960_v2  ;;  %1413 = vmatprep.mubr.bf16.mxu0 %v10960_v2  ;;  %v412_v40 = vld [vmem:[%s8878_s14 + $0xc0] sm:$0xff]  ;;  %v413_v41 = vld [vmem:[%s8878_s14 + $0xc8] sm:$0xff] }
  0x80   : > { %6713 = vmatmul.mubr.msk.bf16.gmra.mrb[40].mxu1 %vm569_vm0, %v490_v51  ;;  %6781 = vmatmul.mubr.msk.bf16.gmra.mrb[40].mxu0 %vm569_vm0, %v1154_v52  ;;  %v1545_v51 = vld [vmem:[%s8878_s14 + $0x3b] sm:$0xff] }
  0x81   : > { %760 = vmatprep.mubr.bf16.mxu1 %v10960_v2  ;;  %1423 = vmatprep.mubr.bf16.mxu0 %v10960_v2  ;;  %v8456_v52 = vld [vmem:[%s10948_s1 + $0x1d0] ss:$8 sps:$4 sm:$0xff]   ;;  %v1573_v54 = vpack.c.bf16 %v1545_v51, %v1544_v50  ;;  %v1583_v51 = vpack.c.bf16 %v1565_v49, %v1564_v48  ;;  %v1987_v49 = vld [vmem:[%s8878_s14 + $0xbc] sm:$0xff] }
  0x82   : > { %v1986_v48 = vld [vmem:[%s8878_s14 + $0xb4] sm:$0xff] }
  0x88   : > { %6714 = vmatmul.mubr.msk.bf16.gmra.mrb[44].mxu1 %vm569_vm0, %v491_v57  ;;  %6782 = vmatmul.mubr.msk.bf16.gmra.mrb[44].mxu0 %vm569_vm0, %v1155_v58  ;;  %v1546_v57 = vld [vmem:[%s8878_s14 + $0x43] sm:$0xff]  ;;  %v1547_v58 = vld [vmem:[%s8878_s14 + $0x4b] sm:$0xff] }
  0x89   : > { %770 = vmatprep.mubr.bf16.mxu1 %v10960_v2  ;;  %1433 = vmatprep.mubr.bf16.mxu0 %v10960_v2  ;;  %v1574_v60 = vpack.c.bf16 %v1547_v58, %v1546_v57  ;;  %v418_v58 = vld [vmem:[%s8878_s14 + $0xf0] sm:$0xff] }
  0x90   : > { %6715 = vmatmul.mubr.msk.bf16.gmra.mrb[48].mxu1 %vm569_vm0, %v492_v63  ;;  %6783 = vmatmul.mubr.msk.bf16.gmra.mrb[48].mxu0 %vm569_vm0, %v1156_v0  ;;  %v1548_v63 = vld [vmem:[%s8878_s14 + $0x53] sm:$0xff]  ;;  %v1549_v0 = vld [vmem:[%s8878_s14 + $0x5b] sm:$0xff] }
  0x91   : > { %780 = vmatprep.mubr.bf16.mxu1 %v10960_v2  ;;  %1443 = vmatprep.mubr.bf16.mxu0 %v10960_v2  ;;  %v1575_v3 = vpack.c.bf16 %v1549_v0, %v1548_v63  ;;  %v1569_v63 = vld [vmem:[%s8878_s14 + $0xfb] sm:$0xf]  ;;  %v435_v0 = vpack.c.bf16 %v419_v61, %v418_v58 }
  0x98   : > { %6716 = vmatmul.mubr.msk.bf16.gmra.mrb[52].mxu1 %vm569_vm0, %v493_v6  ;;  %6784 = vmatmul.mubr.msk.bf16.gmra.mrb[52].mxu0 %vm569_vm0, %v1157_v7  ;;  %v1550_v6 = vld [vmem:[%s8878_s14 + $0x63] sm:$0xff]  ;;  %v1551_v7 = vld [vmem:[%s8878_s14 + $0x6b] sm:$0xff] }
  0x99   : > { %790 = vmatprep.mubr.bf16.mxu1 %v10960_v2  ;;  %1453 = vmatprep.mubr.bf16.mxu0 %v10960_v2  ;;  %v1576_v9 = vpack.c.bf16 %v1551_v7, %v1550_v6  ;;  %v8462_v6 = vld [vmem:[%s10950_s3 + $0x90] ss:$8 sps:$4 sm:$0xff]   ;;  %v8464_v7 = vld [vmem:[%s10950_s3 + $0x94] ss:$8 sps:$4 sm:$0xff]  }
  0xa0   : > { %6717 = vmatmul.mubr.msk.bf16.gmra.mrb[56].mxu1 %vm569_vm0, %v494_v12  ;;  %6785 = vmatmul.mubr.msk.bf16.gmra.mrb[56].mxu0 %vm569_vm0, %v1158_v13  ;;  %v1552_v12 = vld [vmem:[%s8878_s14 + $0x73] sm:$0xff]  ;;  %v1553_v13 = vld [vmem:[%s8878_s14 + $0x7b] sm:$0xff] }
  0xa1   : > { %800 = vmatprep.mubr.bf16.mxu1 %v10960_v2  ;;  %1463 = vmatprep.mubr.bf16.mxu0 %v10960_v2  ;;  %v1577_v15 = vpack.c.bf16 %v1553_v13, %v1552_v12  ;;  %v1969_v12 = vld [vmem:[%s8878_s14 + $0x2c] sm:$0xff] }
  0xa2   : > { %v1998_v13 = vpack.c.bf16 %v1969_v12, %v1968_v11 }
  0xa8   : > { %6718 = vmatmul.mubr.msk.bf16.gmra.mrb[60].mxu1 %vm569_vm0, %v495_v18  ;;  %6786 = vmatmul.mubr.msk.bf16.gmra.mrb[60].mxu0 %vm569_vm0, %v1159_v19  ;;  %v1554_v18 = vld [vmem:[%s8878_s14 + $0x83] sm:$0xff]  ;;  %v1555_v19 = vld [vmem:[%s8878_s14 + $0x8b] sm:$0xff] }
  0xa9   : > { %951 = vmatprep.mubr.bf16.mxu1 %v10960_v2  ;;  %1739 = vmatprep.mubr.bf16.mxu0 %v10960_v2  ;;  %v1578_v21 = vpack.c.bf16 %v1555_v19, %v1554_v18  ;;  %v1999_v18 = vpack.c.bf16 %v1971_v17, %v1970_v16  ;;  %v1972_v19 = vld [vmem:[%s8878_s14 + $0x44] sm:$0xff]  ;;  %v1995_v16 = vld [vmem:[%s8878_s14 + $0xfc] sm:$0xf] }
  0xb0   : > { %6731 = vmatmul.mubr.msk.bf16.vlgmr.msra.gmra.mrb[0].mxu1 %vm569_vm0, %v420_v24  ;;  %6811 = vmatmul.mubr.msk.bf16.vlgmr.msra.gmra.mrb[0].mxu0 %vm569_vm0, %v1570_v25  ;;  %v1556_v24 = vld [vmem:[%s8878_s14 + $0x93] sm:$0xff]  ;;  %v1557_v25 = vld [vmem:[%s8878_s14 + $0x9b] sm:$0xff] }
  0xb1   : > { %2134 = vmatpush1.bf16.msra.mxu0 %v8441_v26  ;;  %961 = vmatprep.mubr.bf16.mxu1 %v10960_v2  ;;  %v429_v26 = vpack.c.bf16 %v407_v23, %v406_v22  ;;  %v8468_v22 = vld [vmem:[%s10950_s3 + $0xb0] ss:$8 sps:$4 sm:$0xff]   ;;  %v8470_v23 = vld [vmem:[%s10950_s3 + $0xb4] ss:$8 sps:$4 sm:$0xff]  }
  0xb2   : > { %1749 = vmatprep.mubr.bf16.mxu0 %v10960_v2  ;;  %2135 = vmatprep.subr.bf16.mxu0 %v8446_v27  ;;  %v1579_v27 = vpack.c.bf16 %v1557_v25, %v1556_v24  ;;  %v1974_v24 = vld [vmem:[%s8878_s14 + $0x54] sm:$0xff]  ;;  %v1975_v25 = vld [vmem:[%s8878_s14 + $0x5c] sm:$0xff] }
  0xb5   : > { %2136 = vmatpush1.bf16.msra.mxu0 %v8444_v32  ;;  %v430_v32 = vpack.c.bf16 %v409_v29, %v408_v28  ;;  %v1977_v28 = vld [vmem:[%s8878_s14 + $0x6c] sm:$0xff] }
  0xb6   : > { %2137 = vmatprep.subr.bf16.mxu0 %v8449_v33  ;;  %v1580_v33 = vpack.c.bf16 %v1559_v31, %v1558_v30  ;;  %v8471_v30 = vld [vmem:[%s10950_s3 + $0xc0] ss:$8 sps:$4 sm:$0xff]   ;;  %v8473_v31 = vld [vmem:[%s10950_s3 + $0xc4] ss:$8 sps:$4 sm:$0xff]  }
  0xb8   : > { %6732 = vmatmul.mubr.msk.bf16.gmra.mrb[4].mxu1 %vm569_vm0, %v421_v34  ;;  %6812 = vmatmul.mubr.msk.bf16.gmra.mrb[4].mxu0 %vm569_vm0, %v1571_v35  ;;  %v410_v34 = vld [vmem:[%s8878_s14 + $0xb0] sm:$0xff]  ;;  %v411_v35 = vld [vmem:[%s8878_s14 + $0xb8] sm:$0xff] }
  0xb9   : > { %971 = vmatprep.mubr.bf16.mxu1 %v10960_v2  ;;  %1759 = vmatprep.mubr.bf16.mxu0 %v10960_v2  ;;  %v431_v38 = vpack.c.bf16 %v411_v35, %v410_v34  ;;  %v1980_v35 = vld [vmem:[%s8878_s14 + $0x84] sm:$0xff] }
  0xba   : > { %2138 = vmatpush1.bf16.msra.mxu0 %v8447_v36  ;;  %v1560_v36 = vld [vmem:[%s8878_s14 + $0xb3] sm:$0xff] }
  0xbb   : > { %2139 = vmatprep.subr.bf16.mxu0 %v8452_v37  ;;  %v1561_v37 = vld [vmem:[%s8878_s14 + $0xbb] sm:$0xff] }
  0xbc   : > { %v1581_v39 = vpack.c.bf16 %v1561_v37, %v1560_v36  ;;  %v1981_v36 = vld [vmem:[%s8878_s14 + $0x8c] sm:$0xff] }
  0xbd   : > { %v2004_v37 = vpack.c.bf16 %v1981_v36, %v1980_v35 }
  0xbe   : > { %2140 = vmatpush1.bf16.msra.mxu0 %v8450_v42  ;;  %v1562_v42 = vld [vmem:[%s8878_s14 + $0xc3] sm:$0xff] }
  0xbf   : > { %2141 = vmatprep.subr.bf16.mxu0 %v8455_v43  ;;  %v1563_v43 = vld [vmem:[%s8878_s14 + $0xcb] sm:$0xff] }
  0xc0   : > { %6733 = vmatmul.mubr.msk.bf16.gmra.mrb[8].mxu1 %vm569_vm0, %v422_v44  ;;  %6813 = vmatmul.mubr.msk.bf16.gmra.mrb[8].mxu0 %vm569_vm0, %v1572_v45  ;;  %v432_v44 = vpack.c.bf16 %v413_v41, %v412_v40  ;;  %v1582_v45 = vpack.c.bf16 %v1563_v43, %v1562_v42  ;;  %v1982_v40 = vld [vmem:[%s8878_s14 + $0x94] sm:$0xff]  ;;  %v1983_v41 = vld [vmem:[%s8878_s14 + $0x9c] sm:$0xff]  ;;  %v1984_v43 = vld [vmem:[%s8878_s14 + $0xa4] sm:$0xff] }
  0xc1   : > { %981 = vmatprep.mubr.bf16.mxu1 %v10960_v2  ;;  %1769 = vmatprep.mubr.bf16.mxu0 %v10960_v2  ;;  %v2005_v42 = vpack.c.bf16 %v1983_v41, %v1982_v40 }
  0xc2   : > { %2142 = vmatpush1.bf16.msra.mxu0 %v8453_v46  ;;  %v414_v46 = vld [vmem:[%s8878_s14 + $0xd0] sm:$0xff] }
  0xc3   : > { %2143 = vmatprep.subr.bf16.mxu0 %v8458_v47  ;;  %v415_v47 = vld [vmem:[%s8878_s14 + $0xd8] sm:$0xff] }
  0xc4   : > { %v433_v50 = vpack.c.bf16 %v415_v47, %v414_v46  ;;  %v8477_v46 = vld [vmem:[%s10950_s3 + $0xe0] ss:$8 sps:$4 sm:$0xff]   ;;  %v8479_v47 = vld [vmem:[%s10950_s3 + $0xe4] ss:$8 sps:$4 sm:$0xff]  }
  0xc6   : > { %2144 = vmatpush1.bf16.msra.mxu0 %v8456_v52  ;;  %v416_v52 = vld [vmem:[%s8878_s14 + $0xe0] sm:$0xff] }
  0xc8   : > { %6734 = vmatmul.mubr.msk.bf16.gmra.mrb[12].mxu1 %vm569_vm0, %v423_v53  ;;  %6814 = vmatmul.mubr.msk.bf16.gmra.mrb[12].mxu0 %vm569_vm0, %v1573_v54  ;;  %v417_v53 = vld [vmem:[%s8878_s14 + $0xe8] sm:$0xff] }
  0xc9   : > { %991 = vmatprep.mubr.bf16.mxu1 %v10960_v2  ;;  %1779 = vmatprep.mubr.bf16.mxu0 %v10960_v2  ;;  %v1566_v54 = vld [vmem:[%s8878_s14 + $0xe3] sm:$0xff]  ;;  %v434_v56 = vpack.c.bf16 %v417_v53, %v416_v52  ;;  %v2007_v52 = vpack.c.bf16 %v1987_v49, %v1986_v48 }
  0xca   : > { %v1584_v57 = vpack.c.bf16 %v1567_v55, %v1566_v54  ;;  %v1988_v55 = vld [vmem:[%s8878_s14 + $0xc4] sm:$0xff] }
  0xd0   : > { %6735 = vmatmul.mubr.msk.bf16.gmra.mrb[16].mxu1 %vm569_vm0, %v424_v59  ;;  %6815 = vmatmul.mubr.msk.bf16.gmra.mrb[16].mxu0 %vm569_vm0, %v1574_v60  ;;  %v8459_v59 = vld [vmem:[%s10950_s3 + $0x80] ss:$8 sps:$4 sm:$0xff]   ;;  %v8461_v60 = vld [vmem:[%s10950_s3 + $0x84] ss:$8 sps:$4 sm:$0xff]  }
  0xd1   : > { %1001 = vmatprep.mubr.bf16.mxu1 %v10960_v2  ;;  %1789 = vmatprep.mubr.bf16.mxu0 %v10960_v2 }
  0xd2   : > { %2856 = vmatprep.subr.bf16.mxu1 %v8461_v60 }
  0xd3   : > { %2857 = vmatpush1.bf16.msra.mxu1 %v8459_v59 }
  0xd4   : > { %2858 = vmatprep.subr.bf16.mxu1 %v8464_v7  ;;  %v8482_v7 = vld [vmem:[%s10950_s3 + $0xf4] ss:$8 sps:$4 sm:$0xff]  }
  0xd7   : > { %2859 = vmatpush1.bf16.msra.mxu1 %v8462_v6  ;;  %v8480_v6 = vld [vmem:[%s10950_s3 + $0xf0] ss:$8 sps:$4 sm:$0xff]  }
  0xd8   : > { %6736 = vmatmul.mubr.msk.bf16.gmra.mrb[20].mxu1 %vm569_vm0, %v425_v1  ;;  %6816 = vmatmul.mubr.msk.bf16.gmra.mrb[20].mxu0 %vm569_vm0, %v1575_v3  ;;  %v1585_v1 = vpack.c.bf16 %v1569_v63, %v1568_v62  ;;  %v1964_v3 = vld [vmem:[%s8878_s14 + $0x4] sm:$0xff]  ;;  %v1990_v62 = vld [vmem:[%s8878_s14 + $0xd4] sm:$0xff]  ;;  %v1991_v63 = vld [vmem:[%s8878_s14 + $0xdc] sm:$0xff] }
  0xd9   : > { %1011 = vmatprep.mubr.bf16.mxu1 %v10960_v2  ;;  %1799 = vmatprep.mubr.bf16.mxu0 %v10960_v2  ;;  %v1996_v5 = vpack.c.bf16 %v1965_v4, %v1964_v3  ;;  %v2009_v3 = vpack.c.bf16 %v1991_v63, %v1990_v62 }
  0xe0   : > { %6737 = vmatmul.mubr.msk.bf16.gmra.mrb[24].mxu1 %vm569_vm0, %v426_v8  ;;  %6817 = vmatmul.mubr.msk.bf16.gmra.mrb[24].mxu0 %vm569_vm0, %v1576_v9  ;;  %v1966_v8 = vld [vmem:[%s8878_s14 + $0x14] sm:$0xff]  ;;  %v1967_v9 = vld [vmem:[%s8878_s14 + $0x1c] sm:$0xff] }
  0xe1   : > { %1021 = vmatprep.mubr.bf16.mxu1 %v10960_v2  ;;  %1809 = vmatprep.mubr.bf16.mxu0 %v10960_v2  ;;  %v1997_v10 = vpack.c.bf16 %v1967_v9, %v1966_v8  ;;  %v1992_v8 = vld [vmem:[%s8878_s14 + $0xe4] sm:$0xff]  ;;  %v1993_v9 = vld [vmem:[%s8878_s14 + $0xec] sm:$0xff] }
  0xe2   : > { %v2010_v12 = vpack.c.bf16 %v1993_v9, %v1992_v8 }
  0xe8   : > { %6738 = vmatmul.mubr.msk.bf16.gmra.mrb[28].mxu1 %vm569_vm0, %v427_v14  ;;  %6818 = vmatmul.mubr.msk.bf16.gmra.mrb[28].mxu0 %vm569_vm0, %v1577_v15  ;;  %v8465_v14 = vld [vmem:[%s10950_s3 + $0xa0] ss:$8 sps:$4 sm:$0xff]   ;;  %v8467_v15 = vld [vmem:[%s10950_s3 + $0xa4] ss:$8 sps:$4 sm:$0xff]  }
  0xe9   : > { %1031 = vmatprep.mubr.bf16.mxu1 %v10960_v2  ;;  %1819 = vmatprep.mubr.bf16.mxu0 %v10960_v2 }
  0xea   : > { %2860 = vmatprep.subr.bf16.mxu1 %v8467_v15  ;;  %v1994_v15 = vld [vmem:[%s8878_s14 + $0xf4] sm:$0xff] }
  0xeb   : > { %2861 = vmatpush1.bf16.msra.mxu1 %v8465_v14 }
  0xec   : > { %2862 = vmatprep.subr.bf16.mxu1 %v8470_v23 }
  0xef   : > { %2863 = vmatpush1.bf16.msra.mxu1 %v8468_v22  ;;  %v8485_v22 = vld [vmem:[%s10950_s3 + $0x4] ss:$8 sps:$4 sm:$0xff]  }
  0xf0   : > { %6739 = vmatmul.mubr.msk.bf16.gmra.mrb[32].mxu1 %vm569_vm0, %v428_v20  ;;  %6819 = vmatmul.mubr.msk.bf16.gmra.mrb[32].mxu0 %vm569_vm0, %v1578_v21  ;;  %v1973_v20 = vld [vmem:[%s8878_s14 + $0x4c] sm:$0xff] }
  0xf1   : > { %1041 = vmatprep.mubr.bf16.mxu1 %v10960_v2  ;;  %1829 = vmatprep.mubr.bf16.mxu0 %v10960_v2  ;;  %v2000_v21 = vpack.c.bf16 %v1973_v20, %v1972_v19  ;;  %v2011_v19 = vpack.c.bf16 %v1995_v16, %v1994_v15 }
  0xf2   : > { %2864 = vmatprep.subr.bf16.mxu1 %v8473_v31 }
  0xf3   : > { %2865 = vmatpush1.bf16.msra.mxu1 %v8471_v30 }
  0xf8   : > { %6740 = vmatmul.mubr.msk.bf16.gmra.mrb[36].mxu1 %vm569_vm0, %v429_v26  ;;  %6820 = vmatmul.mubr.msk.bf16.gmra.mrb[36].mxu0 %vm569_vm0, %v1579_v27  ;;  %v2001_v26 = vpack.c.bf16 %v1975_v25, %v1974_v24  ;;  %v1976_v27 = vld [vmem:[%s8878_s14 + $0x64] sm:$0xff] }
  0xf9   : > { %1051 = vmatprep.mubr.bf16.mxu1 %v10960_v2  ;;  %1839 = vmatprep.mubr.bf16.mxu0 %v10960_v2  ;;  %v2002_v29 = vpack.c.bf16 %v1977_v28, %v1976_v27 }
 0x100   : > { %6741 = vmatmul.mubr.msk.bf16.gmra.mrb[40].mxu1 %vm569_vm0, %v430_v32  ;;  %6821 = vmatmul.mubr.msk.bf16.gmra.mrb[40].mxu0 %vm569_vm0, %v1580_v33  ;;  %v1978_v32 = vld [vmem:[%s8878_s14 + $0x74] sm:$0xff]  ;;  %v1979_v33 = vld [vmem:[%s8878_s14 + $0x7c] sm:$0xff] }
 0x101   : > { %1061 = vmatprep.mubr.bf16.mxu1 %v10960_v2  ;;  %1849 = vmatprep.mubr.bf16.mxu0 %v10960_v2  ;;  %v2003_v34 = vpack.c.bf16 %v1979_v33, %v1978_v32 }
 0x108   : > { %6742 = vmatmul.mubr.msk.bf16.gmra.mrb[44].mxu1 %vm569_vm0, %v431_v38  ;;  %6822 = vmatmul.mubr.msk.bf16.gmra.mrb[44].mxu0 %vm569_vm0, %v1581_v39  ;;  %v8474_v38 = vld [vmem:[%s10950_s3 + $0xd0] ss:$8 sps:$4 sm:$0xff]   ;;  %v8476_v39 = vld [vmem:[%s10950_s3 + $0xd4] ss:$8 sps:$4 sm:$0xff]  }
 0x109   : > { %1071 = vmatprep.mubr.bf16.mxu1 %v10960_v2  ;;  %1859 = vmatprep.mubr.bf16.mxu0 %v10960_v2 }
 0x10a   : > { %2866 = vmatprep.subr.bf16.mxu1 %v8476_v39 }
 0x10b   : > { %2867 = vmatpush1.bf16.msra.mxu1 %v8474_v38 }
 0x10c   : > { %2868 = vmatprep.subr.bf16.mxu1 %v8479_v47 }
 0x10f   : > { %2869 = vmatpush1.bf16.msra.mxu1 %v8477_v46 }
 0x110   : > { %6743 = vmatmul.mubr.msk.bf16.gmra.mrb[48].mxu1 %vm569_vm0, %v432_v44  ;;  %6823 = vmatmul.mubr.msk.bf16.gmra.mrb[48].mxu0 %vm569_vm0, %v1582_v45  ;;  %v1985_v44 = vld [vmem:[%s8878_s14 + $0xac] sm:$0xff] }
 0x111   : > { %1081 = vmatprep.mubr.bf16.mxu1 %v10960_v2  ;;  %1869 = vmatprep.mubr.bf16.mxu0 %v10960_v2  ;;  %v2006_v45 = vpack.c.bf16 %v1985_v44, %v1984_v43 }
 0x112   : > { %2870 = vmatprep.subr.bf16.mxu1 %v8482_v7 }
 0x113   : > { %2871 = vmatpush1.bf16.msra.mxu1 %v8480_v6 }
 0x114   : > { %3127 = vmatprep.subr.bf16.mxu1 %v8485_v22 }
 0x118   : > { %6744 = vmatmul.mubr.msk.bf16.gmra.mrb[52].mxu1 %vm569_vm0, %v433_v50  ;;  %6824 = vmatmul.mubr.msk.bf16.gmra.mrb[52].mxu0 %vm569_vm0, %v1583_v51 }
 0x119   : > { %1091 = vmatprep.mubr.bf16.mxu1 %v10960_v2  ;;  %1879 = vmatprep.mubr.bf16.mxu0 %v10960_v2 }
 0x120   : > { %6745 = vmatmul.mubr.msk.bf16.gmra.mrb[56].mxu1 %vm569_vm0, %v434_v56  ;;  %6825 = vmatmul.mubr.msk.bf16.gmra.mrb[56].mxu0 %vm569_vm0, %v1584_v57  ;;  %v1989_v56 = vld [vmem:[%s8878_s14 + $0xcc] sm:$0xff]  ;;  %s6600_s14 = scalar_lea.sflag [#allocation5], %s378_s25 }
 0x121   : > { %1101 = vmatprep.mubr.bf16.mxu1 %v10960_v2  ;;  %1889 = vmatprep.mubr.bf16.mxu0 %v10960_v2  ;;  %v2008_v59 = vpack.c.bf16 %v1989_v56, %v1988_v55 }
 0x128   : > { %6746 = vmatmul.mubr.msk.bf16.gmra.mrb[60].mxu1 %vm569_vm0, %v435_v0  ;;  %6826 = vmatmul.mubr.msk.bf16.gmra.mrb[60].mxu0 %vm569_vm0, %v1585_v1 }
 0x129   : > { %2165 = vmatprep.mubr.bf16.mxu0 %v10960_v2  ;;  %2888 = vmatprep.mubr.bf16.mxu1 %v10960_v2 }
 0x130   : > { %6851 = vmatmul.mubr.msk.bf16.vlgmr.msra.gmra.mrb[0].mxu0 %vm569_vm0, %v1996_v5 }
 0x131   : > { %2175 = vmatprep.mubr.bf16.mxu0 %v10960_v2 }
 0x138   : > { %6852 = vmatmul.mubr.msk.bf16.gmra.mrb[4].mxu0 %vm569_vm0, %v1997_v10 }
 0x139   : > { %2185 = vmatprep.mubr.bf16.mxu0 %v10960_v2 }
 0x140   : > { %6853 = vmatmul.mubr.msk.bf16.gmra.mrb[8].mxu0 %vm569_vm0, %v1998_v13 }
 0x141   : > { %2195 = vmatprep.mubr.bf16.mxu0 %v10960_v2 }
 0x148   : > { %6854 = vmatmul.mubr.msk.bf16.gmra.mrb[12].mxu0 %vm569_vm0, %v1999_v18 }
 0x149   : > { %2205 = vmatprep.mubr.bf16.mxu0 %v10960_v2 }
 0x150   : > { %6855 = vmatmul.mubr.msk.bf16.gmra.mrb[16].mxu0 %vm569_vm0, %v2000_v21 }
 0x151   : > { %2215 = vmatprep.mubr.bf16.mxu0 %v10960_v2 }
 0x158   : > { %6856 = vmatmul.mubr.msk.bf16.gmra.mrb[20].mxu0 %vm569_vm0, %v2001_v26 }
 0x159   : > { %2225 = vmatprep.mubr.bf16.mxu0 %v10960_v2 }
 0x160   : > { %6857 = vmatmul.mubr.msk.bf16.gmra.mrb[24].mxu0 %vm569_vm0, %v2002_v29 }
 0x161   : > { %2235 = vmatprep.mubr.bf16.mxu0 %v10960_v2 }
 0x168   : > { %6858 = vmatmul.mubr.msk.bf16.gmra.mrb[28].mxu0 %vm569_vm0, %v2003_v34 }
 0x169   : > { %2245 = vmatprep.mubr.bf16.mxu0 %v10960_v2 }
 0x170   : > { %6859 = vmatmul.mubr.msk.bf16.gmra.mrb[32].mxu0 %vm569_vm0, %v2004_v37 }
 0x171   : > { %2255 = vmatprep.mubr.bf16.mxu0 %v10960_v2 }
 0x178   : > { %6860 = vmatmul.mubr.msk.bf16.gmra.mrb[36].mxu0 %vm569_vm0, %v2005_v42 }
 0x179   : > { %2265 = vmatprep.mubr.bf16.mxu0 %v10960_v2 }
 0x180   : > { %6861 = vmatmul.mubr.msk.bf16.gmra.mrb[40].mxu0 %vm569_vm0, %v2006_v45 }
 0x181   : > { %2275 = vmatprep.mubr.bf16.mxu0 %v10960_v2 }
 0x183   : > { %v9341_v50 = vpop.f32.mrb[0].mxu1 }
 0x184   : > { %v9343_v51 = vpop.f32.mrb[1].mxu1 }
 0x185   : > { %v9345_v53 = vpop.f32.mrb[2].mxu1 }
 0x186   : > { %v9347_v54 = vpop.f32.mrb[3].mxu1 }
 0x188   : > { %6862 = vmatmul.mubr.msk.bf16.gmra.mrb[44].mxu0 %vm569_vm0, %v2007_v52 }
 0x189   : > { %2285 = vmatprep.mubr.bf16.mxu0 %v10960_v2 }
 0x18b   : > { %v9353_v57 = vpop.f32.mrb[4].mxu1 }
 0x18c   : > { %v9355_v58 = vpop.f32.mrb[5].mxu1 }
 0x18d   : > { %v9357_v60 = vpop.f32.mrb[6].mxu1 }
 0x18e   : > { %v9359_v61 = vpop.f32.mrb[7].mxu1 }
 0x190   : > { %6863 = vmatmul.mubr.msk.bf16.gmra.mrb[48].mxu0 %vm569_vm0, %v2008_v59 }
 0x191   : > { %2295 = vmatprep.mubr.bf16.mxu0 %v10960_v2 }
 0x193   : > { %v9365_v0 = vpop.f32.mrb[8].mxu1 }
 0x194   : > { %v9367_v1 = vpop.f32.mrb[9].mxu1 }
 0x195   : > { %v9369_v4 = vpop.f32.mrb[10].mxu1 }
 0x196   : > { %v9371_v5 = vpop.f32.mrb[11].mxu1 }
 0x198   : > { %6864 = vmatmul.mubr.msk.bf16.gmra.mrb[52].mxu0 %vm569_vm0, %v2009_v3 }
 0x199   : > { %2305 = vmatprep.mubr.bf16.mxu0 %v10960_v2 }
 0x19b   : > { %v9383_v10 = vpop.f32.mrb[12].mxu1 }
 0x19c   : > { %v9385_v11 = vpop.f32.mrb[13].mxu1 }
 0x19d   : > { %v9387_v13 = vpop.f32.mrb[14].mxu1 }
 0x19e   : > { %v9389_v14 = vpop.f32.mrb[15].mxu1 }
 0x1a0   : > { %6865 = vmatmul.mubr.msk.bf16.gmra.mrb[56].mxu0 %vm569_vm0, %v2010_v12 }
 0x1a1   : > { %2315 = vmatprep.mubr.bf16.mxu0 %v10960_v2 }
 0x1a3   : > { %v9395_v17 = vpop.f32.mrb[16].mxu1 }
 0x1a4   : > { %v9397_v18 = vpop.f32.mrb[17].mxu1 }
 0x1a5   : > { %v9399_v20 = vpop.f32.mrb[18].mxu1 }
 0x1a6   : > { %v9401_v21 = vpop.f32.mrb[19].mxu1 }
 0x1a8   : > { %6866 = vmatmul.mubr.msk.bf16.gmra.mrb[60].mxu0 %vm569_vm0, %v2011_v19 }
 0x1ab   : > { %v9407_v23 = vpop.f32.mrb[20].mxu1 }
 0x1ac   : > { %v9409_v24 = vpop.f32.mrb[21].mxu1 }
 0x1ad   : > { %v9411_v25 = vpop.f32.mrb[22].mxu1 }
 0x1ae   : > { %v9413_v26 = vpop.f32.mrb[23].mxu1 }
 0x1b3   : > { %v9415_v27 = vpop.f32.mrb[24].mxu1 }
 0x1b4   : > { %v9417_v28 = vpop.f32.mrb[25].mxu1 }
 0x1b5   : > { %v9419_v29 = vpop.f32.mrb[26].mxu1 }
 0x1b6   : > { %v9421_v30 = vpop.f32.mrb[27].mxu1 }
 0x1bb   : > { %v9423_v31 = vpop.f32.mrb[28].mxu1 }
 0x1bc   : > { %v9425_v32 = vpop.f32.mrb[29].mxu1 }
 0x1bd   : > { %v9427_v33 = vpop.f32.mrb[30].mxu1 }
 0x1be   : > { %v9429_v34 = vpop.f32.mrb[31].mxu1 }
 0x1c3   : > { %v9431_v35 = vpop.f32.mrb[32].mxu1 }
 0x1c4   : > { %v9433_v36 = vpop.f32.mrb[33].mxu1 }
 0x1c5   : > { %v9435_v37 = vpop.f32.mrb[34].mxu1 }
 0x1c6   : > { %v9437_v38 = vpop.f32.mrb[35].mxu1 }
 0x1cb   : > { %v9439_v39 = vpop.f32.mrb[36].mxu1 }
 0x1cc   : > { %v9441_v40 = vpop.f32.mrb[37].mxu1 }
 0x1cd   : > { %v9443_v41 = vpop.f32.mrb[38].mxu1 }
 0x1ce   : > { %v9445_v42 = vpop.f32.mrb[39].mxu1 }
 0x1d3   : > { %v9447_v43 = vpop.f32.mrb[40].mxu1 }
 0x1d4   : > { %v9449_v44 = vpop.f32.mrb[41].mxu1 }
 0x1d5   : > { %v9451_v45 = vpop.f32.mrb[42].mxu1 }
 0x1d6   : > { %v9453_v46 = vpop.f32.mrb[43].mxu1 }
 0x1db   : > { %v9455_v47 = vpop.f32.mrb[44].mxu1 }
 0x1dc   : > { %v9457_v48 = vpop.f32.mrb[45].mxu1 }
 0x1dd   : > { %v9459_v49 = vpop.f32.mrb[46].mxu1 }
 0x1de   : > { %v9461_v52 = vpop.f32.mrb[47].mxu1 }
 0x1e3   : > { %v9463_v55 = vpop.f32.mrb[48].mxu1 }
 0x1e4   : > { %10966 = vst [vmem:[#allocation9_spill] sm:$0xff] %v9463_v55  ;;  %v9465_v56 = vpop.f32.mrb[49].mxu1 }
 0x1e5   : > { %10967 = vst [vmem:[#allocation10_spill] sm:$0xff] %v9465_v56  ;;  %v9467_v59 = vpop.f32.mrb[50].mxu1 }
 0x1e6   : > { %10968 = vst [vmem:[#allocation11_spill] sm:$0xff] %v9467_v59  ;;  %v9469_v62 = vpop.f32.mrb[51].mxu1 }
 0x1e7   : > { %10969 = vst [vmem:[#allocation12_spill] sm:$0xff] %v9469_v62 }
 0x1eb   : > { %v9471_v63 = vpop.f32.mrb[52].mxu1 }
 0x1ec   : > { %10970 = vst [vmem:[#allocation13_spill] sm:$0xff] %v9471_v63  ;;  %v9473_v3 = vpop.f32.mrb[53].mxu1 }
 0x1ed   : > { %10971 = vst [vmem:[#allocation14_spill] sm:$0xff] %v9473_v3  ;;  %v9475_v6 = vpop.f32.mrb[54].mxu1 }
 0x1ee   : > { %10972 = vst [vmem:[#allocation15_spill] sm:$0xff] %v9475_v6  ;;  %v9477_v7 = vpop.f32.mrb[55].mxu1 }
 0x1ef   : > { %10973 = vst [vmem:[#allocation16_spill] sm:$0xff] %v9477_v7 }
 0x1f3   : > { %v9479_v8 = vpop.f32.mrb[56].mxu1 }
 0x1f4   : > { %10974 = vst [vmem:[#allocation17_spill] sm:$0xff] %v9479_v8  ;;  %v9481_v9 = vpop.f32.mrb[57].mxu1 }
 0x1f5   : > { %10975 = vst [vmem:[#allocation18_spill] sm:$0xff] %v9481_v9  ;;  %v9483_v12 = vpop.f32.mrb[58].mxu1 }
 0x1f6   : > { %10976 = vst [vmem:[#allocation19_spill] sm:$0xff] %v9483_v12  ;;  %v9485_v15 = vpop.f32.mrb[59].mxu1  ;;  %v9500_v12 = vld [vmem:[%s10949_s2] ss:$0 sm:$0xff] }
 0x1f7   : > { %10977 = vst [vmem:[#allocation20_spill] sm:$0xff] %v9485_v15 }
 0x1fb   : > { %v9487_v16 = vpop.f32.mrb[60].mxu1 }
 0x1fc   : > { %10978 = vst [vmem:[#allocation21_spill] sm:$0xff] %v9487_v16  ;;  %v9489_v19 = vpop.f32.mrb[61].mxu1 }
 0x1fd   : > { %10979 = vst [vmem:[#allocation22_spill] sm:$0xff] %v9489_v19  ;;  %v9491_v22 = vpop.f32.mrb[62].mxu1 }
 0x1fe   : > { %10980 = vst [vmem:[#allocation23_spill] sm:$0xff] %v9491_v22  ;;  %v9493_v2 = vpop.f32.mrb[63].mxu1 }
 0x1ff   : > { %10981 = vst [vmem:[#allocation24_spill] sm:$0xff] %v9493_v2 }
 0x203   : > { %v2167_v3 = vpop.f32.mrb[0].mxu0 }
 0x204   : > { %v7687_v6 = vadd.f32 %v2167_v3, %v9341_v50  ;;  %v2169_v7 = vpop.f32.mrb[1].mxu0 }
 0x205   : > { %v7688_v8 = vadd.f32 %v2169_v7, %v9343_v51  ;;  %v2171_v63 = vpop.f32.mrb[2].mxu0 }
 0x206   : > { %v7689_v16 = vadd.f32 %v2171_v63, %v9345_v53  ;;  %v2173_v15 = vpop.f32.mrb[3].mxu0 }
 0x207   : > { %v2390_v19 = vmax.f32 %v7687_v6, %v7688_v8  ;;  %v7690_v22 = vadd.f32 %v2173_v15, %v9347_v54 }
 0x209   : > { %v2429_v2 = vadd.f32 %v9500_v12, %v2390_v19  ;;  %v2391_v9 = vmax.f32 %v7689_v16, %v7690_v22 }
 0x20b   : > { %v2461_v62 = vmax.f32 %v2429_v2, 0.0  ;;  %v2430_v50 = vadd.f32 %v9500_v12, %v2391_v9  ;;  %v2177_v3 = vpop.f32.mrb[4].mxu0 }
 0x20c   : > { %v7691_v51 = vadd.f32 %v2177_v3, %v9353_v57  ;;  %v2179_v7 = vpop.f32.mrb[5].mxu0 }
 0x20d   : > { %2493 = vst [vmem:[#allocation2] sm:$0xff] %v2461_v62  ;;  %v2462_v59 = vmax.f32 %v2430_v50, 0.0  ;;  %v7692_v56 = vadd.f32 %v2179_v7, %v9355_v58  ;;  %v2181_v55 = vpop.f32.mrb[6].mxu0 }
 0x20e   : > { %v7693_v53 = vadd.f32 %v2181_v55, %v9357_v60  ;;  %v2183_v63 = vpop.f32.mrb[7].mxu0 }
 0x20f   : > { %2494 = vst [vmem:[#allocation2 + $0x8] sm:$0xff] %v2462_v59  ;;  %v2392_v54 = vmax.f32 %v7691_v51, %v7692_v56  ;;  %v7694_v6 = vadd.f32 %v2183_v63, %v9359_v61 }
 0x211   : > { %v9511_v2 = vadd.f32 %v9500_v12, %v2392_v54  ;;  %v2393_v8 = vmax.f32 %v7693_v53, %v7694_v6 }
 0x213   : > { %v2463_v9 = vmax.f32 %v9511_v2, 0.0  ;;  %v9515_v57 = vadd.f32 %v9500_v12, %v2393_v8  ;;  %v2187_v15 = vpop.f32.mrb[8].mxu0 }
 0x214   : > { %v7695_v58 = vadd.f32 %v2187_v15, %v9365_v0  ;;  %v2189_v16 = vpop.f32.mrb[9].mxu0 }
 0x215   : > { %2495 = vst [vmem:[#allocation2 + $0x10] sm:$0xff] %v2463_v9  ;;  %v2464_v60 = vmax.f32 %v9515_v57, 0.0  ;;  %v7696_v61 = vadd.f32 %v2189_v16, %v9367_v1  ;;  %v2191_v55 = vpop.f32.mrb[10].mxu0 }
 0x216   : > { %v7697_v56 = vadd.f32 %v2191_v55, %v9369_v4  ;;  %v2193_v19 = vpop.f32.mrb[11].mxu0  ;;  %v2650_v51 = vld [vmem:[#allocation2 + $0x2] sm:$0xff] }
 0x217   : > { %2496 = vst [vmem:[#allocation2 + $0x18] sm:$0xff] %v2464_v60  ;;  %v2394_v22 = vmax.f32 %v7695_v58, %v7696_v61  ;;  %v7698_v50 = vadd.f32 %v2193_v19, %v9371_v5  ;;  %v2681_v7 = vld [vmem:[#allocation2 + $0x3] sm:$0xff] }
 0x218   : > { %v2556_v4 = vld [vmem:[#allocation2 + $0x1] sm:$0xff]  ;;  %v2712_v58 = vmax.f32 %v2650_v51, %v2681_v7 }
 0x219   : > { %v9527_v0 = vadd.f32 %v9500_v12, %v2394_v22  ;;  %v2395_v3 = vmax.f32 %v7697_v56, %v7698_v50 }
 0x21b   : > { %v2465_v53 = vmax.f32 %v9527_v0, 0.0  ;;  %v9531_v1 = vadd.f32 %v9500_v12, %v2395_v3  ;;  %v2197_v63 = vpop.f32.mrb[12].mxu0  ;;  %v9544_v3 = vmax.f32 %v2461_v62, %v2556_v4 }
 0x21c   : > { %v7699_v54 = vadd.f32 %v2197_v63, %v9383_v10  ;;  %v2199_v6 = vpop.f32.mrb[13].mxu0  ;;  %v2651_v8 = vld [vmem:[#allocation2 + $0xa] sm:$0xff] }
 0x21d   : > { %v2682_v15 = vld [vmem:[#allocation2 + $0xb] sm:$0xff]  ;;  %2497 = vst [vmem:[#allocation2 + $0x20] sm:$0xff] %v2465_v53  ;;  %v2466_v16 = vmax.f32 %v9531_v1, 0.0  ;;  %v7700_v61 = vadd.f32 %v2199_v6, %v9385_v11  ;;  %v2201_v55 = vpop.f32.mrb[14].mxu0 }
 0x21e   : > { %v2557_v5 = vld [vmem:[#allocation2 + $0x9] sm:$0xff]  ;;  %v2713_v56 = vmax.f32 %v2651_v8, %v2682_v15  ;;  %v7701_v22 = vadd.f32 %v2201_v55, %v9387_v13  ;;  %v2203_v50 = vpop.f32.mrb[15].mxu0  ;;  %v2652_v62 = vld [vmem:[#allocation2 + $0x12] sm:$0xff]  ;;  %v10982_v8 = vmov 0  }
 0x21f   : > { %v9538_v19 = vmax.f32 %v2462_v59, %v2557_v5  ;;  %v8483_v10 = vld [vmem:[%s10950_s3] ss:$8 sps:$4 sm:$0xff]   ;;  %2498 = vst [vmem:[#allocation2 + $0x28] sm:$0xff] %v2466_v16  ;;  %v2396_v51 = vmax.f32 %v7699_v54, %v7700_v61  ;;  %v7702_v7 = vadd.f32 %v2203_v50, %v9389_v14  ;;  %v8488_v59 = vld [vmem:[%s10950_s3 + $0x14] ss:$8 sps:$4 sm:$0xff]  }
 0x220   : > { %v2743_v11 = vpack.c.bf16 %v2713_v56, %v2712_v58  ;;  %v2683_v4 = vld [vmem:[#allocation2 + $0x13] sm:$0xff]  ;;  %v8491_v5 = vld [vmem:[%s10950_s3 + $0x24] ss:$8 sps:$4 sm:$0xff]  }
 0x221   : > { %v9555_v63 = vadd.f32 %v9500_v12, %v2396_v51  ;;  %v2397_v6 = vmax.f32 %v7701_v22, %v7702_v7  ;;  %v8486_v14 = vld [vmem:[%s10950_s3 + $0x10] ss:$8 sps:$4 sm:$0xff]  }
 0x222   : > { %2889 = vmatmul.mubr.bf16.vlgmr.msra.gmra.mrb[64].mxu1 %v2743_v11  ;;  %v2558_v61 = vld [vmem:[#allocation2 + $0x11] sm:$0xff] }
 0x223   : > { %3128 = vmatpush1.bf16.msra.mxu1 %v8483_v10  ;;  %2898 = vmatprep.mubr.bf16.mxu1 %v10982_v8  ;;  %v2467_v54 = vmax.f32 %v9555_v63, 0.0  ;;  %v9563_v15 = vadd.f32 %v9500_v12, %v2397_v6  ;;  %v2207_v58 = vpop.f32.mrb[16].mxu0  ;;  %v2714_v10 = vmax.f32 %v2652_v62, %v2683_v4  ;;  %v8489_v62 = vld [vmem:[%s10950_s3 + $0x20] ss:$8 sps:$4 sm:$0xff]   ;;  %v9583_v4 = vmax.f32 %v2463_v9, %v2558_v61 }
 0x224   : > { %3129 = vmatprep.subr.bf16.mxu1 %v8488_v59  ;;  %v7703_v55 = vadd.f32 %v2207_v58, %v9395_v17  ;;  %v2209_v56 = vpop.f32.mrb[17].mxu0  ;;  %v2653_v22 = vld [vmem:[#allocation2 + $0x1a] sm:$0xff] }
 0x225   : > { %v2684_v50 = vld [vmem:[#allocation2 + $0x1b] sm:$0xff]  ;;  %2499 = vst [vmem:[#allocation2 + $0x30] sm:$0xff] %v2467_v54  ;;  %v2468_v7 = vmax.f32 %v9563_v15, 0.0  ;;  %v7704_v11 = vadd.f32 %v2209_v56, %v9397_v18  ;;  %v2211_v59 = vpop.f32.mrb[18].mxu0 }
 0x226   : > { %v2559_v51 = vld [vmem:[#allocation2 + $0x19] sm:$0xff]  ;;  %v2715_v6 = vmax.f32 %v2653_v22, %v2684_v50  ;;  %v7705_v17 = vadd.f32 %v2211_v59, %v9399_v20  ;;  %v2213_v58 = vpop.f32.mrb[19].mxu0  ;;  %v2654_v9 = vld [vmem:[#allocation2 + $0x22] sm:$0xff] }
 0x227   : > { %v9575_v13 = vmax.f32 %v2464_v60, %v2559_v51  ;;  %3130 = vmatpush1.bf16.msra.mxu1 %v8486_v14  ;;  %2500 = vst [vmem:[#allocation2 + $0x38] sm:$0xff] %v2468_v7  ;;  %v2398_v18 = vmax.f32 %v7703_v55, %v7704_v11  ;;  %v7706_v57 = vadd.f32 %v2213_v58, %v9401_v21  ;;  %v8494_v20 = vld [vmem:[%s10950_s3 + $0x34] ss:$8 sps:$4 sm:$0xff]   ;;  %v2685_v61 = vld [vmem:[#allocation2 + $0x23] sm:$0xff]  ;;  %v8492_v21 = vld [vmem:[%s10950_s3 + $0x30] ss:$8 sps:$4 sm:$0xff]  }
 0x228   : > { %v2744_v60 = vpack.c.bf16 %v2715_v6, %v2714_v10  ;;  %3131 = vmatprep.subr.bf16.mxu1 %v8491_v5  ;;  %v8497_v50 = vld [vmem:[%s10950_s3 + $0x44] ss:$8 sps:$4 sm:$0xff]  }
 0x229   : > { %v2619_v14 = vpack.c.bf16 %v9575_v13, %v9583_v4  ;;  %v9594_v56 = vadd.f32 %v9500_v12, %v2398_v18  ;;  %v2399_v2 = vmax.f32 %v7705_v17, %v7706_v57  ;;  %v2560_v10 = vld [vmem:[#allocation2 + $0x21] sm:$0xff]  ;;  %v2716_v17 = vmax.f32 %v2654_v9, %v2685_v61  ;;  %v8524_v13 = vld [vmem:[%s10950_s3 + $0x154] ss:$8 sps:$4 sm:$0xff]   ;;  %v8522_v4 = vld [vmem:[%s10950_s3 + $0x150] ss:$8 sps:$4 sm:$0xff]  }
 0x22a   : > { %2899 = vmatmul.mubr.bf16.gmra.mrb[68].mxu1 %v2744_v60  ;;  %v8495_v9 = vld [vmem:[%s10950_s3 + $0x40] ss:$8 sps:$4 sm:$0xff]   ;;  %v9622_v61 = vmax.f32 %v2465_v53, %v2560_v10 }
 0x22b   : > { %2908 = vmatprep.mubr.bf16.mxu1 %v10982_v8  ;;  %3132 = vmatpush1.bf16.msra.mxu1 %v8489_v62  ;;  %v2469_v5 = vmax.f32 %v9594_v56, 0.0  ;;  %v9602_v55 = vadd.f32 %v9500_v12, %v2399_v2  ;;  %v2217_v22 = vpop.f32.mrb[20].mxu0 }
 0x22c   : > { %3133 = vmatprep.subr.bf16.mxu1 %v8494_v20  ;;  %v7707_v51 = vadd.f32 %v2217_v22, %v9407_v23  ;;  %v2219_v11 = vpop.f32.mrb[21].mxu0  ;;  %v2655_v59 = vld [vmem:[#allocation2 + $0x2a] sm:$0xff] }
 0x22d   : > { %v2686_v6 = vld [vmem:[#allocation2 + $0x2b] sm:$0xff]  ;;  %2501 = vst [vmem:[#allocation2 + $0x40] sm:$0xff] %v2469_v5  ;;  %v2470_v62 = vmax.f32 %v9602_v55, 0.0  ;;  %v7708_v18 = vadd.f32 %v2219_v11, %v9409_v24  ;;  %v2221_v57 = vpop.f32.mrb[22].mxu0 }
 0x22e   : > { %v2561_v58 = vld [vmem:[#allocation2 + $0x29] sm:$0xff]  ;;  %v2717_v60 = vmax.f32 %v2655_v59, %v2686_v6  ;;  %v7709_v23 = vadd.f32 %v2221_v57, %v9411_v25  ;;  %v2223_v2 = vpop.f32.mrb[23].mxu0  ;;  %v8500_v25 = vld [vmem:[%s10950_s3 + $0x54] ss:$8 sps:$4 sm:$0xff]  }
 0x22f   : > { %v9614_v20 = vmax.f32 %v2466_v16, %v2561_v58  ;;  %3134 = vmatpush1.bf16.msra.mxu1 %v8492_v21  ;;  %2502 = vst [vmem:[#allocation2 + $0x48] sm:$0xff] %v2470_v62  ;;  %v2400_v24 = vmax.f32 %v7707_v51, %v7708_v18  ;;  %v7710_v1 = vadd.f32 %v2223_v2, %v9413_v26  ;;  %v2656_v53 = vld [vmem:[#allocation2 + $0x32] sm:$0xff]  ;;  %v8503_v59 = vld [vmem:[%s10950_s3 + $0x64] ss:$8 sps:$4 sm:$0xff]  }
 0x230   : > { %v2745_v16 = vpack.c.bf16 %v2717_v60, %v2716_v17  ;;  %3135 = vmatprep.subr.bf16.mxu1 %v8497_v50  ;;  %v2687_v10 = vld [vmem:[#allocation2 + $0x33] sm:$0xff] }
 0x231   : > { %v2620_v21 = vpack.c.bf16 %v9614_v20, %v9622_v61  ;;  %v9633_v22 = vadd.f32 %v9500_v12, %v2400_v24  ;;  %v2401_v0 = vmax.f32 %v7709_v23, %v7710_v1  ;;  %v8498_v26 = vld [vmem:[%s10950_s3 + $0x50] ss:$8 sps:$4 sm:$0xff]   ;;  %v2718_v60 = vmax.f32 %v2656_v53, %v2687_v10  ;;  %v8530_v20 = vld [vmem:[%s10950_s3 + $0x174] ss:$8 sps:$4 sm:$0xff]  }
 0x232   : > { %2909 = vmatmul.mubr.bf16.gmra.mrb[72].mxu1 %v2745_v16  ;;  %v2562_v6 = vld [vmem:[#allocation2 + $0x31] sm:$0xff] }
 0x233   : > { %2918 = vmatprep.mubr.bf16.mxu1 %v10982_v8  ;;  %3136 = vmatpush1.bf16.msra.mxu1 %v8495_v9  ;;  %v2471_v50 = vmax.f32 %v9633_v22, 0.0  ;;  %v9641_v51 = vadd.f32 %v9500_v12, %v2401_v0  ;;  %v2227_v11 = vpop.f32.mrb[24].mxu0  ;;  %v8501_v0 = vld [vmem:[%s10950_s3 + $0x60] ss:$8 sps:$4 sm:$0xff]   ;;  %v9661_v53 = vmax.f32 %v2467_v54, %v2562_v6  ;;  %v8528_v61 = vld [vmem:[%s10950_s3 + $0x170] ss:$8 sps:$4 sm:$0xff]  }
 0x234   : > { %3137 = vmatprep.subr.bf16.mxu1 %v8500_v25  ;;  %v7711_v17 = vadd.f32 %v2227_v11, %v9415_v27  ;;  %v2229_v58 = vpop.f32.mrb[25].mxu0  ;;  %v2657_v18 = vld [vmem:[#allocation2 + $0x3a] sm:$0xff] }
 0x235   : > { %v2688_v57 = vld [vmem:[#allocation2 + $0x3b] sm:$0xff]  ;;  %2503 = vst [vmem:[#allocation2 + $0x50] sm:$0xff] %v2471_v50  ;;  %v2472_v2 = vmax.f32 %v9641_v51, 0.0  ;;  %v7712_v9 = vadd.f32 %v2229_v58, %v9417_v28  ;;  %v2231_v24 = vpop.f32.mrb[26].mxu0  ;;  %v8509_v58 = vld [vmem:[%s10950_s3 + $0x104] ss:$8 sps:$4 sm:$0xff]  }
 0x236   : > { %v2563_v23 = vld [vmem:[#allocation2 + $0x39] sm:$0xff]  ;;  %v2719_v1 = vmax.f32 %v2657_v18, %v2688_v57  ;;  %v7713_v27 = vadd.f32 %v2231_v24, %v9419_v29  ;;  %v2233_v25 = vpop.f32.mrb[27].mxu0  ;;  %v2658_v54 = vld [vmem:[#allocation2 + $0x42] sm:$0xff] }
 0x237   : > { %v9653_v16 = vmax.f32 %v2468_v7, %v2563_v23  ;;  %3138 = vmatpush1.bf16.msra.mxu1 %v8498_v26  ;;  %2504 = vst [vmem:[#allocation2 + $0x58] sm:$0xff] %v2472_v2  ;;  %v2402_v28 = vmax.f32 %v7711_v17, %v7712_v9  ;;  %v7714_v15 = vadd.f32 %v2233_v25, %v9421_v30  ;;  %v8506_v29 = vld [vmem:[%s10950_s3 + $0x74] ss:$8 sps:$4 sm:$0xff]   ;;  %v2689_v11 = vld [vmem:[#allocation2 + $0x43] sm:$0xff]  ;;  %v8504_v30 = vld [vmem:[%s10950_s3 + $0x70] ss:$8 sps:$4 sm:$0xff]  }
 0x238   : > { %v2746_v7 = vpack.c.bf16 %v2719_v1, %v2718_v60  ;;  %3139 = vmatprep.subr.bf16.mxu1 %v8503_v59  ;;  %v2564_v18 = vld [vmem:[#allocation2 + $0x41] sm:$0xff]  ;;  %v2720_v24 = vmax.f32 %v2658_v54, %v2689_v11 }
 0x239   : > { %v2621_v10 = vpack.c.bf16 %v9653_v16, %v9661_v53  ;;  %v9672_v26 = vadd.f32 %v9500_v12, %v2402_v28  ;;  %v2403_v63 = vmax.f32 %v7713_v27, %v7714_v15 }
 0x23a   : > { %2919 = vmatmul.mubr.bf16.gmra.mrb[76].mxu1 %v2746_v7 }
 0x23b   : > { %2928 = vmatprep.mubr.bf16.mxu1 %v10982_v8  ;;  %3140 = vmatpush1.bf16.msra.mxu1 %v8501_v0  ;;  %v2473_v59 = vmax.f32 %v9672_v26, 0.0  ;;  %v9680_v6 = vadd.f32 %v9500_v12, %v2403_v63  ;;  %v2237_v17 = vpop.f32.mrb[28].mxu0 }
 0x23c   : > { %3141 = vmatprep.subr.bf16.mxu1 %v8506_v29  ;;  %v7715_v57 = vadd.f32 %v2237_v17, %v9423_v31  ;;  %v2239_v60 = vpop.f32.mrb[29].mxu0  ;;  %v2659_v23 = vld [vmem:[#allocation2 + $0x4a] sm:$0xff]  ;;  %v9697_v29 = vmax.f32 %v2469_v5, %v2564_v18 }
 0x23d   : > { %v2690_v9 = vld [vmem:[#allocation2 + $0x4b] sm:$0xff]  ;;  %2505 = vst [vmem:[#allocation2 + $0x60] sm:$0xff] %v2473_v59  ;;  %v2474_v27 = vmax.f32 %v9680_v6, 0.0  ;;  %v7716_v25 = vadd.f32 %v2239_v60, %v9425_v32  ;;  %v2241_v0 = vpop.f32.mrb[30].mxu0 }
 0x23e   : > { %v2565_v1 = vld [vmem:[#allocation2 + $0x49] sm:$0xff]  ;;  %v2721_v28 = vmax.f32 %v2659_v23, %v2690_v9  ;;  %v7717_v31 = vadd.f32 %v2241_v0, %v9427_v33  ;;  %v2243_v7 = vpop.f32.mrb[31].mxu0  ;;  %v2660_v11 = vld [vmem:[#allocation2 + $0x52] sm:$0xff] }
 0x23f   : > { %v9692_v15 = vmax.f32 %v2470_v62, %v2565_v1  ;;  %3142 = vmatpush1.bf16.msra.mxu1 %v8504_v30  ;;  %2506 = vst [vmem:[#allocation2 + $0x68] sm:$0xff] %v2474_v27  ;;  %v2404_v63 = vmax.f32 %v7715_v57, %v7716_v25  ;;  %v7718_v32 = vadd.f32 %v2243_v7, %v9429_v34  ;;  %v2691_v56 = vld [vmem:[#allocation2 + $0x53] sm:$0xff] }
 0x240   : > { %v2747_v54 = vpack.c.bf16 %v2721_v28, %v2720_v24  ;;  %3524 = vmatprep.subr.bf16.mxu1 %v8509_v58  ;;  %v2566_v17 = vld [vmem:[#allocation2 + $0x51] sm:$0xff]  ;;  %v2722_v23 = vmax.f32 %v2660_v11, %v2691_v56 }
 0x241   : > { %v2622_v55 = vpack.c.bf16 %v9692_v15, %v9697_v29  ;;  %v9705_v62 = vadd.f32 %v9500_v12, %v2404_v63  ;;  %v2405_v33 = vmax.f32 %v7717_v31, %v7718_v32  ;;  %v9724_v7 = vmax.f32 %v2471_v50, %v2566_v17 }
 0x242   : > { %2929 = vmatmul.mubr.bf16.gmra.mrb[80].mxu1 %v2747_v54 }
 0x243   : > { %2938 = vmatprep.mubr.bf16.mxu1 %v10982_v8  ;;  %v2475_v5 = vmax.f32 %v9705_v62, 0.0  ;;  %v9710_v30 = vadd.f32 %v9500_v12, %v2405_v33  ;;  %v2247_v34 = vpop.f32.mrb[32].mxu0 }
 0x244   : > { %v7719_v58 = vadd.f32 %v2247_v34, %v9431_v35  ;;  %v2249_v18 = vpop.f32.mrb[33].mxu0  ;;  %v2661_v57 = vld [vmem:[#allocation2 + $0x5a] sm:$0xff] }
 0x245   : > { %v2692_v60 = vld [vmem:[#allocation2 + $0x5b] sm:$0xff]  ;;  %2507 = vst [vmem:[#allocation2 + $0x70] sm:$0xff] %v2475_v5  ;;  %v2476_v24 = vmax.f32 %v9710_v30, 0.0  ;;  %v7720_v1 = vadd.f32 %v2249_v18, %v9433_v36  ;;  %v2251_v25 = vpop.f32.mrb[34].mxu0 }
 0x246   : > { %v2567_v9 = vld [vmem:[#allocation2 + $0x59] sm:$0xff]  ;;  %v2723_v0 = vmax.f32 %v2661_v57, %v2692_v60  ;;  %v7721_v35 = vadd.f32 %v2251_v25, %v9435_v37  ;;  %v2253_v31 = vpop.f32.mrb[35].mxu0  ;;  %v2662_v37 = vld [vmem:[#allocation2 + $0x62] sm:$0xff] }
 0x247   : > { %v9719_v28 = vmax.f32 %v2472_v2, %v2567_v9  ;;  %2508 = vst [vmem:[#allocation2 + $0x78] sm:$0xff] %v2476_v24  ;;  %v2406_v63 = vmax.f32 %v7719_v58, %v7720_v1  ;;  %v7722_v32 = vadd.f32 %v2253_v31, %v9437_v38  ;;  %v2693_v33 = vld [vmem:[#allocation2 + $0x63] sm:$0xff] }
 0x248   : > { %v2748_v36 = vpack.c.bf16 %v2723_v0, %v2722_v23  ;;  %v2568_v38 = vld [vmem:[#allocation2 + $0x61] sm:$0xff]  ;;  %v2724_v18 = vmax.f32 %v2662_v37, %v2693_v33 }
 0x249   : > { %v2623_v54 = vpack.c.bf16 %v9719_v28, %v9724_v7  ;;  %v9732_v51 = vadd.f32 %v9500_v12, %v2406_v63  ;;  %v2407_v2 = vmax.f32 %v7721_v35, %v7722_v32  ;;  %v9751_v35 = vmax.f32 %v2473_v59, %v2568_v38  ;;  %v3319_v28 = vld [vmem:[#allocation2 + $0xc] sm:$0xff] }
 0x24a   : > { %2939 = vmatmul.mubr.bf16.gmra.mrb[84].mxu1 %v2748_v36  ;;  %v3350_v7 = vld [vmem:[#allocation2 + $0xd] sm:$0xff] }
 0x24b   : > { %2948 = vmatprep.mubr.bf16.mxu1 %v10982_v8  ;;  %v2477_v22 = vmax.f32 %v9732_v51, 0.0  ;;  %v9737_v50 = vadd.f32 %v9500_v12, %v2407_v2  ;;  %v2257_v11 = vpop.f32.mrb[36].mxu0 }
 0x24c   : > { %v7723_v56 = vadd.f32 %v2257_v11, %v9439_v39  ;;  %v2259_v34 = vpop.f32.mrb[37].mxu0  ;;  %v2663_v17 = vld [vmem:[#allocation2 + $0x6a] sm:$0xff] }
 0x24d   : > { %v2694_v58 = vld [vmem:[#allocation2 + $0x6b] sm:$0xff]  ;;  %2509 = vst [vmem:[#allocation2 + $0x80] sm:$0xff] %v2477_v22  ;;  %v2478_v60 = vmax.f32 %v9737_v50, 0.0  ;;  %v7724_v23 = vadd.f32 %v2259_v34, %v9441_v40  ;;  %v2261_v9 = vpop.f32.mrb[38].mxu0 }
 0x24e   : > { %v2569_v57 = vld [vmem:[#allocation2 + $0x69] sm:$0xff]  ;;  %v2725_v1 = vmax.f32 %v2663_v17, %v2694_v58  ;;  %v7725_v39 = vadd.f32 %v2261_v9, %v9443_v41  ;;  %v2263_v0 = vpop.f32.mrb[39].mxu0  ;;  %v2664_v41 = vld [vmem:[#allocation2 + $0x72] sm:$0xff] }
 0x24f   : > { %v9746_v25 = vmax.f32 %v2474_v27, %v2569_v57  ;;  %2510 = vst [vmem:[#allocation2 + $0x88] sm:$0xff] %v2478_v60  ;;  %v2408_v31 = vmax.f32 %v7723_v56, %v7724_v23  ;;  %v7726_v63 = vadd.f32 %v2263_v0, %v9445_v42  ;;  %v2695_v36 = vld [vmem:[#allocation2 + $0x73] sm:$0xff] }
 0x250   : > { %v2749_v40 = vpack.c.bf16 %v2725_v1, %v2724_v18  ;;  %v2570_v42 = vld [vmem:[#allocation2 + $0x71] sm:$0xff]  ;;  %v2726_v56 = vmax.f32 %v2664_v41, %v2695_v36 }
 0x251   : > { %v2624_v32 = vpack.c.bf16 %v9746_v25, %v9751_v35  ;;  %v9759_v6 = vadd.f32 %v9500_v12, %v2408_v31  ;;  %v2409_v27 = vmax.f32 %v7725_v39, %v7726_v63  ;;  %v9778_v1 = vmax.f32 %v2475_v5, %v2570_v42  ;;  %v3349_v25 = vld [vmem:[#allocation2 + $0x5] sm:$0xff] }
 0x252   : > { %2949 = vmatmul.mubr.bf16.gmra.mrb[88].mxu1 %v2749_v40  ;;  %v3381_v35 = vmax.f32 %v3319_v28, %v3350_v7 }
 0x253   : > { %2958 = vmatprep.mubr.bf16.mxu1 %v10982_v8  ;;  %v2479_v26 = vmax.f32 %v9759_v6, 0.0  ;;  %v9764_v59 = vadd.f32 %v9500_v12, %v2409_v27  ;;  %v2267_v2 = vpop.f32.mrb[40].mxu0 }
 0x254   : > { %v7727_v37 = vadd.f32 %v2267_v2, %v9447_v43  ;;  %v2269_v33 = vpop.f32.mrb[41].mxu0  ;;  %v2665_v11 = vld [vmem:[#allocation2 + $0x7a] sm:$0xff] }
 0x255   : > { %v2696_v38 = vld [vmem:[#allocation2 + $0x7b] sm:$0xff]  ;;  %2511 = vst [vmem:[#allocation2 + $0x90] sm:$0xff] %v2479_v26  ;;  %v2480_v17 = vmax.f32 %v9764_v59, 0.0  ;;  %v7728_v58 = vadd.f32 %v2269_v33, %v9449_v44  ;;  %v2271_v18 = vpop.f32.mrb[42].mxu0 }
 0x256   : > { %v2571_v34 = vld [vmem:[#allocation2 + $0x79] sm:$0xff]  ;;  %v2727_v57 = vmax.f32 %v2665_v11, %v2696_v38  ;;  %v7729_v43 = vadd.f32 %v2271_v18, %v9451_v45  ;;  %v2273_v9 = vpop.f32.mrb[43].mxu0  ;;  %v2666_v45 = vld [vmem:[#allocation2 + $0x82] sm:$0xff] }
 0x257   : > { %v9773_v23 = vmax.f32 %v2476_v24, %v2571_v34  ;;  %2512 = vst [vmem:[#allocation2 + $0x98] sm:$0xff] %v2480_v17  ;;  %v2410_v39 = vmax.f32 %v7727_v37, %v7728_v58  ;;  %v7730_v0 = vadd.f32 %v2273_v9, %v9453_v46  ;;  %v2697_v63 = vld [vmem:[#allocation2 + $0x83] sm:$0xff] }
 0x258   : > { %v2750_v44 = vpack.c.bf16 %v2727_v57, %v2726_v56  ;;  %v2572_v46 = vld [vmem:[#allocation2 + $0x81] sm:$0xff]  ;;  %v2728_v42 = vmax.f32 %v2666_v45, %v2697_v63 }
 0x259   : > { %v2625_v31 = vpack.c.bf16 %v9773_v23, %v9778_v1  ;;  %v9786_v30 = vadd.f32 %v9500_v12, %v2410_v39  ;;  %v2411_v24 = vmax.f32 %v7729_v43, %v7730_v0  ;;  %v9805_v18 = vmax.f32 %v2477_v22, %v2572_v46  ;;  %v8531_v23 = vld [vmem:[%s10950_s3 + $0x180] ss:$8 sps:$4 sm:$0xff]  }
 0x25a   : > { %2959 = vmatmul.mubr.bf16.gmra.mrb[92].mxu1 %v2750_v44  ;;  %v10983_v44 = vld [vmem:[#allocation9_spill] sm:$0xff] }
 0x25b   : > { %2968 = vmatprep.mubr.bf16.mxu1 %v10982_v8  ;;  %v2481_v62 = vmax.f32 %v9786_v30, 0.0  ;;  %v9791_v5 = vadd.f32 %v9500_v12, %v2411_v24  ;;  %v2277_v40 = vpop.f32.mrb[44].mxu0 }
 0x25c   : > { %v7731_v27 = vadd.f32 %v2277_v40, %v9455_v47  ;;  %v2279_v41 = vpop.f32.mrb[45].mxu0  ;;  %v2667_v36 = vld [vmem:[#allocation2 + $0x8a] sm:$0xff] }
 0x25d   : > { %v2698_v2 = vld [vmem:[#allocation2 + $0x8b] sm:$0xff]  ;;  %2513 = vst [vmem:[#allocation2 + $0xa0] sm:$0xff] %v2481_v62  ;;  %v2482_v33 = vmax.f32 %v9791_v5, 0.0  ;;  %v7732_v11 = vadd.f32 %v2279_v41, %v9457_v48  ;;  %v2281_v38 = vpop.f32.mrb[46].mxu0 }
 0x25e   : > { %v2573_v37 = vld [vmem:[#allocation2 + $0x89] sm:$0xff]  ;;  %v2729_v56 = vmax.f32 %v2667_v36, %v2698_v2  ;;  %v7733_v47 = vadd.f32 %v2281_v38, %v9459_v49  ;;  %v2283_v58 = vpop.f32.mrb[47].mxu0  ;;  %v2668_v49 = vld [vmem:[#allocation2 + $0x92] sm:$0xff]  ;;  %v10985_v38 = vld [vmem:[#allocation11_spill] sm:$0xff] }
 0x25f   : > { %v9800_v34 = vmax.f32 %v2478_v60, %v2573_v37  ;;  %2514 = vst [vmem:[#allocation2 + $0xa8] sm:$0xff] %v2482_v33  ;;  %v2412_v57 = vmax.f32 %v7731_v27, %v7732_v11  ;;  %v7734_v43 = vadd.f32 %v2283_v58, %v9461_v52  ;;  %v2699_v39 = vld [vmem:[#allocation2 + $0x93] sm:$0xff] }
 0x260   : > { %v2751_v48 = vpack.c.bf16 %v2729_v56, %v2728_v42  ;;  %v2574_v52 = vld [vmem:[#allocation2 + $0x91] sm:$0xff]  ;;  %v2730_v46 = vmax.f32 %v2668_v49, %v2699_v39 }
 0x261   : > { %v2626_v9 = vpack.c.bf16 %v9800_v34, %v9805_v18  ;;  %v9813_v50 = vadd.f32 %v9500_v12, %v2412_v57  ;;  %v2413_v60 = vmax.f32 %v7733_v47, %v7734_v43  ;;  %v10984_v36 = vld [vmem:[#allocation10_spill] sm:$0xff]  ;;  %v9832_v58 = vmax.f32 %v2479_v26, %v2574_v52  ;;  %v10986_v43 = vld [vmem:[#allocation12_spill] sm:$0xff] }
 0x262   : > { %2969 = vmatmul.mubr.bf16.gmra.mrb[96].mxu1 %v2751_v48  ;;  %v3321_v34 = vld [vmem:[#allocation2 + $0x1c] sm:$0xff] }
 0x263   : > { %2978 = vmatprep.mubr.bf16.mxu1 %v10982_v8  ;;  %v2483_v51 = vmax.f32 %v9813_v50, 0.0  ;;  %v9818_v22 = vadd.f32 %v9500_v12, %v2413_v60  ;;  %v2287_v0 = vpop.f32.mrb[48].mxu0  ;;  %v3352_v18 = vld [vmem:[#allocation2 + $0x1d] sm:$0xff] }
 0x264   : > { %v7735_v24 = vadd.f32 %v2287_v0, %v10983_v44  ;;  %v2289_v45 = vpop.f32.mrb[49].mxu0  ;;  %v2669_v63 = vld [vmem:[#allocation2 + $0x9a] sm:$0xff] }
 0x265   : > { %v2700_v40 = vld [vmem:[#allocation2 + $0x9b] sm:$0xff]  ;;  %2515 = vst [vmem:[#allocation2 + $0xb0] sm:$0xff] %v2483_v51  ;;  %v2484_v41 = vmax.f32 %v9818_v22, 0.0  ;;  %v7736_v2 = vadd.f32 %v2289_v45, %v10984_v36  ;;  %v2291_v42 = vpop.f32.mrb[50].mxu0 }
 0x266   : > { %v2575_v27 = vld [vmem:[#allocation2 + $0x99] sm:$0xff]  ;;  %v2731_v37 = vmax.f32 %v2669_v63, %v2700_v40  ;;  %v7737_v56 = vadd.f32 %v2291_v42, %v10985_v38  ;;  %v2293_v47 = vpop.f32.mrb[51].mxu0  ;;  %v2670_v39 = vld [vmem:[#allocation2 + $0xa2] sm:$0xff] }
 0x267   : > { %v9827_v11 = vmax.f32 %v2480_v17, %v2575_v27  ;;  %2516 = vst [vmem:[#allocation2 + $0xb8] sm:$0xff] %v2484_v41  ;;  %v2414_v57 = vmax.f32 %v7735_v24, %v7736_v2  ;;  %v7738_v48 = vadd.f32 %v2293_v47, %v10986_v43  ;;  %v2701_v0 = vld [vmem:[#allocation2 + $0xa3] sm:$0xff]  ;;  %v10987_v24 = vld [vmem:[#allocation13_spill] sm:$0xff]  ;;  %v10988_v42 = vld [vmem:[#allocation14_spill] sm:$0xff] }
 0x268   : > { %v2752_v60 = vpack.c.bf16 %v2731_v37, %v2730_v46  ;;  %v2576_v44 = vld [vmem:[#allocation2 + $0xa1] sm:$0xff]  ;;  %v2732_v27 = vmax.f32 %v2670_v39, %v2701_v0 }
 0x269   : > { %v2627_v49 = vpack.c.bf16 %v9827_v11, %v9832_v58  ;;  %v9840_v59 = vadd.f32 %v9500_v12, %v2414_v57  ;;  %v2415_v17 = vmax.f32 %v7737_v56, %v7738_v48  ;;  %v10989_v57 = vld [vmem:[#allocation15_spill] sm:$0xff]  ;;  %v10990_v39 = vld [vmem:[#allocation16_spill] sm:$0xff]  ;;  %v3351_v11 = vld [vmem:[#allocation2 + $0x15] sm:$0xff] }
 0x26a   : > { %2979 = vmatmul.mubr.bf16.gmra.mrb[100].mxu1 %v2752_v60  ;;  %v9859_v60 = vmax.f32 %v2481_v62, %v2576_v44  ;;  %v8534_v58 = vld [vmem:[%s10950_s3 + $0x190] ss:$8 sps:$4 sm:$0xff]  }
 0x26b   : > { %2988 = vmatprep.mubr.bf16.mxu1 %v10982_v8  ;;  %v2485_v6 = vmax.f32 %v9840_v59, 0.0  ;;  %v9845_v26 = vadd.f32 %v9500_v12, %v2415_v17  ;;  %v2297_v52 = vpop.f32.mrb[52].mxu0 }
 0x26c   : > { %v7739_v45 = vadd.f32 %v2297_v52, %v10987_v24  ;;  %v2299_v63 = vpop.f32.mrb[53].mxu0  ;;  %v2671_v40 = vld [vmem:[#allocation2 + $0xaa] sm:$0xff] }
 0x26d   : > { %v2702_v46 = vld [vmem:[#allocation2 + $0xab] sm:$0xff]  ;;  %2517 = vst [vmem:[#allocation2 + $0xc0] sm:$0xff] %v2485_v6  ;;  %v2486_v2 = vmax.f32 %v9845_v26, 0.0  ;;  %v7740_v37 = vadd.f32 %v2299_v63, %v10988_v42  ;;  %v2301_v38 = vpop.f32.mrb[54].mxu0 }
 0x26e   : > { %v2577_v36 = vld [vmem:[#allocation2 + $0xa9] sm:$0xff]  ;;  %v2733_v56 = vmax.f32 %v2671_v40, %v2702_v46  ;;  %v7741_v43 = vadd.f32 %v2301_v38, %v10989_v57  ;;  %v2303_v48 = vpop.f32.mrb[55].mxu0  ;;  %v2672_v63 = vld [vmem:[#allocation2 + $0xb2] sm:$0xff] }
 0x26f   : > { %v9854_v47 = vmax.f32 %v2482_v33, %v2577_v36  ;;  %2518 = vst [vmem:[#allocation2 + $0xc8] sm:$0xff] %v2486_v2  ;;  %v2416_v17 = vmax.f32 %v7739_v45, %v7740_v37  ;;  %v7742_v0 = vadd.f32 %v2303_v48, %v10990_v39  ;;  %v2703_v40 = vld [vmem:[#allocation2 + $0xb3] sm:$0xff] }
 0x270   : > { %v2753_v52 = vpack.c.bf16 %v2733_v56, %v2732_v27  ;;  %v2578_v45 = vld [vmem:[#allocation2 + $0xb1] sm:$0xff]  ;;  %v2734_v38 = vmax.f32 %v2672_v63, %v2703_v40 }
 0x271   : > { %v9867_v5 = vadd.f32 %v9500_v12, %v2416_v17  ;;  %v2417_v33 = vmax.f32 %v7741_v43, %v7742_v0  ;;  %v10991_v46 = vld [vmem:[#allocation17_spill] sm:$0xff]  ;;  %v10992_v43 = vld [vmem:[#allocation18_spill] sm:$0xff]  ;;  %v9886_v63 = vmax.f32 %v2483_v51, %v2578_v45  ;;  %v11000_v16 = vpack.c.bf16 %v9854_v47, %v9859_v60  ;;  %v8539_v47 = vld [vmem:[%s10950_s3 + $0x1a4] ss:$8 sps:$4 sm:$0xff]  }
 0x272   : > { %2989 = vmatmul.mubr.bf16.gmra.mrb[104].mxu1 %v2753_v52  ;;  %v10993_v52 = vld [vmem:[#allocation19_spill] sm:$0xff] }
 0x273   : > { %2998 = vmatprep.mubr.bf16.mxu1 %v10982_v8  ;;  %v2487_v30 = vmax.f32 %v9867_v5, 0.0  ;;  %v9872_v62 = vadd.f32 %v9500_v12, %v2417_v33  ;;  %v2307_v44 = vpop.f32.mrb[56].mxu0 }
 0x274   : > { %v7743_v27 = vadd.f32 %v2307_v44, %v10991_v46  ;;  %v2309_v36 = vpop.f32.mrb[57].mxu0  ;;  %v2673_v42 = vld [vmem:[#allocation2 + $0xba] sm:$0xff]  ;;  %v10994_v46 = vld [vmem:[#allocation20_spill] sm:$0xff] }
 0x275   : > { %v2704_v37 = vld [vmem:[#allocation2 + $0xbb] sm:$0xff]  ;;  %2519 = vst [vmem:[#allocation2 + $0xd0] sm:$0xff] %v2487_v30  ;;  %v2488_v57 = vmax.f32 %v9872_v62, 0.0  ;;  %v7744_v48 = vadd.f32 %v2309_v36, %v10992_v43  ;;  %v2311_v17 = vpop.f32.mrb[58].mxu0 }
 0x276   : > { %v2579_v56 = vld [vmem:[#allocation2 + $0xb9] sm:$0xff]  ;;  %v2735_v39 = vmax.f32 %v2673_v42, %v2704_v37  ;;  %v7745_v33 = vadd.f32 %v2311_v17, %v10993_v52  ;;  %v2313_v44 = vpop.f32.mrb[59].mxu0  ;;  %v2705_v37 = vld [vmem:[#allocation2 + $0xc3] sm:$0xff] }
 0x277   : > { %v9881_v0 = vmax.f32 %v2484_v41, %v2579_v56  ;;  %2520 = vst [vmem:[#allocation2 + $0xd8] sm:$0xff] %v2488_v57  ;;  %v2418_v40 = vmax.f32 %v7743_v27, %v7744_v48  ;;  %v7746_v24 = vadd.f32 %v2313_v44, %v10994_v46  ;;  %v2674_v41 = vld [vmem:[#allocation2 + $0xc2] sm:$0xff]  ;;  %v10995_v27 = vld [vmem:[#allocation21_spill] sm:$0xff] }
 0x278   : > { %v2754_v62 = vpack.c.bf16 %v2735_v39, %v2734_v38  ;;  %v2580_v45 = vld [vmem:[#allocation2 + $0xc1] sm:$0xff]  ;;  %v2736_v39 = vmax.f32 %v2674_v41, %v2705_v37 }
 0x279   : > { %v2457_v42 = vadd.f32 %v9500_v12, %v2418_v40  ;;  %v2419_v22 = vmax.f32 %v7745_v33, %v7746_v24  ;;  %v10996_v24 = vld [vmem:[#allocation22_spill] sm:$0xff]  ;;  %v10998_v37 = vld [vmem:[#allocation24_spill] sm:$0xff]  ;;  %v11001_v53 = vpack.c.bf16 %v9881_v0, %v9886_v63 }
 0x27a   : > { %2999 = vmatmul.mubr.bf16.gmra.mrb[108].mxu1 %v2754_v62  ;;  %v8537_v0 = vld [vmem:[%s10950_s3 + $0x1a0] ss:$8 sps:$4 sm:$0xff]  }
 0x27b   : > { %3008 = vmatprep.mubr.bf16.mxu1 %v10982_v8  ;;  %v2489_v56 = vmax.f32 %v2457_v42, 0.0  ;;  %v2458_v50 = vadd.f32 %v9500_v12, %v2419_v22  ;;  %v2317_v51 = vpop.f32.mrb[60].mxu0  ;;  %v10997_v42 = vld [vmem:[#allocation23_spill] sm:$0xff] }
 0x27c   : > { %v7747_v43 = vadd.f32 %v2317_v51, %v10995_v27  ;;  %v2319_v48 = vpop.f32.mrb[61].mxu0  ;;  %v2675_v38 = vld [vmem:[#allocation2 + $0xca] sm:$0xff]  ;;  %v9903_v51 = vmax.f32 %v2485_v6, %v2580_v45 }
 0x27d   : > { %v2706_v17 = vld [vmem:[#allocation2 + $0xcb] sm:$0xff]  ;;  %2521 = vst [vmem:[#allocation2 + $0xe0] sm:$0xff] %v2489_v56  ;;  %v2490_v44 = vmax.f32 %v2458_v50, 0.0  ;;  %v7748_v33 = vadd.f32 %v2319_v48, %v10996_v24  ;;  %v2321_v40 = vpop.f32.mrb[62].mxu0 }
 0x27e   : > { %v2581_v52 = vld [vmem:[#allocation2 + $0xc9] sm:$0xff]  ;;  %v2737_v46 = vmax.f32 %v2675_v38, %v2706_v17  ;;  %v7749_v22 = vadd.f32 %v2321_v40, %v10997_v42  ;;  %v2323_v36 = vpop.f32.mrb[63].mxu0  ;;  %v2707_v17 = vld [vmem:[#allocation2 + $0xd3] sm:$0xff] }
 0x27f   : > { %v9898_v62 = vmax.f32 %v2486_v2, %v2581_v52  ;;  %2522 = vst [vmem:[#allocation2 + $0xe8] sm:$0xff] %v2490_v44  ;;  %v2420_v41 = vmax.f32 %v7747_v43, %v7748_v33  ;;  %v7750_v27 = vadd.f32 %v2323_v36, %v10998_v37  ;;  %v2676_v2 = vld [vmem:[#allocation2 + $0xd2] sm:$0xff] }
 0x280   : > { %v2755_v50 = vpack.c.bf16 %v2737_v46, %v2736_v39  ;;  %v2582_v52 = vld [vmem:[#allocation2 + $0xd1] sm:$0xff]  ;;  %v2738_v24 = vmax.f32 %v2676_v2, %v2707_v17 }
 0x281   : > { %v2630_v48 = vpack.c.bf16 %v9898_v62, %v9903_v51  ;;  %v2459_v38 = vadd.f32 %v9500_v12, %v2420_v41  ;;  %v2421_v26 = vmax.f32 %v7749_v22, %v7750_v27  ;;  %v9913_v40 = vmax.f32 %v2487_v30, %v2582_v52  ;;  %v8542_v62 = vld [vmem:[%s10950_s3 + $0x1b4] ss:$8 sps:$4 sm:$0xff]   ;;  %v3323_v51 = vld [vmem:[#allocation2 + $0x2c] sm:$0xff] }
 0x282   : > { %3009 = vmatmul.mubr.bf16.gmra.mrb[112].mxu1 %v2755_v50 }
 0x283   : > { %3018 = vmatprep.mubr.bf16.mxu1 %v10982_v8  ;;  %v2491_v59 = vmax.f32 %v2459_v38, 0.0  ;;  %v2460_v6 = vadd.f32 %v9500_v12, %v2421_v26 }
 0x284   : > { %v2677_v45 = vld [vmem:[#allocation2 + $0xda] sm:$0xff] }
 0x285   : > { %v2708_v43 = vld [vmem:[#allocation2 + $0xdb] sm:$0xff]  ;;  %2523 = vst [vmem:[#allocation2 + $0xf0] sm:$0xff] %v2491_v59  ;;  %v2492_v39 = vmax.f32 %v2460_v6, 0.0 }
 0x286   : > { %v2583_v36 = vld [vmem:[#allocation2 + $0xd9] sm:$0xff]  ;;  %v2739_v33 = vmax.f32 %v2677_v45, %v2708_v43  ;;  %v2678_v12 = vld [vmem:[#allocation2 + $0xe2] sm:$0xff]  ;;  %v10999_v43 = vpack.c.bf16 %v9538_v19, %v9544_v3 }
 0x287   : > { %v9915_v46 = vmax.f32 %v2488_v57, %v2583_v36  ;;  %2524 = vst [vmem:[#allocation2 + $0xf8] sm:$0xf] %v2492_v39  ;;  %v2709_v41 = vld [vmem:[#allocation2 + $0xe3] sm:$0xff]  ;;  %v8518_v19 = vld [vmem:[%s10950_s3 + $0x134] ss:$8 sps:$4 sm:$0xff]  }
 0x288   : > { %v2756_v42 = vpack.c.bf16 %v2739_v33, %v2738_v24  ;;  %v2584_v37 = vld [vmem:[#allocation2 + $0xe1] sm:$0xff]  ;;  %v2740_v38 = vmax.f32 %v2678_v12, %v2709_v41  ;;  %v8510_v24 = vld [vmem:[%s10950_s3 + $0x110] ss:$8 sps:$4 sm:$0xff]  }
 0x289   : > { %v2631_v22 = vpack.c.bf16 %v9915_v46, %v9913_v40  ;;  %v9920_v30 = vmax.f32 %v2489_v56, %v2584_v37  ;;  %v8507_v56 = vld [vmem:[%s10950_s3 + $0x100] ss:$8 sps:$4 sm:$0xff]   ;;  %v8515_v36 = vld [vmem:[%s10950_s3 + $0x124] ss:$8 sps:$4 sm:$0xff]   ;;  %v8516_v3 = vld [vmem:[%s10950_s3 + $0x130] ss:$8 sps:$4 sm:$0xff]  }
 0x28a   : > { %3019 = vmatmul.mubr.bf16.gmra.mrb[116].mxu1 %v2756_v42  ;;  %v8513_v39 = vld [vmem:[%s10950_s3 + $0x120] ss:$8 sps:$4 sm:$0xff]   ;;  %v8521_v33 = vld [vmem:[%s10950_s3 + $0x144] ss:$8 sps:$4 sm:$0xff]  }
 0x28b   : > { %3028 = vmatprep.mubr.bf16.mxu1 %v10982_v8  ;;  %v8519_v42 = vld [vmem:[%s10950_s3 + $0x140] ss:$8 sps:$4 sm:$0xff]   ;;  %v8545_v37 = vld [vmem:[%s10950_s3 + $0x1c4] ss:$8 sps:$4 sm:$0xff]  }
 0x28c   : > { %v2679_v27 = vld [vmem:[#allocation2 + $0xea] sm:$0xff]  ;;  %v2680_v17 = vld [vmem:[#allocation2 + $0xf2] sm:$0x7] }
 0x28d   : > { %v2710_v50 = vld [vmem:[#allocation2 + $0xeb] sm:$0xff]  ;;  %v2711_v52 = vld [vmem:[#allocation2 + $0xf3] sm:$0x7] }
 0x28e   : > { %v2741_v26 = vmax.f32 %v2679_v27, %v2710_v50  ;;  %v2585_v5 = vld [vmem:[#allocation2 + $0xe9] sm:$0xff]  ;;  %v2742_v6 = vmax.f32 %v2680_v17, %v2711_v52  ;;  %v2586_v15 = vld [vmem:[#allocation2 + $0xf1] sm:$0x7] }
 0x28f   : > { %v9922_v57 = vmax.f32 %v2490_v44, %v2585_v5  ;;  %v8512_v44 = vld [vmem:[%s10950_s3 + $0x114] ss:$8 sps:$4 sm:$0xff]   ;;  %v8525_v12 = vld [vmem:[%s10950_s3 + $0x160] ss:$8 sps:$4 sm:$0xff]   ;;  %v8546_v17 = vld [vmem:[%s10950_s3 + $0x1d0] ss:$8 sps:$4 sm:$0xff]  }
 0x290   : > { %v2757_v2 = vpack.c.bf16 %v2741_v26, %v2740_v38  ;;  %v2758_v45 = vpack.c.bf16 %v2742_v6, %v2742_v6  ;;  %v3322_v40 = vld [vmem:[#allocation2 + $0x24] sm:$0xff]  ;;  %v8548_v26 = vld [vmem:[%s10950_s3 + $0x1d4] ss:$8 sps:$4 sm:$0xff]  }
 0x291   : > { %v2632_v59 = vpack.c.bf16 %v9922_v57, %v9920_v30  ;;  %v3353_v46 = vld [vmem:[#allocation2 + $0x25] sm:$0xff]  ;;  %v3325_v5 = vld [vmem:[#allocation2 + $0x3c] sm:$0xff]  ;;  %v3324_v57 = vld [vmem:[#allocation2 + $0x34] sm:$0xff] }
 0x292   : > { %3029 = vmatmul.mubr.bf16.gmra.mrb[120].mxu1 %v2757_v2  ;;  %v3384_v27 = vmax.f32 %v3322_v40, %v3353_v46  ;;  %v8543_v50 = vld [vmem:[%s10950_s3 + $0x1c0] ss:$8 sps:$4 sm:$0xff]   ;;  %v3355_v2 = vld [vmem:[#allocation2 + $0x35] sm:$0xff]  ;;  %v3339_v46 = vld [vmem:[#allocation2 + $0xac] sm:$0xff] }
 0x293   : > { %3038 = vmatprep.mubr.bf16.mxu1 %v10982_v8  ;;  %v3356_v30 = vld [vmem:[#allocation2 + $0x3d] sm:$0xff]  ;;  %v3386_v6 = vmax.f32 %v3324_v57, %v3355_v2  ;;  %v3371_v57 = vld [vmem:[#allocation2 + $0xb5] sm:$0xff] }
 0x294   : > { %v3387_v52 = vmax.f32 %v3325_v5, %v3356_v30  ;;  %v3372_v5 = vld [vmem:[#allocation2 + $0xbd] sm:$0xff]  ;;  %v3340_v30 = vld [vmem:[#allocation2 + $0xb4] sm:$0xff] }
 0x29a   : > { %3039 = vmatmul.mubr.bf16.gmra.mrb[124].mxu1 %v2758_v45  ;;  %v8549_v45 = vld [vmem:[%s10950_s3 + $0x1e0] ss:$8 sps:$4 sm:$0xff]  }
 0x29b   : > { %3159 = vmatprep.mubr.bf16.mxu1 %v10982_v8 }
 0x2a2   : > { %3160 = vmatmul.mubr.bf16.vlgmr.msra.gmra.mrb[64].mxu1 %v10999_v43  ;;  %v3327_v43 = vld [vmem:[#allocation2 + $0x4c] sm:$0xff] }
 0x2a3   : > { %3525 = vmatpush1.bf16.msra.mxu1 %v8507_v56  ;;  %3169 = vmatprep.mubr.bf16.mxu1 %v10982_v8  ;;  %v3414_v56 = vpack.c.bf16 %v3387_v52, %v3386_v6  ;;  %v3374_v6 = vld [vmem:[#allocation2 + $0xcd] sm:$0xff] }
 0x2a4   : > { %3526 = vmatprep.subr.bf16.mxu1 %v8512_v44  ;;  %v8554_v44 = vld [vmem:[%s10950_s3 + $0x1f4] ss:$8 sps:$4 sm:$0xff]  }
 0x2a7   : > { %3527 = vmatpush1.bf16.msra.mxu1 %v8510_v24  ;;  %v3358_v24 = vld [vmem:[#allocation2 + $0x4d] sm:$0xff] }
 0x2a8   : > { %3528 = vmatprep.subr.bf16.mxu1 %v8515_v36  ;;  %v3326_v36 = vld [vmem:[#allocation2 + $0x44] sm:$0xff] }
 0x2aa   : > { %3170 = vmatmul.mubr.bf16.gmra.mrb[68].mxu1 %v2619_v14  ;;  %v8527_v14 = vld [vmem:[%s10950_s3 + $0x164] ss:$8 sps:$4 sm:$0xff]  }
 0x2ab   : > { %3179 = vmatprep.mubr.bf16.mxu1 %v10982_v8  ;;  %3529 = vmatpush1.bf16.msra.mxu1 %v8513_v39  ;;  %v3357_v39 = vld [vmem:[#allocation2 + $0x45] sm:$0xff] }
 0x2ac   : > { %3530 = vmatprep.subr.bf16.mxu1 %v8518_v19  ;;  %v8552_v19 = vld [vmem:[%s10950_s3 + $0x1f0] ss:$8 sps:$4 sm:$0xff]  }
 0x2af   : > { %3531 = vmatpush1.bf16.msra.mxu1 %v8516_v3  ;;  %v3389_v3 = vmax.f32 %v3327_v43, %v3358_v24 }
 0x2b0   : > { %3532 = vmatprep.subr.bf16.mxu1 %v8521_v33  ;;  %v8557_v33 = vld [vmem:[%s10950_s3 + $0x204] ss:$8 sps:$4 sm:$0xff]  }
 0x2b2   : > { %3180 = vmatmul.mubr.bf16.gmra.mrb[72].mxu1 %v2620_v21  ;;  %v8533_v21 = vld [vmem:[%s10950_s3 + $0x184] ss:$8 sps:$4 sm:$0xff]  }
 0x2b3   : > { %3189 = vmatprep.mubr.bf16.mxu1 %v10982_v8  ;;  %3533 = vmatpush1.bf16.msra.mxu1 %v8519_v42  ;;  %v3388_v42 = vmax.f32 %v3326_v36, %v3357_v39  ;;  %v3345_v36 = vld [vmem:[#allocation2 + $0xdc] sm:$0xff] }
 0x2b4   : > { %3534 = vmatprep.subr.bf16.mxu1 %v8524_v13  ;;  %v3376_v39 = vld [vmem:[#allocation2 + $0xdd] sm:$0xff] }
 0x2b5   : > { %v3415_v13 = vpack.c.bf16 %v3389_v3, %v3388_v42  ;;  %v3375_v3 = vld [vmem:[#allocation2 + $0xd5] sm:$0xff] }
 0x2b7   : > { %3535 = vmatpush1.bf16.msra.mxu1 %v8522_v4  ;;  %v3329_v4 = vld [vmem:[#allocation2 + $0x5c] sm:$0xff] }
 0x2b8   : > { %3536 = vmatprep.subr.bf16.mxu1 %v8527_v14  ;;  %v3360_v14 = vld [vmem:[#allocation2 + $0x5d] sm:$0xff] }
 0x2ba   : > { %3190 = vmatmul.mubr.bf16.gmra.mrb[76].mxu1 %v2621_v10  ;;  %v2555_v10 = vld [vmem:[#allocation2 + $0xf0] sm:$0x7] }
 0x2bb   : > { %3199 = vmatprep.mubr.bf16.mxu1 %v10982_v8  ;;  %3537 = vmatpush1.bf16.msra.mxu1 %v8525_v12  ;;  %v2617_v29 = vmax.f32 %v2555_v10, %v2586_v15  ;;  %v3328_v12 = vld [vmem:[#allocation2 + $0x54] sm:$0xff]  ;;  %v3330_v15 = vld [vmem:[#allocation2 + $0x64] sm:$0xff] }
 0x2bc   : > { %3538 = vmatprep.subr.bf16.mxu1 %v8530_v20  ;;  %v3359_v20 = vld [vmem:[#allocation2 + $0x55] sm:$0xff]  ;;  %v3362_v10 = vld [vmem:[#allocation2 + $0x6d] sm:$0xff] }
 0x2bf   : > { %3539 = vmatpush1.bf16.msra.mxu1 %v8528_v61  ;;  %v3391_v61 = vmax.f32 %v3329_v4, %v3360_v14  ;;  %v3347_v4 = vld [vmem:[#allocation2 + $0xec] sm:$0xff] }
 0x2c0   : > { %3983 = vmatprep.subr.bf16.mxu1 %v8533_v21  ;;  %v3390_v21 = vmax.f32 %v3328_v12, %v3359_v20  ;;  %v3378_v14 = vld [vmem:[#allocation2 + $0xed] sm:$0xff]  ;;  %v3346_v12 = vld [vmem:[#allocation2 + $0xe4] sm:$0xff] }
 0x2c1   : > { %v3377_v20 = vld [vmem:[#allocation2 + $0xe5] sm:$0xff] }
 0x2c2   : > { %3200 = vmatmul.mubr.bf16.gmra.mrb[80].mxu1 %v2622_v55  ;;  %v2633_v55 = vpack.c.bf16 %v2617_v29, %v2617_v29  ;;  %v3361_v29 = vld [vmem:[#allocation2 + $0x65] sm:$0xff] }
 0x2c3   : > { %3209 = vmatprep.mubr.bf16.mxu1 %v10982_v8  ;;  %v3392_v28 = vmax.f32 %v3330_v15, %v3361_v29 }
 0x2ca   : > { %3210 = vmatmul.mubr.bf16.gmra.mrb[84].mxu1 %v2623_v54  ;;  %v3318_v54 = vld [vmem:[#allocation2 + $0x4] sm:$0xff] }
 0x2cb   : > { %3219 = vmatprep.mubr.bf16.mxu1 %v10982_v8 }
 0x2d2   : > { %3220 = vmatmul.mubr.bf16.gmra.mrb[88].mxu1 %v2624_v32  ;;  %v3380_v32 = vmax.f32 %v3318_v54, %v3349_v25  ;;  %v3333_v54 = vld [vmem:[#allocation2 + $0x7c] sm:$0xff] }
 0x2d3   : > { %3229 = vmatprep.mubr.bf16.mxu1 %v10982_v8  ;;  %v3364_v25 = vld [vmem:[#allocation2 + $0x7d] sm:$0xff] }
 0x2d4   : > { %v3411_v1 = vpack.c.bf16 %v3381_v35, %v3380_v32  ;;  %v3332_v35 = vld [vmem:[#allocation2 + $0x74] sm:$0xff] }
 0x2d5   : > { %v3363_v32 = vld [vmem:[#allocation2 + $0x75] sm:$0xff] }
 0x2da   : > { %3230 = vmatmul.mubr.bf16.gmra.mrb[92].mxu1 %v2625_v31  ;;  %v8536_v31 = vld [vmem:[%s10950_s3 + $0x194] ss:$8 sps:$4 sm:$0xff]  }
 0x2db   : > { %3239 = vmatprep.mubr.bf16.mxu1 %v10982_v8 }
 0x2e2   : > { %3240 = vmatmul.mubr.bf16.gmra.mrb[96].mxu1 %v2626_v9  ;;  %v3320_v9 = vld [vmem:[#allocation2 + $0x14] sm:$0xff] }
 0x2e3   : > { %3249 = vmatprep.mubr.bf16.mxu1 %v10982_v8  ;;  %v3382_v60 = vmax.f32 %v3320_v9, %v3351_v11  ;;  %v3334_v9 = vld [vmem:[#allocation2 + $0x84] sm:$0xff] }
 0x2e4   : > { %v3365_v11 = vld [vmem:[#allocation2 + $0x85] sm:$0xff] }
 0x2ea   : > { %3250 = vmatmul.mubr.bf16.gmra.mrb[100].mxu1 %v2627_v49  ;;  %v3383_v49 = vmax.f32 %v3321_v34, %v3352_v18  ;;  %v3335_v34 = vld [vmem:[#allocation2 + $0x8c] sm:$0xff] }
 0x2eb   : > { %3259 = vmatprep.mubr.bf16.mxu1 %v10982_v8  ;;  %v3366_v18 = vld [vmem:[#allocation2 + $0x8d] sm:$0xff] }
 0x2ec   : > { %v3412_v63 = vpack.c.bf16 %v3383_v49, %v3382_v60  ;;  %v3396_v49 = vmax.f32 %v3334_v9, %v3365_v11  ;;  %v3337_v60 = vld [vmem:[#allocation2 + $0x9c] sm:$0xff]  ;;  %v8558_v11 = vld [vmem:[%s10950_s3 + $0x210] ss:$8 sps:$4 sm:$0xff]  }
 0x2ed   : > { %v3810_v9 = vld [vmem:[#allocation2 + $0x17] sm:$0xff] }
 0x2f2   : > { %3260 = vmatmul.mubr.bf16.gmra.mrb[104].mxu1 %v11000_v16  ;;  %v3416_v16 = vpack.c.bf16 %v3391_v61, %v3390_v21  ;;  %v3409_v61 = vmax.f32 %v3347_v4, %v3378_v14  ;;  %v3408_v21 = vmax.f32 %v3346_v12, %v3377_v20  ;;  %v3787_v4 = vld [vmem:[#allocation2 + $0x56] sm:$0xff] }
 0x2f3   : > { %3269 = vmatprep.mubr.bf16.mxu1 %v10982_v8  ;;  %v3818_v14 = vld [vmem:[#allocation2 + $0x57] sm:$0xff] }
 0x2f4   : > { %v3849_v20 = vmax.f32 %v3787_v4, %v3818_v14  ;;  %v3805_v4 = vld [vmem:[#allocation2 + $0xe6] sm:$0xff] }
 0x2f5   : > { %v3836_v14 = vld [vmem:[#allocation2 + $0xe7] sm:$0xff] }
 0x2fa   : > { %3270 = vmatmul.mubr.bf16.gmra.mrb[108].mxu1 %v11001_v53  ;;  %v3331_v53 = vld [vmem:[#allocation2 + $0x6c] sm:$0xff] }
 0x2fb   : > { %3279 = vmatprep.mubr.bf16.mxu1 %v10982_v8 }
 0x302   : > { %3280 = vmatmul.mubr.bf16.gmra.mrb[112].mxu1 %v2630_v48  ;;  %v3354_v48 = vld [vmem:[#allocation2 + $0x2d] sm:$0xff] }
 0x303   : > { %3289 = vmatprep.mubr.bf16.mxu1 %v10982_v8  ;;  %v3385_v41 = vmax.f32 %v3323_v51, %v3354_v48 }
 0x305   : > { %v3413_v38 = vpack.c.bf16 %v3385_v41, %v3384_v27  ;;  %v3338_v41 = vld [vmem:[#allocation2 + $0xa4] sm:$0xff] }
 0x30a   : > { %3290 = vmatmul.mubr.bf16.gmra.mrb[116].mxu1 %v2631_v22  ;;  %v8540_v22 = vld [vmem:[%s10950_s3 + $0x1b0] ss:$8 sps:$4 sm:$0xff]  }
 0x30b   : > { %3299 = vmatprep.mubr.bf16.mxu1 %v10982_v8 }
 0x312   : > { %3300 = vmatmul.mubr.bf16.gmra.mrb[120].mxu1 %v2632_v59  ;;  %v8551_v59 = vld [vmem:[%s10950_s3 + $0x1e4] ss:$8 sps:$4 sm:$0xff]  }
 0x313   : > { %3309 = vmatprep.mubr.bf16.mxu1 %v10982_v8 }
 0x31a   : > { %3310 = vmatmul.mubr.bf16.gmra.mrb[124].mxu1 %v2633_v55  ;;  %v3393_v55 = vmax.f32 %v3331_v53, %v3362_v10  ;;  %v3348_v53 = vld [vmem:[#allocation2 + $0xf4] sm:$0x7] }
 0x31b   : > { %3556 = vmatprep.mubr.bf16.mxu1 %v10982_v8  ;;  %v3379_v10 = vld [vmem:[#allocation2 + $0xf5] sm:$0x7] }
 0x31c   : > { %v3417_v7 = vpack.c.bf16 %v3393_v55, %v3392_v28  ;;  %v3410_v15 = vmax.f32 %v3348_v53, %v3379_v10  ;;  %v3778_v55 = vld [vmem:[#allocation2 + $0xe] sm:$0xff]  ;;  %v3789_v53 = vld [vmem:[#allocation2 + $0x66] sm:$0xff] }
 0x31d   : > { %v3809_v28 = vld [vmem:[#allocation2 + $0xf] sm:$0xff]  ;;  %v3820_v10 = vld [vmem:[#allocation2 + $0x67] sm:$0xff] }
 0x31e   : > { %v3426_v29 = vpack.c.bf16 %v3410_v15, %v3410_v15 }
 0x322   : > { %3557 = vmatmul.mubr.bf16.vlgmr.msra.gmra.mrb[64].mxu1 %v3411_v1  ;;  %v3394_v1 = vmax.f32 %v3332_v35, %v3363_v32  ;;  %v8555_v32 = vld [vmem:[%s10950_s3 + $0x200] ss:$8 sps:$4 sm:$0xff]  }
 0x323   : > { %3984 = vmatpush1.bf16.msra.mxu1 %v8531_v23  ;;  %3566 = vmatprep.mubr.bf16.mxu1 %v10982_v8  ;;  %v3395_v23 = vmax.f32 %v3333_v54, %v3364_v25  ;;  %v3808_v54 = vld [vmem:[#allocation2 + $0x7] sm:$0xff]  ;;  %v3840_v25 = vmax.f32 %v3778_v55, %v3809_v28  ;;  %v3792_v28 = vld [vmem:[#allocation2 + $0x7e] sm:$0xff] }
 0x324   : > { %3985 = vmatprep.subr.bf16.mxu1 %v8536_v31 }
 0x325   : > { %v3418_v31 = vpack.c.bf16 %v3395_v23, %v3394_v1  ;;  %v8560_v1 = vld [vmem:[%s10950_s3 + $0x214] ss:$8 sps:$4 sm:$0xff]  }
 0x327   : > { %3986 = vmatpush1.bf16.msra.mxu1 %v8534_v58  ;;  %v3397_v58 = vmax.f32 %v3335_v34, %v3366_v18  ;;  %v3811_v34 = vld [vmem:[#allocation2 + $0x1f] sm:$0xff]  ;;  %v3779_v18 = vld [vmem:[#allocation2 + $0x16] sm:$0xff] }
 0x328   : > { %3987 = vmatprep.subr.bf16.mxu1 %v8539_v47 }
 0x329   : > { %v3419_v47 = vpack.c.bf16 %v3397_v58, %v3396_v49  ;;  %v8563_v49 = vld [vmem:[%s10950_s3 + $0x224] ss:$8 sps:$4 sm:$0xff]  }
 0x32a   : > { %3567 = vmatmul.mubr.bf16.gmra.mrb[68].mxu1 %v3412_v63  ;;  %v3336_v63 = vld [vmem:[#allocation2 + $0x94] sm:$0xff] }
 0x32b   : > { %3576 = vmatprep.mubr.bf16.mxu1 %v10982_v8  ;;  %3988 = vmatpush1.bf16.msra.mxu1 %v8537_v0  ;;  %v3368_v0 = vld [vmem:[#allocation2 + $0x9d] sm:$0xff] }
 0x32c   : > { %3989 = vmatprep.subr.bf16.mxu1 %v8542_v62  ;;  %v3367_v62 = vld [vmem:[#allocation2 + $0x95] sm:$0xff]  ;;  %v3399_v51 = vmax.f32 %v3337_v60, %v3368_v0  ;;  %v8561_v60 = vld [vmem:[%s10950_s3 + $0x220] ss:$8 sps:$4 sm:$0xff]  }
 0x32d   : > { %v3398_v48 = vmax.f32 %v3336_v63, %v3367_v62  ;;  %v8566_v63 = vld [vmem:[%s10950_s3 + $0x234] ss:$8 sps:$4 sm:$0xff]  }
 0x32e   : > { %v3782_v62 = vld [vmem:[#allocation2 + $0x2e] sm:$0xff] }
 0x32f   : > { %3990 = vmatpush1.bf16.msra.mxu1 %v8540_v22  ;;  %v3420_v40 = vpack.c.bf16 %v3399_v51, %v3398_v48  ;;  %v3370_v22 = vld [vmem:[#allocation2 + $0xad] sm:$0xff] }
 0x330   : > { %3991 = vmatprep.subr.bf16.mxu1 %v8545_v37  ;;  %v3369_v37 = vld [vmem:[#allocation2 + $0xa5] sm:$0xff]  ;;  %v3401_v27 = vmax.f32 %v3339_v46, %v3370_v22  ;;  %v3813_v51 = vld [vmem:[#allocation2 + $0x2f] sm:$0xff] }
 0x331   : > { %v3781_v48 = vld [vmem:[#allocation2 + $0x26] sm:$0xff]  ;;  %v8564_v46 = vld [vmem:[%s10950_s3 + $0x230] ss:$8 sps:$4 sm:$0xff]   ;;  %v3844_v22 = vmax.f32 %v3782_v62, %v3813_v51 }
 0x332   : > { %3577 = vmatmul.mubr.bf16.gmra.mrb[72].mxu1 %v3413_v38 }
 0x333   : > { %3586 = vmatprep.mubr.bf16.mxu1 %v10982_v8  ;;  %3992 = vmatpush1.bf16.msra.mxu1 %v8543_v50  ;;  %v3400_v50 = vmax.f32 %v3338_v41, %v3369_v37  ;;  %v8569_v41 = vld [vmem:[%s10950_s3 + $0x244] ss:$8 sps:$4 sm:$0xff]  }
 0x334   : > { %3993 = vmatprep.subr.bf16.mxu1 %v8548_v26  ;;  %v3341_v26 = vld [vmem:[#allocation2 + $0xbc] sm:$0xff] }
 0x335   : > { %v3421_v38 = vpack.c.bf16 %v3401_v27, %v3400_v50  ;;  %v3403_v2 = vmax.f32 %v3341_v26, %v3372_v5  ;;  %v8567_v27 = vld [vmem:[%s10950_s3 + $0x240] ss:$8 sps:$4 sm:$0xff]  }
 0x336   : > { %v3784_v26 = vld [vmem:[#allocation2 + $0x3e] sm:$0xff] }
 0x337   : > { %3994 = vmatpush1.bf16.msra.mxu1 %v8546_v17  ;;  %v3402_v17 = vmax.f32 %v3340_v30, %v3371_v57  ;;  %v3815_v5 = vld [vmem:[#allocation2 + $0x3f] sm:$0xff]  ;;  %v3783_v30 = vld [vmem:[#allocation2 + $0x36] sm:$0xff] }
 0x338   : > { %3995 = vmatprep.subr.bf16.mxu1 %v8551_v59  ;;  %v3343_v59 = vld [vmem:[#allocation2 + $0xcc] sm:$0xff]  ;;  %v3814_v57 = vld [vmem:[#allocation2 + $0x37] sm:$0xff] }
 0x339   : > { %v3422_v52 = vpack.c.bf16 %v3403_v2, %v3402_v17  ;;  %v8570_v2 = vld [vmem:[%s10950_s3 + $0x250] ss:$8 sps:$4 sm:$0xff]   ;;  %v3846_v17 = vmax.f32 %v3784_v26, %v3815_v5 }
 0x33a   : > { %3587 = vmatmul.mubr.bf16.gmra.mrb[76].mxu1 %v3414_v56  ;;  %v3373_v56 = vld [vmem:[#allocation2 + $0xc5] sm:$0xff]  ;;  %v3799_v26 = vld [vmem:[#allocation2 + $0xb6] sm:$0xff] }
 0x33b   : > { %3596 = vmatprep.mubr.bf16.mxu1 %v10982_v8  ;;  %3996 = vmatpush1.bf16.msra.mxu1 %v8549_v45  ;;  %v3342_v45 = vld [vmem:[#allocation2 + $0xc4] sm:$0xff]  ;;  %v3830_v5 = vld [vmem:[#allocation2 + $0xb7] sm:$0xff] }
 0x33c   : > { %3997 = vmatprep.subr.bf16.mxu1 %v8554_v44  ;;  %v3405_v44 = vmax.f32 %v3343_v59, %v3374_v6  ;;  %v3404_v43 = vmax.f32 %v3342_v45, %v3373_v56  ;;  %v3845_v59 = vmax.f32 %v3783_v30, %v3814_v57  ;;  %v8573_v6 = vld [vmem:[%s10950_s3 + $0x260] ss:$8 sps:$4 sm:$0xff]   ;;  %v8578_v56 = vld [vmem:[%s10950_s3 + $0x274] ss:$8 sps:$4 sm:$0xff]   ;;  %v3861_v57 = vmax.f32 %v3799_v26, %v3830_v5 }
 0x33d   : > { %v4242_v26 = vld [vmem:[#allocation2 + $0x38] sm:$0xff] }
 0x33e   : > { %v3423_v24 = vpack.c.bf16 %v3405_v44, %v3404_v43  ;;  %v3873_v45 = vpack.c.bf16 %v3846_v17, %v3845_v59  ;;  %v3786_v44 = vld [vmem:[#allocation2 + $0x4e] sm:$0xff]  ;;  %v3801_v59 = vld [vmem:[#allocation2 + $0xc6] sm:$0xff] }
 0x33f   : > { %3998 = vmatpush1.bf16.msra.mxu1 %v8552_v19  ;;  %v3344_v19 = vld [vmem:[#allocation2 + $0xd4] sm:$0xff] }
 0x340   : > { %4442 = vmatprep.subr.bf16.mxu1 %v8557_v33  ;;  %v3407_v33 = vmax.f32 %v3345_v36, %v3376_v39  ;;  %v3406_v42 = vmax.f32 %v3344_v19, %v3375_v3  ;;  %v3817_v43 = vld [vmem:[#allocation2 + $0x4f] sm:$0xff]  ;;  %v3816_v36 = vld [vmem:[#allocation2 + $0x47] sm:$0xff] }
 0x341   : > { %v8576_v39 = vld [vmem:[%s10950_s3 + $0x270] ss:$8 sps:$4 sm:$0xff]   ;;  %v3848_v19 = vmax.f32 %v3786_v44, %v3817_v43  ;;  %v3804_v43 = vld [vmem:[#allocation2 + $0xde] sm:$0xff] }
 0x342   : > { %3597 = vmatmul.mubr.bf16.gmra.mrb[80].mxu1 %v3415_v13  ;;  %v3424_v13 = vpack.c.bf16 %v3407_v33, %v3406_v42  ;;  %v3788_v42 = vld [vmem:[#allocation2 + $0x5e] sm:$0xff]  ;;  %v3802_v17 = vld [vmem:[#allocation2 + $0xce] sm:$0xff] }
 0x343   : > { %3606 = vmatprep.mubr.bf16.mxu1 %v10982_v8 }
 0x34a   : > { %3607 = vmatmul.mubr.bf16.gmra.mrb[84].mxu1 %v3416_v16  ;;  %v3425_v16 = vpack.c.bf16 %v3409_v61, %v3408_v21  ;;  %v3790_v21 = vld [vmem:[#allocation2 + $0x6e] sm:$0xff] }
 0x34b   : > { %3616 = vmatprep.mubr.bf16.mxu1 %v10982_v8 }
 0x352   : > { %3617 = vmatmul.mubr.bf16.gmra.mrb[88].mxu1 %v3417_v7  ;;  %v3777_v7 = vld [vmem:[#allocation2 + $0x6] sm:$0xff] }
 0x353   : > { %3626 = vmatprep.mubr.bf16.mxu1 %v10982_v8  ;;  %v3839_v35 = vmax.f32 %v3777_v7, %v3808_v54  ;;  %v3823_v7 = vld [vmem:[#allocation2 + $0x7f] sm:$0xff]  ;;  %v3791_v54 = vld [vmem:[#allocation2 + $0x76] sm:$0xff] }
 0x355   : > { %v3870_v23 = vpack.c.bf16 %v3840_v25, %v3839_v35  ;;  %v3822_v25 = vld [vmem:[#allocation2 + $0x77] sm:$0xff]  ;;  %v3854_v35 = vmax.f32 %v3792_v28, %v3823_v7  ;;  %v8580_v28 = vld [vmem:[%s10952_s5 + $0x48] sm:$0xff]  }
 0x356   : > { %v4237_v7 = vld [vmem:[#allocation2 + $0x10] sm:$0xff] }
 0x35a   : > { %3627 = vmatmul.mubr.bf16.gmra.mrb[92].mxu1 %v3418_v31  ;;  %v3780_v31 = vld [vmem:[#allocation2 + $0x1e] sm:$0xff] }
 0x35b   : > { %3636 = vmatprep.mubr.bf16.mxu1 %v10982_v8  ;;  %v3842_v58 = vmax.f32 %v3780_v31, %v3811_v34  ;;  %v3825_v31 = vld [vmem:[#allocation2 + $0x8f] sm:$0xff]  ;;  %v3793_v34 = vld [vmem:[#allocation2 + $0x86] sm:$0xff] }
 0x362   : > { %3637 = vmatmul.mubr.bf16.gmra.mrb[96].mxu1 %v3419_v47  ;;  %v3841_v47 = vmax.f32 %v3779_v18, %v3810_v9  ;;  %v3824_v18 = vld [vmem:[#allocation2 + $0x87] sm:$0xff] }
 0x363   : > { %3646 = vmatprep.mubr.bf16.mxu1 %v10982_v8 }
 0x364   : > { %v3871_v0 = vpack.c.bf16 %v3842_v58, %v3841_v47  ;;  %v3827_v47 = vld [vmem:[#allocation2 + $0x9f] sm:$0xff] }
 0x36a   : > { %3647 = vmatmul.mubr.bf16.gmra.mrb[100].mxu1 %v3420_v40  ;;  %v3812_v40 = vld [vmem:[#allocation2 + $0x27] sm:$0xff] }
 0x36b   : > { %3656 = vmatprep.mubr.bf16.mxu1 %v10982_v8  ;;  %v3843_v37 = vmax.f32 %v3781_v48, %v3812_v40  ;;  %v3798_v48 = vld [vmem:[#allocation2 + $0xae] sm:$0xff] }
 0x36c   : > { %v3829_v40 = vld [vmem:[#allocation2 + $0xaf] sm:$0xff] }
 0x36d   : > { %v3872_v50 = vpack.c.bf16 %v3844_v22, %v3843_v37  ;;  %v3828_v22 = vld [vmem:[#allocation2 + $0xa7] sm:$0xff] }
 0x372   : > { %3657 = vmatmul.mubr.bf16.gmra.mrb[104].mxu1 %v3421_v38  ;;  %v8572_v38 = vld [vmem:[%s10950_s3 + $0x254] ss:$8 sps:$4 sm:$0xff]  }
 0x373   : > { %3666 = vmatprep.mubr.bf16.mxu1 %v10982_v8 }
 0x37a   : > { %3667 = vmatmul.mubr.bf16.gmra.mrb[108].mxu1 %v3422_v52  ;;  %v8575_v52 = vld [vmem:[%s10950_s3 + $0x264] ss:$8 sps:$4 sm:$0xff]  }
 0x37b   : > { %3676 = vmatprep.mubr.bf16.mxu1 %v10982_v8 }
 0x382   : > { %3677 = vmatmul.mubr.bf16.gmra.mrb[112].mxu1 %v3423_v24  ;;  %v3785_v24 = vld [vmem:[#allocation2 + $0x46] sm:$0xff] }
 0x383   : > { %3686 = vmatprep.mubr.bf16.mxu1 %v10982_v8  ;;  %v3847_v3 = vmax.f32 %v3785_v24, %v3816_v36  ;;  %v3835_v24 = vld [vmem:[#allocation2 + $0xdf] sm:$0xff]  ;;  %v3803_v36 = vld [vmem:[#allocation2 + $0xd6] sm:$0xff] }
 0x385   : > { %v3874_v33 = vpack.c.bf16 %v3848_v19, %v3847_v3  ;;  %v3866_v19 = vmax.f32 %v3804_v43, %v3835_v24  ;;  %v4277_v43 = vld [vmem:[#allocation2 + $0x59] sm:$0xff] }
 0x38a   : > { %3687 = vmatmul.mubr.bf16.gmra.mrb[116].mxu1 %v3424_v13  ;;  %v3819_v13 = vld [vmem:[#allocation2 + $0x5f] sm:$0xff] }
 0x38b   : > { %3696 = vmatprep.mubr.bf16.mxu1 %v10982_v8  ;;  %v3850_v12 = vmax.f32 %v3788_v42, %v3819_v13  ;;  %v3806_v42 = vld [vmem:[#allocation2 + $0xee] sm:$0xff] }
 0x38c   : > { %v3837_v13 = vld [vmem:[#allocation2 + $0xef] sm:$0xff] }
 0x38d   : > { %v3875_v61 = vpack.c.bf16 %v3850_v12, %v3849_v20  ;;  %v3868_v12 = vmax.f32 %v3806_v42, %v3837_v13  ;;  %v8698_v20 = vmov 0.0   ;;  %v4279_v42 = vld [vmem:[#allocation2 + $0x69] sm:$0xff] }
 0x38e   : > { %7271 = vmatprep.subr.bf16.mxu0 %v8698_v20  ;;  %7287 = vmatprep.mubr.msk.bf16.mxu0 %vm8699_vm1, %v8698_v20 }
 0x392   : > { %3697 = vmatmul.mubr.bf16.gmra.mrb[120].mxu1 %v3425_v16  ;;  %v3821_v16 = vld [vmem:[#allocation2 + $0x6f] sm:$0xff] }
 0x393   : > { %3706 = vmatprep.mubr.bf16.mxu1 %v10982_v8  ;;  %v3852_v15 = vmax.f32 %v3790_v21, %v3821_v16  ;;  %v3807_v16 = vld [vmem:[#allocation2 + $0xf6] sm:$0x7] }
 0x39a   : > { %3707 = vmatmul.mubr.bf16.gmra.mrb[124].mxu1 %v3426_v29  ;;  %v3851_v29 = vmax.f32 %v3789_v53, %v3820_v10  ;;  %v3838_v53 = vld [vmem:[#allocation2 + $0xf7] sm:$0x7]  ;;  %v8579_v10 = vld [vmem:[%s10952_s5 + $0x40] sm:$0xff]  }
 0x39b   : > { %4015 = vmatprep.mubr.bf16.mxu1 %v10982_v8  ;;  %7272 = vmatpush3.bf16.msra.mxu0 %v8579_v10  ;;  %v4250_v10 = vld [vmem:[#allocation2 + $0x78] sm:$0xff] }
 0x39c   : > { %v3876_v55 = vpack.c.bf16 %v3852_v15, %v3851_v29  ;;  %v3869_v15 = vmax.f32 %v3807_v16, %v3838_v53  ;;  %7273 = vmatprep.subr.bf16.mxu0 %v8698_v20  ;;  %v4281_v16 = vld [vmem:[#allocation2 + $0x79] sm:$0xff] }
 0x39e   : > { %v3885_v29 = vpack.c.bf16 %v3869_v15, %v3869_v15  ;;  %v4312_v15 = vmax.f32 %v4250_v10, %v4281_v16 }
 0x39f   : > { %7274 = vmatpush3.bf16.msra.mxu0 %v8580_v28  ;;  %v4253_v28 = vld [vmem:[#allocation2 + $0x90] sm:$0xff] }
 0x3a0   : > { %7275 = vmatprep.subr.bf16.mxu0 %v8698_v20 }
 0x3a2   : > { %4016 = vmatmul.mubr.bf16.vlgmr.msra.gmra.mrb[64].mxu1 %v3870_v23 }
 0x3a3   : > { %4443 = vmatpush1.bf16.msra.mxu1 %v8555_v32  ;;  %4025 = vmatprep.mubr.bf16.mxu1 %v10982_v8  ;;  %v3853_v32 = vmax.f32 %v3791_v54, %v3822_v25  ;;  %v4267_v54 = vld [vmem:[#allocation2 + $0x9] sm:$0xff] }
 0x3a4   : > { %4444 = vmatprep.subr.bf16.mxu1 %v8560_v1  ;;  %v3794_v1 = vld [vmem:[#allocation2 + $0x8e] sm:$0xff] }
 0x3a5   : > { %v3877_v23 = vpack.c.bf16 %v3854_v35, %v3853_v32  ;;  %v3856_v9 = vmax.f32 %v3794_v1, %v3825_v31  ;;  %v8581_v35 = vld [vmem:[%s10952_s5 + $0x50] sm:$0xff]   ;;  %v4236_v32 = vld [vmem:[#allocation2 + $0x8] sm:$0xff]  ;;  %v8582_v31 = vld [vmem:[%s10952_s5 + $0x58] sm:$0xff]  }
 0x3a6   : > { %7276 = vmatpush3.bf16.msra.mxu0 %v8581_v35 }
 0x3a7   : > { %4445 = vmatpush1.bf16.msra.mxu1 %v8558_v11  ;;  %v3855_v11 = vmax.f32 %v3793_v34, %v3824_v18  ;;  %v4270_v34 = vld [vmem:[#allocation2 + $0x21] sm:$0xff]  ;;  %7277 = vmatprep.subr.bf16.mxu0 %v8698_v20 }
 0x3a8   : > { %4446 = vmatprep.subr.bf16.mxu1 %v8563_v49  ;;  %v3796_v49 = vld [vmem:[#allocation2 + $0x9e] sm:$0xff] }
 0x3a9   : > { %v3878_v58 = vpack.c.bf16 %v3856_v9, %v3855_v11  ;;  %v4239_v18 = vld [vmem:[#allocation2 + $0x20] sm:$0xff] }
 0x3aa   : > { %4026 = vmatmul.mubr.bf16.gmra.mrb[68].mxu1 %v3871_v0  ;;  %v3826_v0 = vld [vmem:[#allocation2 + $0x97] sm:$0xff]  ;;  %v4301_v11 = vmax.f32 %v4239_v18, %v4270_v34  ;;  %7278 = vmatpush3.bf16.msra.mxu0 %v8582_v31 }
 0x3ab   : > { %4035 = vmatprep.mubr.bf16.mxu1 %v10982_v8  ;;  %4447 = vmatpush1.bf16.msra.mxu1 %v8561_v60  ;;  %v3795_v60 = vld [vmem:[#allocation2 + $0x96] sm:$0xff] }
 0x3ac   : > { %4448 = vmatprep.subr.bf16.mxu1 %v8566_v63  ;;  %v3858_v63 = vmax.f32 %v3796_v49, %v3827_v47  ;;  %v3857_v62 = vmax.f32 %v3795_v60, %v3826_v0  ;;  %v4269_v9 = vld [vmem:[#allocation2 + $0x19] sm:$0xff]  ;;  %7279 = vmatprep.subr.bf16.mxu0 %v8698_v20  ;;  %v8584_v0 = vld [vmem:[%s10952_s5 + $0x68] sm:$0xff]  }
 0x3ad   : > { %v4238_v49 = vld [vmem:[#allocation2 + $0x18] sm:$0xff] }
 0x3ae   : > { %v3879_v51 = vpack.c.bf16 %v3858_v63, %v3857_v62  ;;  %v4300_v47 = vmax.f32 %v4238_v49, %v4269_v9  ;;  %v4272_v63 = vld [vmem:[#allocation2 + $0x31] sm:$0xff]  ;;  %v4285_v31 = vld [vmem:[#allocation2 + $0x99] sm:$0xff] }
 0x3af   : > { %4449 = vmatpush1.bf16.msra.mxu1 %v8564_v46  ;;  %v3797_v46 = vld [vmem:[#allocation2 + $0xa6] sm:$0xff]  ;;  %v4241_v62 = vld [vmem:[#allocation2 + $0x30] sm:$0xff]  ;;  %v4254_v18 = vld [vmem:[#allocation2 + $0x98] sm:$0xff] }
 0x3b0   : > { %4450 = vmatprep.subr.bf16.mxu1 %v8569_v41  ;;  %v3860_v41 = vmax.f32 %v3798_v48, %v3829_v40  ;;  %v3859_v37 = vmax.f32 %v3797_v46, %v3828_v22  ;;  %v4330_v60 = vpack.c.bf16 %v4301_v11, %v4300_v47  ;;  %v4303_v48 = vmax.f32 %v4241_v62, %v4272_v63  ;;  %v8585_v40 = vld [vmem:[%s10952_s5 + $0x70] sm:$0xff]   ;;  %v4240_v46 = vld [vmem:[#allocation2 + $0x28] sm:$0xff] }
 0x3b1   : > { %v4316_v9 = vmax.f32 %v4254_v18, %v4285_v31  ;;  %v4257_v49 = vld [vmem:[#allocation2 + $0xb0] sm:$0xff] }
 0x3b2   : > { %4036 = vmatmul.mubr.bf16.gmra.mrb[72].mxu1 %v3872_v50  ;;  %v3800_v50 = vld [vmem:[#allocation2 + $0xbe] sm:$0xff]  ;;  %v4287_v47 = vld [vmem:[#allocation2 + $0xa9] sm:$0xff] }
 0x3b3   : > { %4045 = vmatprep.mubr.bf16.mxu1 %v10982_v8  ;;  %4451 = vmatpush1.bf16.msra.mxu1 %v8567_v27  ;;  %v3880_v27 = vpack.c.bf16 %v3860_v41, %v3859_v37  ;;  %v4274_v37 = vld [vmem:[#allocation2 + $0x41] sm:$0xff] }
 0x3b4   : > { %4452 = vmatprep.subr.bf16.mxu1 %v8572_v38  ;;  %v3831_v38 = vld [vmem:[#allocation2 + $0xbf] sm:$0xff] }
 0x3b5   : > { %v3862_v30 = vmax.f32 %v3800_v50, %v3831_v38  ;;  %v4273_v50 = vld [vmem:[#allocation2 + $0x39] sm:$0xff] }
 0x3b6   : > { %v4304_v5 = vmax.f32 %v4242_v26, %v4273_v50  ;;  %v4261_v50 = vld [vmem:[#allocation2 + $0xd0] sm:$0xff] }
 0x3b7   : > { %4453 = vmatpush1.bf16.msra.mxu1 %v8570_v2  ;;  %v3881_v2 = vpack.c.bf16 %v3862_v30, %v3861_v57  ;;  %v4276_v57 = vld [vmem:[#allocation2 + $0x51] sm:$0xff] }
 0x3b8   : > { %4454 = vmatprep.subr.bf16.mxu1 %v8575_v52  ;;  %v3833_v52 = vld [vmem:[#allocation2 + $0xcf] sm:$0xff] }
 0x3ba   : > { %4046 = vmatmul.mubr.bf16.gmra.mrb[76].mxu1 %v3873_v45  ;;  %v3864_v45 = vmax.f32 %v3802_v17, %v3833_v52  ;;  %v4275_v17 = vld [vmem:[#allocation2 + $0x49] sm:$0xff] }
 0x3bb   : > { %4055 = vmatprep.mubr.bf16.mxu1 %v10982_v8  ;;  %4455 = vmatpush1.bf16.msra.mxu1 %v8573_v6  ;;  %v3832_v6 = vld [vmem:[#allocation2 + $0xc7] sm:$0xff] }
 0x3bc   : > { %4456 = vmatprep.subr.bf16.mxu1 %v8578_v56  ;;  %v3863_v56 = vmax.f32 %v3801_v59, %v3832_v6  ;;  %v4244_v59 = vld [vmem:[#allocation2 + $0x48] sm:$0xff] }
 0x3bd   : > { %v4306_v6 = vmax.f32 %v4244_v59, %v4275_v17  ;;  %v4263_v17 = vld [vmem:[#allocation2 + $0xe0] sm:$0xff] }
 0x3be   : > { %v3882_v44 = vpack.c.bf16 %v3864_v45, %v3863_v56  ;;  %v4278_v56 = vld [vmem:[#allocation2 + $0x61] sm:$0xff] }
 0x3bf   : > { %4457 = vmatpush1.bf16.msra.mxu1 %v8576_v39  ;;  %v3834_v39 = vld [vmem:[#allocation2 + $0xd7] sm:$0xff] }
 0x3c0   : > { %v3865_v3 = vmax.f32 %v3803_v36, %v3834_v39  ;;  %7651 = vmatprep.subr.bf16.mxu1 %v8698_v20  ;;  %v4246_v36 = vld [vmem:[#allocation2 + $0x58] sm:$0xff] }
 0x3c1   : > { %v4308_v39 = vmax.f32 %v4246_v36, %v4277_v43  ;;  %v4296_v43 = vld [vmem:[#allocation2 + $0xf1] sm:$0xff]  ;;  %v4295_v36 = vld [vmem:[#allocation2 + $0xe9] sm:$0xff] }
 0x3c2   : > { %4056 = vmatmul.mubr.bf16.gmra.mrb[80].mxu1 %v3874_v33  ;;  %v3883_v33 = vpack.c.bf16 %v3866_v19, %v3865_v3  ;;  %v4280_v3 = vld [vmem:[#allocation2 + $0x71] sm:$0xff] }
 0x3c3   : > { %4065 = vmatprep.mubr.bf16.mxu1 %v10982_v8 }
 0x3ca   : > { %4066 = vmatmul.mubr.bf16.gmra.mrb[84].mxu1 %v3875_v61  ;;  %v3867_v61 = vmax.f32 %v3805_v4, %v3836_v14  ;;  %v4248_v4 = vld [vmem:[#allocation2 + $0x68] sm:$0xff] }
 0x3cb   : > { %4075 = vmatprep.mubr.bf16.mxu1 %v10982_v8  ;;  %v4310_v14 = vmax.f32 %v4248_v4, %v4279_v42  ;;  %v4266_v42 = vld [vmem:[#allocation2 + $0xf8] sm:$0x7] }
 0x3cc   : > { %v3884_v21 = vpack.c.bf16 %v3868_v12, %v3867_v61  ;;  %v4282_v61 = vld [vmem:[#allocation2 + $0x81] sm:$0xff] }
 0x3d2   : > { %4076 = vmatmul.mubr.bf16.gmra.mrb[88].mxu1 %v3876_v55  ;;  %v4268_v55 = vld [vmem:[#allocation2 + $0x11] sm:$0xff] }
 0x3d3   : > { %4085 = vmatprep.mubr.bf16.mxu1 %v10982_v8  ;;  %v4299_v25 = vmax.f32 %v4237_v7, %v4268_v55  ;;  %v4284_v55 = vld [vmem:[#allocation2 + $0x91] sm:$0xff]  ;;  %v4283_v7 = vld [vmem:[#allocation2 + $0x89] sm:$0xff] }
 0x3da   : > { %4086 = vmatmul.mubr.bf16.gmra.mrb[92].mxu1 %v3877_v23  ;;  %v4298_v23 = vmax.f32 %v4236_v32, %v4267_v54  ;;  %v4315_v54 = vmax.f32 %v4253_v28, %v4284_v55 }
 0x3db   : > { %4095 = vmatprep.mubr.bf16.mxu1 %v10982_v8 }
 0x3dc   : > { %v4329_v1 = vpack.c.bf16 %v4299_v25, %v4298_v23  ;;  %v4252_v25 = vld [vmem:[#allocation2 + $0x88] sm:$0xff] }
 0x3dd   : > { %v4314_v35 = vmax.f32 %v4252_v25, %v4283_v7  ;;  %v4286_v23 = vld [vmem:[#allocation2 + $0xa1] sm:$0xff] }
 0x3df   : > { %v4337_v32 = vpack.c.bf16 %v4315_v54, %v4314_v35 }
 0x3e2   : > { %4096 = vmatmul.mubr.bf16.gmra.mrb[96].mxu1 %v3878_v58  ;;  %v8583_v58 = vld [vmem:[%s10952_s5 + $0x60] sm:$0xff]  }
 0x3e3   : > { %4105 = vmatprep.mubr.bf16.mxu1 %v10982_v8  ;;  %7280 = vmatpush3.bf16.msra.mxu0 %v8583_v58  ;;  %v4288_v58 = vld [vmem:[#allocation2 + $0xb1] sm:$0xff] }
 0x3e4   : > { %7281 = vmatprep.subr.bf16.mxu0 %v8698_v20 }
 0x3e7   : > { %7282 = vmatpush3.bf16.msra.mxu0 %v8584_v0  ;;  %v4256_v0 = vld [vmem:[#allocation2 + $0xa8] sm:$0xff] }
 0x3e8   : > { %7283 = vmatprep.subr.bf16.mxu0 %v8698_v20  ;;  %v4318_v63 = vmax.f32 %v4256_v0, %v4287_v47 }
 0x3ea   : > { %4106 = vmatmul.mubr.bf16.gmra.mrb[100].mxu1 %v3879_v51  ;;  %v4271_v51 = vld [vmem:[#allocation2 + $0x29] sm:$0xff] }
 0x3eb   : > { %4115 = vmatprep.mubr.bf16.mxu1 %v10982_v8  ;;  %v4302_v22 = vmax.f32 %v4240_v46, %v4271_v51  ;;  %7284 = vmatpush3.bf16.msra.mxu0 %v8585_v40  ;;  %v4290_v51 = vld [vmem:[#allocation2 + $0xc1] sm:$0xff]  ;;  %v4289_v40 = vld [vmem:[#allocation2 + $0xb9] sm:$0xff] }
 0x3ec   : > { %7285 = vmatprep.subr.bf16.mxu0 %v8698_v20 }
 0x3ed   : > { %v4331_v41 = vpack.c.bf16 %v4303_v48, %v4302_v22  ;;  %v4259_v48 = vld [vmem:[#allocation2 + $0xc0] sm:$0xff]  ;;  %v4258_v22 = vld [vmem:[#allocation2 + $0xb8] sm:$0xff] }
 0x3ee   : > { %v4321_v46 = vmax.f32 %v4259_v48, %v4290_v51 }
 0x3f2   : > { %4116 = vmatmul.mubr.bf16.gmra.mrb[104].mxu1 %v3880_v27  ;;  %v4243_v27 = vld [vmem:[#allocation2 + $0x40] sm:$0xff] }
 0x3f3   : > { %4125 = vmatprep.mubr.bf16.mxu1 %v10982_v8  ;;  %v4305_v38 = vmax.f32 %v4243_v27, %v4274_v37  ;;  %v4292_v27 = vld [vmem:[#allocation2 + $0xd1] sm:$0xff] }
 0x3f4   : > { %v4323_v26 = vmax.f32 %v4261_v50, %v4292_v27 }
 0x3f5   : > { %v4332_v30 = vpack.c.bf16 %v4305_v38, %v4304_v5  ;;  %v4291_v38 = vld [vmem:[#allocation2 + $0xc9] sm:$0xff] }
 0x3f6   : > { %v4260_v5 = vld [vmem:[#allocation2 + $0xc8] sm:$0xff] }
 0x3fa   : > { %4126 = vmatmul.mubr.bf16.gmra.mrb[108].mxu1 %v3881_v2  ;;  %v4245_v2 = vld [vmem:[#allocation2 + $0x50] sm:$0xff] }
 0x3fb   : > { %4135 = vmatprep.mubr.bf16.mxu1 %v10982_v8  ;;  %v4307_v52 = vmax.f32 %v4245_v2, %v4276_v57  ;;  %v4294_v2 = vld [vmem:[#allocation2 + $0xe1] sm:$0xff] }
 0x3fc   : > { %v4325_v59 = vmax.f32 %v4263_v17, %v4294_v2 }
 0x3fd   : > { %v4333_v45 = vpack.c.bf16 %v4307_v52, %v4306_v6  ;;  %v4293_v52 = vld [vmem:[#allocation2 + $0xd9] sm:$0xff] }
 0x3fe   : > { %v4262_v6 = vld [vmem:[#allocation2 + $0xd8] sm:$0xff] }
 0x402   : > { %4136 = vmatmul.mubr.bf16.gmra.mrb[112].mxu1 %v3882_v44  ;;  %v4247_v44 = vld [vmem:[#allocation2 + $0x60] sm:$0xff] }
 0x403   : > { %4145 = vmatprep.mubr.bf16.mxu1 %v10982_v8  ;;  %v4309_v24 = vmax.f32 %v4247_v44, %v4278_v56  ;;  %v8586_v56 = vld [vmem:[%s10952_s5 + $0x78] sm:$0xff]  }
 0x404   : > { %7286 = vmatpush3.bf16.msra.mxu0 %v8586_v56 }
 0x405   : > { %v4334_v19 = vpack.c.bf16 %v4309_v24, %v4308_v39  ;;  %7347 = vmatprep.subr.bf16.mxu0 %v8698_v20  ;;  %v4265_v24 = vld [vmem:[#allocation2 + $0xf0] sm:$0xff] }
 0x406   : > { %v4327_v39 = vmax.f32 %v4265_v24, %v4296_v43 }
 0x40a   : > { %4146 = vmatmul.mubr.bf16.gmra.mrb[116].mxu1 %v3883_v33  ;;  %v4249_v33 = vld [vmem:[#allocation2 + $0x70] sm:$0xff] }
 0x40b   : > { %4155 = vmatprep.mubr.bf16.mxu1 %v10982_v8  ;;  %v4311_v13 = vmax.f32 %v4249_v33, %v4280_v3 }
 0x40d   : > { %v4335_v12 = vpack.c.bf16 %v4311_v13, %v4310_v14  ;;  %v4297_v13 = vld [vmem:[#allocation2 + $0xf9] sm:$0x7] }
 0x40e   : > { %v4328_v4 = vmax.f32 %v4266_v42, %v4297_v13 }
 0x410   : > { %v4344_v14 = vpack.c.bf16 %v4328_v4, %v4328_v4 }
 0x412   : > { %4156 = vmatmul.mubr.bf16.gmra.mrb[120].mxu1 %v3884_v21  ;;  %v4251_v21 = vld [vmem:[#allocation2 + $0x80] sm:$0xff] }
 0x413   : > { %4165 = vmatprep.mubr.bf16.mxu1 %v10982_v8  ;;  %v4313_v53 = vmax.f32 %v4251_v21, %v4282_v61  ;;  %v10218_v21 = vld [vmem:[%s10951_s4] ss:$0 sm:$0xff] }
 0x41a   : > { %4166 = vmatmul.mubr.bf16.gmra.mrb[124].mxu1 %v3885_v29  ;;  %v4336_v29 = vpack.c.bf16 %v4313_v53, %v4312_v15 }
 0x41b   : > { %4474 = vmatprep.mubr.bf16.mxu1 %v10982_v8 }
 0x422   : > { %4475 = vmatmul.mubr.bf16.vlgmr.msra.gmra.mrb[64].mxu1 %v4329_v1  ;;  %v4255_v1 = vld [vmem:[#allocation2 + $0xa0] sm:$0xff] }
 0x423   : > { %4484 = vmatprep.mubr.bf16.mxu1 %v10982_v8  ;;  %v4317_v34 = vmax.f32 %v4255_v1, %v4286_v23 }
 0x425   : > { %v4338_v11 = vpack.c.bf16 %v4317_v34, %v4316_v9 }
 0x42a   : > { %4485 = vmatmul.mubr.bf16.gmra.mrb[68].mxu1 %v4330_v60  ;;  %v4319_v60 = vmax.f32 %v4257_v49, %v4288_v58 }
 0x42b   : > { %4494 = vmatprep.mubr.bf16.mxu1 %v10982_v8 }
 0x42c   : > { %v4339_v62 = vpack.c.bf16 %v4319_v60, %v4318_v63 }
 0x432   : > { %4495 = vmatmul.mubr.bf16.gmra.mrb[72].mxu1 %v4331_v41  ;;  %v4320_v41 = vmax.f32 %v4258_v22, %v4289_v40 }
 0x433   : > { %4504 = vmatprep.mubr.bf16.mxu1 %v10982_v8 }
 0x434   : > { %v4340_v37 = vpack.c.bf16 %v4321_v46, %v4320_v41 }
 0x43a   : > { %4505 = vmatmul.mubr.bf16.gmra.mrb[76].mxu1 %v4332_v30  ;;  %v4322_v30 = vmax.f32 %v4260_v5, %v4291_v38 }
 0x43b   : > { %4514 = vmatprep.mubr.bf16.mxu1 %v10982_v8 }
 0x43c   : > { %v4341_v57 = vpack.c.bf16 %v4323_v26, %v4322_v30 }
 0x442   : > { %4515 = vmatmul.mubr.bf16.gmra.mrb[80].mxu1 %v4333_v45  ;;  %v4324_v45 = vmax.f32 %v4262_v6, %v4293_v52 }
 0x443   : > { %4524 = vmatprep.mubr.bf16.mxu1 %v10982_v8 }
 0x444   : > { %v4342_v44 = vpack.c.bf16 %v4325_v59, %v4324_v45 }
 0x44a   : > { %4525 = vmatmul.mubr.bf16.gmra.mrb[84].mxu1 %v4334_v19  ;;  %v4264_v19 = vld [vmem:[#allocation2 + $0xe8] sm:$0xff] }
 0x44b   : > { %4534 = vmatprep.mubr.bf16.mxu1 %v10982_v8  ;;  %v4326_v3 = vmax.f32 %v4264_v19, %v4295_v36 }
 0x44d   : > { %v4343_v33 = vpack.c.bf16 %v4327_v39, %v4326_v3 }
 0x452   : > { %4535 = vmatmul.mubr.bf16.gmra.mrb[88].mxu1 %v4335_v12 }
 0x453   : > { %4544 = vmatprep.mubr.bf16.mxu1 %v10982_v8 }
 0x45a   : > { %4545 = vmatmul.mubr.bf16.gmra.mrb[92].mxu1 %v4336_v29 }
 0x45b   : > { %4554 = vmatprep.mubr.bf16.mxu1 %v10982_v8 }
 0x462   : > { %4555 = vmatmul.mubr.bf16.gmra.mrb[96].mxu1 %v4337_v32 }
 0x463   : > { %4564 = vmatprep.mubr.bf16.mxu1 %v10982_v8 }
 0x46a   : > { %4565 = vmatmul.mubr.bf16.gmra.mrb[100].mxu1 %v4338_v11 }
 0x46b   : > { %4574 = vmatprep.mubr.bf16.mxu1 %v10982_v8 }
 0x472   : > { %4575 = vmatmul.mubr.bf16.gmra.mrb[104].mxu1 %v4339_v62 }
 0x473   : > { %4584 = vmatprep.mubr.bf16.mxu1 %v10982_v8 }
 0x47a   : > { %4585 = vmatmul.mubr.bf16.gmra.mrb[108].mxu1 %v4340_v37 }
 0x47b   : > { %4594 = vmatprep.mubr.bf16.mxu1 %v10982_v8 }
 0x482   : > { %4595 = vmatmul.mubr.bf16.gmra.mrb[112].mxu1 %v4341_v57  ;;  %v8587_v57 = vld [vmem:[%s10952_s5] sm:$0xff]  }
 0x483   : > { %4604 = vmatprep.mubr.bf16.mxu1 %v10982_v8 }
 0x48a   : > { %4605 = vmatmul.mubr.bf16.gmra.mrb[116].mxu1 %v4342_v44 }
 0x48b   : > { %4614 = vmatprep.mubr.bf16.mxu1 %v10982_v8 }
 0x492   : > { %4615 = vmatmul.mubr.bf16.gmra.mrb[120].mxu1 %v4343_v33  ;;  %v8588_v33 = vld [vmem:[%s10952_s5 + $0x8] sm:$0xff]  }
 0x493   : > { %4624 = vmatprep.mubr.bf16.mxu1 %v10982_v8 }
 0x49a   : > { %4625 = vmatmul.mubr.bf16.gmra.mrb[124].mxu1 %v4344_v14 }
 0x49b   : > { %7667 = vmatprep.mubr.msk.bf16.mxu1 %vm8699_vm1, %v8698_v20 }
 0x4f5   : > { %v4476_v12 = vpop.f32.mrb[64].mxu1 }
 0x4f6   : > { %v4478_v61 = vpop.f32.mrb[65].mxu1 }
 0x4f7   : > { %v4695_v16 = vmax.f32 %v4476_v12, %v4478_v61  ;;  %v4480_v53 = vpop.f32.mrb[66].mxu1 }
 0x4f8   : > { %v4482_v8 = vpop.f32.mrb[67].mxu1 }
 0x4f9   : > { %v4733_v10 = vadd.f32 %v10218_v21, %v4695_v16  ;;  %v4696_v15 = vmax.f32 %v4480_v53, %v4482_v8 }
 0x4fb   : > { %v4764_v29 = vmax.f32 %v4733_v10, 0.0  ;;  %v4734_v55 = vadd.f32 %v10218_v21, %v4696_v15 }
 0x4fd   : > { %4795 = vst [vmem:[#allocation3] sm:$0xff] %v4764_v29  ;;  %v4765_v28 = vmax.f32 %v4734_v55, 0.0  ;;  %v4486_v7 = vpop.f32.mrb[68].mxu1 }
 0x4fe   : > { %v4488_v54 = vpop.f32.mrb[69].mxu1 }
 0x4ff   : > { %4796 = vst [vmem:[#allocation3 + $0x8] sm:$0xff] %v4765_v28  ;;  %v4697_v25 = vmax.f32 %v4486_v7, %v4488_v54  ;;  %v4490_v35 = vpop.f32.mrb[70].mxu1 }
 0x500   : > { %v4492_v32 = vpop.f32.mrb[71].mxu1 }
 0x501   : > { %v10223_v23 = vadd.f32 %v10218_v21, %v4697_v25  ;;  %v4698_v1 = vmax.f32 %v4490_v35, %v4492_v32 }
 0x503   : > { %v4766_v31 = vmax.f32 %v10223_v23, 0.0  ;;  %v4736_v34 = vadd.f32 %v10218_v21, %v4698_v1 }
 0x505   : > { %4797 = vst [vmem:[#allocation3 + $0x10] sm:$0xff] %v4766_v31  ;;  %v4767_v18 = vmax.f32 %v4736_v34, 0.0  ;;  %v4496_v9 = vpop.f32.mrb[72].mxu1 }
 0x506   : > { %v4498_v11 = vpop.f32.mrb[73].mxu1  ;;  %v4944_v63 = vld [vmem:[#allocation3 + $0x4] sm:$0xff] }
 0x507   : > { %4798 = vst [vmem:[#allocation3 + $0x18] sm:$0xff] %v4767_v18  ;;  %v4699_v58 = vmax.f32 %v4496_v9, %v4498_v11  ;;  %v4500_v49 = vpop.f32.mrb[74].mxu1  ;;  %v4973_v62 = vld [vmem:[#allocation3 + $0x6] sm:$0xff] }
 0x508   : > { %v4502_v47 = vpop.f32.mrb[75].mxu1  ;;  %v4855_v51 = vld [vmem:[#allocation3 + $0x2] sm:$0xff]  ;;  %v5002_v41 = vmax.f32 %v4944_v63, %v4973_v62 }
 0x509   : > { %v10228_v60 = vadd.f32 %v10218_v21, %v4699_v58  ;;  %v4700_v0 = vmax.f32 %v4500_v49, %v4502_v47  ;;  %v10237_v26 = vmax.f32 %v4764_v29, %v4855_v51  ;;  %v5421_v45 = vld [vmem:[#allocation3 + $0x8] sm:$0xff]  ;;  %v8590_v51 = vld [vmem:[%s10952_s5 + $0x18] sm:$0xff]  }
 0x50b   : > { %v4768_v48 = vmax.f32 %v10228_v60, 0.0  ;;  %v10232_v40 = vadd.f32 %v10218_v21, %v4700_v0 }
 0x50c   : > { %v4945_v46 = vld [vmem:[#allocation3 + $0xc] sm:$0xff] }
 0x50d   : > { %v4974_v22 = vld [vmem:[#allocation3 + $0xe] sm:$0xff]  ;;  %4799 = vst [vmem:[#allocation3 + $0x20] sm:$0xff] %v4768_v48  ;;  %v4769_v27 = vmax.f32 %v10232_v40, 0.0  ;;  %v4506_v50 = vpop.f32.mrb[76].mxu1 }
 0x50e   : > { %v4856_v37 = vld [vmem:[#allocation3 + $0xa] sm:$0xff]  ;;  %v5003_v38 = vmax.f32 %v4945_v46, %v4974_v22  ;;  %v4508_v30 = vpop.f32.mrb[77].mxu1  ;;  %v4857_v2 = vld [vmem:[#allocation3 + $0x12] sm:$0xff] }
 0x50f   : > { %v10239_v5 = vmax.f32 %v4765_v28, %v4856_v37  ;;  %4800 = vst [vmem:[#allocation3 + $0x28] sm:$0xff] %v4769_v27  ;;  %v4701_v17 = vmax.f32 %v4506_v50, %v4508_v30  ;;  %v4510_v52 = vpop.f32.mrb[78].mxu1  ;;  %v5422_v56 = vld [vmem:[#allocation3 + $0x10] sm:$0xff]  ;;  %v5479_v43 = vmax.f32 %v5421_v45, %v4856_v37  ;;  %v10266_v15 = vmax.f32 %v4766_v31, %v4857_v2  ;;  %v5423_v1 = vld [vmem:[#allocation3 + $0x18] sm:$0xff] }
 0x510   : > { %v5031_v59 = vpack.c.bf16 %v5003_v38, %v5002_v41  ;;  %v4512_v44 = vpop.f32.mrb[79].mxu1  ;;  %v5480_v24 = vmax.f32 %v5422_v56, %v4857_v2  ;;  %v4946_v19 = vld [vmem:[#allocation3 + $0x14] sm:$0xff] }
 0x511   : > { %v4913_v6 = vpack.c.bf16 %v10239_v5, %v10237_v26  ;;  %v10249_v36 = vadd.f32 %v10218_v21, %v4701_v17  ;;  %v4702_v39 = vmax.f32 %v4510_v52, %v4512_v44  ;;  %v4975_v3 = vld [vmem:[#allocation3 + $0x16] sm:$0xff]  ;;  %v8591_v44 = vld [vmem:[%s10952_s5 + $0x20] sm:$0xff]  }
 0x512   : > { %7288 = vmatmul.mubr.bf16.vlgmr.msra.gmra.mrb[64].mxu0 %v5031_v59  ;;  %v10256_v42 = vpack.c.bf16 %v5480_v24, %v5479_v43  ;;  %v5004_v61 = vmax.f32 %v4946_v19, %v4975_v3  ;;  %v8589_v28 = vld [vmem:[%s10952_s5 + $0x10] sm:$0xff]   ;;  %v8598_v26 = vld [vmem:[%s10952_s5 + $0x98] sm:$0xff]   ;;  %v8599_v5 = vld [vmem:[%s10952_s5 + $0xa0] sm:$0xff]  }
 0x513   : > { %7348 = vmatpush3.bf16.msra.mxu0 %v8587_v57  ;;  %7291 = vmatprep.mubr.msk.bf16.mxu0 %vm8699_vm1, %v8698_v20  ;;  %v4770_v13 = vmax.f32 %v10249_v36, 0.0  ;;  %v10260_v4 = vadd.f32 %v10218_v21, %v4702_v39  ;;  %v6062_v54 = vld [vmem:[#allocation3 + $0x12] sm:$0xff] }
 0x514   : > { %7349 = vmatprep.subr.bf16.mxu0 %v8698_v20  ;;  %v4947_v14 = vld [vmem:[#allocation3 + $0x1c] sm:$0xff]  ;;  %v6091_v63 = vmax.f32 %v5422_v56, %v6062_v54 }
 0x515   : > { %v4976_v12 = vld [vmem:[#allocation3 + $0x1e] sm:$0xff]  ;;  %4801 = vst [vmem:[#allocation3 + $0x30] sm:$0xff] %v4770_v13  ;;  %v4771_v53 = vmax.f32 %v10260_v4, 0.0  ;;  %v4516_v8 = vpop.f32.mrb[80].mxu1 }
 0x516   : > { %v4858_v16 = vld [vmem:[#allocation3 + $0x1a] sm:$0xff]  ;;  %v5005_v10 = vmax.f32 %v4947_v14, %v4976_v12  ;;  %v4518_v55 = vpop.f32.mrb[81].mxu1  ;;  %v4859_v7 = vld [vmem:[#allocation3 + $0x22] sm:$0xff] }
 0x517   : > { %v10268_v29 = vmax.f32 %v4767_v18, %v4858_v16  ;;  %7350 = vmatpush3.bf16.msra.mxu0 %v8588_v33  ;;  %4802 = vst [vmem:[#allocation3 + $0x38] sm:$0xff] %v4771_v53  ;;  %v4703_v25 = vmax.f32 %v4516_v8, %v4518_v55  ;;  %v4520_v35 = vpop.f32.mrb[82].mxu1  ;;  %v5424_v31 = vld [vmem:[#allocation3 + $0x20] sm:$0xff]  ;;  %v5481_v18 = vmax.f32 %v5423_v1, %v4858_v16  ;;  %v5425_v40 = vld [vmem:[#allocation3 + $0x28] sm:$0xff] }
 0x518   : > { %v5032_v32 = vpack.c.bf16 %v5005_v10, %v5004_v61  ;;  %7351 = vmatprep.subr.bf16.mxu0 %v8698_v20  ;;  %v4522_v34 = vpop.f32.mrb[83].mxu1  ;;  %v5482_v9 = vmax.f32 %v5424_v31, %v4859_v7  ;;  %v6063_v11 = vld [vmem:[#allocation3 + $0x1a] sm:$0xff]  ;;  %v4948_v47 = vld [vmem:[#allocation3 + $0x24] sm:$0xff]  ;;  %v10300_v59 = vmax.f32 %v4768_v48, %v4859_v7 }
 0x519   : > { %v4914_v23 = vpack.c.bf16 %v10268_v29, %v10266_v15  ;;  %v10279_v58 = vadd.f32 %v10218_v21, %v4703_v25  ;;  %v4704_v49 = vmax.f32 %v4520_v35, %v4522_v34  ;;  %v4977_v0 = vld [vmem:[#allocation3 + $0x26] sm:$0xff]  ;;  %v6092_v62 = vmax.f32 %v5423_v1, %v6063_v11  ;;  %v8601_v29 = vld [vmem:[%s10952_s5 + $0xb0] sm:$0xff]  }
 0x51a   : > { %7292 = vmatmul.mubr.bf16.gmra.mrb[68].mxu0 %v5032_v32  ;;  %v10286_v46 = vpack.c.bf16 %v5482_v9, %v5481_v18  ;;  %v5006_v30 = vmax.f32 %v4948_v47, %v4977_v0  ;;  %v6064_v24 = vld [vmem:[#allocation3 + $0x22] sm:$0xff] }
 0x51b   : > { %7295 = vmatprep.mubr.msk.bf16.mxu0 %vm8699_vm1, %v8698_v20  ;;  %7352 = vmatpush3.bf16.msra.mxu0 %v8589_v28  ;;  %v4772_v22 = vmax.f32 %v10279_v58, 0.0  ;;  %v10290_v41 = vadd.f32 %v10218_v21, %v4704_v49  ;;  %v10293_v37 = vpack.c.bf16 %v6092_v62, %v6091_v63  ;;  %v6093_v55 = vmax.f32 %v5424_v31, %v6064_v24  ;;  %v8592_v7 = vld [vmem:[%s10952_s5 + $0x28] sm:$0xff]   ;;  %v8593_v62 = vld [vmem:[%s10952_s5 + $0x30] sm:$0xff]  }
 0x51c   : > { %7353 = vmatprep.subr.bf16.mxu0 %v8698_v20  ;;  %v4949_v50 = vld [vmem:[#allocation3 + $0x2c] sm:$0xff] }
 0x51d   : > { %v4978_v38 = vld [vmem:[#allocation3 + $0x2e] sm:$0xff]  ;;  %4803 = vst [vmem:[#allocation3 + $0x40] sm:$0xff] %v4772_v22  ;;  %v4773_v2 = vmax.f32 %v10290_v41, 0.0  ;;  %v4526_v17 = vpop.f32.mrb[84].mxu1 }
 0x51e   : > { %v4860_v57 = vld [vmem:[#allocation3 + $0x2a] sm:$0xff]  ;;  %v5007_v52 = vmax.f32 %v4949_v50, %v4978_v38  ;;  %v4528_v56 = vpop.f32.mrb[85].mxu1  ;;  %v4861_v43 = vld [vmem:[#allocation3 + $0x32] sm:$0xff] }
 0x51f   : > { %v10304_v45 = vmax.f32 %v4769_v27, %v4860_v57  ;;  %7354 = vmatpush3.bf16.msra.mxu0 %v8590_v51  ;;  %4804 = vst [vmem:[#allocation3 + $0x48] sm:$0xff] %v4773_v2  ;;  %v4705_v39 = vmax.f32 %v4526_v17, %v4528_v56  ;;  %v4530_v19 = vpop.f32.mrb[86].mxu1  ;;  %v5426_v27 = vld [vmem:[#allocation3 + $0x30] sm:$0xff]  ;;  %v5483_v33 = vmax.f32 %v5425_v40, %v4860_v57  ;;  %v5427_v4 = vld [vmem:[#allocation3 + $0x38] sm:$0xff]  ;;  %v8600_v15 = vld [vmem:[%s10952_s5 + $0xa8] sm:$0xff]  }
 0x520   : > { %v5033_v60 = vpack.c.bf16 %v5007_v52, %v5006_v30  ;;  %7355 = vmatprep.subr.bf16.mxu0 %v8698_v20  ;;  %v4532_v3 = vpop.f32.mrb[87].mxu1  ;;  %v5484_v14 = vmax.f32 %v5426_v27, %v4861_v43  ;;  %v6065_v12 = vld [vmem:[#allocation3 + $0x2a] sm:$0xff]  ;;  %v4950_v8 = vld [vmem:[#allocation3 + $0x34] sm:$0xff]  ;;  %v10336_v47 = vmax.f32 %v4770_v13, %v4861_v43 }
 0x521   : > { %v10315_v61 = vadd.f32 %v10218_v21, %v4705_v39  ;;  %v4706_v16 = vmax.f32 %v4530_v19, %v4532_v3  ;;  %v4979_v10 = vld [vmem:[#allocation3 + $0x36] sm:$0xff]  ;;  %v6094_v28 = vmax.f32 %v5425_v40, %v6065_v12 }
 0x522   : > { %7296 = vmatmul.mubr.bf16.gmra.mrb[72].mxu0 %v5033_v60  ;;  %v10322_v54 = vpack.c.bf16 %v5484_v14, %v5483_v33  ;;  %v5008_v34 = vmax.f32 %v4950_v8, %v4979_v10  ;;  %v6066_v50 = vld [vmem:[#allocation3 + $0x32] sm:$0xff] }
 0x523   : > { %7299 = vmatprep.mubr.msk.bf16.mxu0 %vm8699_vm1, %v8698_v20  ;;  %7356 = vmatpush3.bf16.msra.mxu0 %v8591_v44  ;;  %v4774_v25 = vmax.f32 %v10315_v61, 0.0  ;;  %v10326_v35 = vadd.f32 %v10218_v21, %v4706_v16  ;;  %v10329_v32 = vpack.c.bf16 %v6094_v28, %v6093_v55  ;;  %v6095_v19 = vmax.f32 %v5426_v27, %v6066_v50  ;;  %v8594_v40 = vld [vmem:[%s10952_s5 + $0x38] sm:$0xff]  }
 0x524   : > { %7357 = vmatprep.subr.bf16.mxu0 %v8698_v20  ;;  %v4951_v1 = vld [vmem:[#allocation3 + $0x3c] sm:$0xff] }
 0x525   : > { %v4980_v31 = vld [vmem:[#allocation3 + $0x3e] sm:$0xff]  ;;  %4805 = vst [vmem:[#allocation3 + $0x50] sm:$0xff] %v4774_v25  ;;  %v4775_v9 = vmax.f32 %v10326_v35, 0.0  ;;  %v4536_v11 = vpop.f32.mrb[88].mxu1 }
 0x526   : > { %v4862_v18 = vld [vmem:[#allocation3 + $0x3a] sm:$0xff]  ;;  %v5009_v49 = vmax.f32 %v4951_v1, %v4980_v31  ;;  %v4538_v63 = vpop.f32.mrb[89].mxu1  ;;  %v4863_v51 = vld [vmem:[#allocation3 + $0x42] sm:$0xff] }
 0x527   : > { %v10340_v0 = vmax.f32 %v4771_v53, %v4862_v18  ;;  %7358 = vmatpush3.bf16.msra.mxu0 %v8592_v7  ;;  %4806 = vst [vmem:[#allocation3 + $0x58] sm:$0xff] %v4775_v9  ;;  %v4707_v38 = vmax.f32 %v4536_v11, %v4538_v63  ;;  %v4540_v30 = vpop.f32.mrb[90].mxu1  ;;  %v5428_v53 = vld [vmem:[#allocation3 + $0x40] sm:$0xff]  ;;  %v5485_v17 = vmax.f32 %v5427_v4, %v4862_v18 }
 0x528   : > { %v5034_v36 = vpack.c.bf16 %v5009_v49, %v5008_v34  ;;  %7359 = vmatprep.subr.bf16.mxu0 %v8698_v20  ;;  %v4542_v57 = vpop.f32.mrb[91].mxu1  ;;  %v5486_v52 = vmax.f32 %v5428_v53, %v4863_v51  ;;  %v6067_v56 = vld [vmem:[#allocation3 + $0x3a] sm:$0xff]  ;;  %v4952_v24 = vld [vmem:[#allocation3 + $0x44] sm:$0xff]  ;;  %v10372_v1 = vmax.f32 %v4772_v22, %v4863_v51 }
 0x529   : > { %v10351_v44 = vadd.f32 %v10218_v21, %v4707_v38  ;;  %v4708_v43 = vmax.f32 %v4540_v30, %v4542_v57  ;;  %v4981_v39 = vld [vmem:[#allocation3 + $0x46] sm:$0xff]  ;;  %v6096_v60 = vmax.f32 %v5427_v4, %v6067_v56 }
 0x52a   : > { %7300 = vmatmul.mubr.bf16.gmra.mrb[76].mxu0 %v5034_v36  ;;  %v10358_v3 = vpack.c.bf16 %v5486_v52, %v5485_v17  ;;  %v5010_v8 = vmax.f32 %v4952_v24, %v4981_v39  ;;  %v6068_v11 = vld [vmem:[#allocation3 + $0x42] sm:$0xff] }
 0x52b   : > { %7303 = vmatprep.mubr.msk.bf16.mxu0 %vm8699_vm1, %v8698_v20  ;;  %7360 = vmatpush3.bf16.msra.mxu0 %v8593_v62  ;;  %v4776_v33 = vmax.f32 %v10351_v44, 0.0  ;;  %v10362_v14 = vadd.f32 %v10218_v21, %v4708_v43  ;;  %v10365_v12 = vpack.c.bf16 %v6096_v60, %v6095_v19  ;;  %v5429_v22 = vld [vmem:[#allocation3 + $0x48] sm:$0xff]  ;;  %v6097_v17 = vmax.f32 %v5428_v53, %v6068_v11 }
 0x52c   : > { %7361 = vmatprep.subr.bf16.mxu0 %v8698_v20  ;;  %v4953_v27 = vld [vmem:[#allocation3 + $0x4c] sm:$0xff] }
 0x52d   : > { %v4982_v16 = vld [vmem:[#allocation3 + $0x4e] sm:$0xff]  ;;  %4807 = vst [vmem:[#allocation3 + $0x60] sm:$0xff] %v4776_v33  ;;  %v4777_v55 = vmax.f32 %v10362_v14, 0.0  ;;  %v4546_v28 = vpop.f32.mrb[92].mxu1 }
 0x52e   : > { %v4864_v10 = vld [vmem:[#allocation3 + $0x4a] sm:$0xff]  ;;  %v5011_v7 = vmax.f32 %v4953_v27, %v4982_v16  ;;  %v4548_v34 = vpop.f32.mrb[93].mxu1  ;;  %v4865_v18 = vld [vmem:[#allocation3 + $0x52] sm:$0xff] }
 0x52f   : > { %v10376_v31 = vmax.f32 %v4773_v2, %v4864_v10  ;;  %7362 = vmatpush3.bf16.msra.mxu0 %v8594_v40  ;;  %4808 = vst [vmem:[#allocation3 + $0x68] sm:$0xff] %v4777_v55  ;;  %v4709_v49 = vmax.f32 %v4546_v28, %v4548_v34  ;;  %v4550_v63 = vpop.f32.mrb[94].mxu1  ;;  %v5430_v51 = vld [vmem:[#allocation3 + $0x50] sm:$0xff]  ;;  %v5487_v2 = vmax.f32 %v5429_v22, %v4864_v10  ;;  %v5431_v34 = vld [vmem:[#allocation3 + $0x58] sm:$0xff] }
 0x530   : > { %v5035_v62 = vpack.c.bf16 %v5011_v7, %v5010_v8  ;;  %7423 = vmatprep.subr.bf16.mxu0 %v8698_v20  ;;  %v4552_v41 = vpop.f32.mrb[95].mxu1  ;;  %v5488_v50 = vmax.f32 %v5430_v51, %v4865_v18  ;;  %v6069_v38 = vld [vmem:[#allocation3 + $0x4a] sm:$0xff]  ;;  %v4954_v4 = vld [vmem:[#allocation3 + $0x54] sm:$0xff]  ;;  %v10399_v28 = vmax.f32 %v4774_v25, %v4865_v18 }
 0x531   : > { %v10384_v30 = vadd.f32 %v10218_v21, %v4709_v49  ;;  %v4710_v36 = vmax.f32 %v4550_v63, %v4552_v41  ;;  %v4983_v57 = vld [vmem:[#allocation3 + $0x56] sm:$0xff]  ;;  %v6098_v52 = vmax.f32 %v5429_v22, %v6069_v38 }
 0x532   : > { %7304 = vmatmul.mubr.bf16.gmra.mrb[80].mxu0 %v5035_v62  ;;  %v10388_v56 = vpack.c.bf16 %v5488_v50, %v5487_v2  ;;  %v6070_v19 = vld [vmem:[#allocation3 + $0x52] sm:$0xff]  ;;  %v5012_v27 = vmax.f32 %v4954_v4, %v4983_v57 }
 0x533   : > { %7307 = vmatprep.mubr.msk.bf16.mxu0 %vm8699_vm1, %v8698_v20  ;;  %v4778_v43 = vmax.f32 %v10384_v30, 0.0  ;;  %v10392_v24 = vadd.f32 %v10218_v21, %v4710_v36  ;;  %v10394_v39 = vpack.c.bf16 %v6098_v52, %v6097_v17  ;;  %v6099_v62 = vmax.f32 %v5430_v51, %v6070_v19 }
 0x534   : > { %v4955_v60 = vld [vmem:[#allocation3 + $0x5c] sm:$0xff] }
 0x535   : > { %v4984_v40 = vld [vmem:[#allocation3 + $0x5e] sm:$0xff]  ;;  %4809 = vst [vmem:[#allocation3 + $0x70] sm:$0xff] %v4778_v43  ;;  %v4779_v53 = vmax.f32 %v10392_v24, 0.0  ;;  %v4556_v8 = vpop.f32.mrb[96].mxu1 }
 0x536   : > { %v4866_v16 = vld [vmem:[#allocation3 + $0x5a] sm:$0xff]  ;;  %v5013_v10 = vmax.f32 %v4955_v60, %v4984_v40  ;;  %v4558_v49 = vpop.f32.mrb[97].mxu1  ;;  %v4867_v63 = vld [vmem:[#allocation3 + $0x62] sm:$0xff] }
 0x537   : > { %v10403_v7 = vmax.f32 %v4775_v9, %v4866_v16  ;;  %v6071_v11 = vld [vmem:[#allocation3 + $0x5a] sm:$0xff]  ;;  %4810 = vst [vmem:[#allocation3 + $0x78] sm:$0xff] %v4779_v53  ;;  %v4711_v41 = vmax.f32 %v4556_v8, %v4558_v49  ;;  %v4560_v2 = vpop.f32.mrb[98].mxu1  ;;  %v10411_v35 = vmax.f32 %v4776_v33, %v4867_v63  ;;  %v5489_v9 = vmax.f32 %v5431_v34, %v4866_v16  ;;  %v4956_v30 = vld [vmem:[#allocation3 + $0x64] sm:$0xff] }
 0x538   : > { %v6100_v22 = vmax.f32 %v5431_v34, %v6071_v11  ;;  %v5036_v50 = vpack.c.bf16 %v5013_v10, %v5012_v27  ;;  %v4562_v25 = vpop.f32.mrb[99].mxu1  ;;  %v4985_v36 = vld [vmem:[#allocation3 + $0x66] sm:$0xff] }
 0x539   : > { %v4749_v51 = vadd.f32 %v10218_v21, %v4711_v41  ;;  %v4712_v38 = vmax.f32 %v4560_v2, %v4562_v25  ;;  %v10419_v4 = vpack.c.bf16 %v10411_v35, %v5489_v9  ;;  %v5014_v40 = vmax.f32 %v4956_v30, %v4985_v36 }
 0x53a   : > { %v10413_v18 = vpack.c.bf16 %v6100_v22, %v6099_v62  ;;  %7308 = vmatmul.mubr.bf16.gmra.mrb[84].mxu0 %v5036_v50 }
 0x53b   : > { %7311 = vmatprep.mubr.msk.bf16.mxu0 %vm8699_vm1, %v8698_v20  ;;  %v4780_v57 = vmax.f32 %v4749_v51, 0.0  ;;  %v10422_v44 = vadd.f32 %v10218_v21, %v4712_v38 }
 0x53c   : > { %v4957_v33 = vld [vmem:[#allocation3 + $0x6c] sm:$0xff] }
 0x53d   : > { %v4986_v17 = vld [vmem:[#allocation3 + $0x6e] sm:$0xff]  ;;  %4811 = vst [vmem:[#allocation3 + $0x80] sm:$0xff] %v4780_v57  ;;  %v4781_v19 = vmax.f32 %v10422_v44, 0.0  ;;  %v4566_v60 = vpop.f32.mrb[100].mxu1 }
 0x53e   : > { %v4868_v52 = vld [vmem:[#allocation3 + $0x6a] sm:$0xff]  ;;  %v5015_v27 = vmax.f32 %v4957_v33, %v4986_v17  ;;  %v4568_v8 = vpop.f32.mrb[101].mxu1  ;;  %v4869_v10 = vld [vmem:[#allocation3 + $0x72] sm:$0xff] }
 0x53f   : > { %v10427_v16 = vmax.f32 %v4777_v55, %v4868_v52  ;;  %4812 = vst [vmem:[#allocation3 + $0x88] sm:$0xff] %v4781_v19  ;;  %v4713_v34 = vmax.f32 %v4566_v60, %v4568_v8  ;;  %v4570_v11 = vpop.f32.mrb[102].mxu1  ;;  %v10431_v22 = vmax.f32 %v4778_v43, %v4869_v10  ;;  %v4958_v14 = vld [vmem:[#allocation3 + $0x74] sm:$0xff] }
 0x540   : > { %v5037_v49 = vpack.c.bf16 %v5015_v27, %v5014_v40  ;;  %v4572_v62 = vpop.f32.mrb[103].mxu1  ;;  %v4987_v55 = vld [vmem:[#allocation3 + $0x76] sm:$0xff] }
 0x541   : > { %v4751_v41 = vadd.f32 %v10218_v21, %v4713_v34  ;;  %v4714_v2 = vmax.f32 %v4570_v11, %v4572_v62  ;;  %v5016_v44 = vmax.f32 %v4958_v14, %v4987_v55 }
 0x542   : > { %7312 = vmatmul.mubr.bf16.gmra.mrb[88].mxu0 %v5037_v49 }
 0x543   : > { %7315 = vmatprep.mubr.msk.bf16.mxu0 %vm8699_vm1, %v8698_v20  ;;  %v4782_v25 = vmax.f32 %v4751_v41, 0.0  ;;  %v10439_v9 = vadd.f32 %v10218_v21, %v4714_v2 }
 0x544   : > { %v4959_v51 = vld [vmem:[#allocation3 + $0x7c] sm:$0xff] }
 0x545   : > { %v4988_v38 = vld [vmem:[#allocation3 + $0x7e] sm:$0xff]  ;;  %4813 = vst [vmem:[#allocation3 + $0x90] sm:$0xff] %v4782_v25  ;;  %v4783_v30 = vmax.f32 %v10439_v9, 0.0  ;;  %v4576_v36 = vpop.f32.mrb[104].mxu1 }
 0x546   : > { %v4870_v43 = vld [vmem:[#allocation3 + $0x7a] sm:$0xff]  ;;  %v5017_v33 = vmax.f32 %v4959_v51, %v4988_v38  ;;  %v4578_v52 = vpop.f32.mrb[105].mxu1  ;;  %v4871_v60 = vld [vmem:[#allocation3 + $0x82] sm:$0xff] }
 0x547   : > { %v10444_v17 = vmax.f32 %v4779_v53, %v4870_v43  ;;  %4814 = vst [vmem:[#allocation3 + $0x98] sm:$0xff] %v4783_v30  ;;  %v4715_v40 = vmax.f32 %v4576_v36, %v4578_v52  ;;  %v4580_v27 = vpop.f32.mrb[106].mxu1  ;;  %v10448_v11 = vmax.f32 %v4780_v57, %v4871_v60  ;;  %v4960_v24 = vld [vmem:[#allocation3 + $0x84] sm:$0xff] }
 0x548   : > { %v5038_v8 = vpack.c.bf16 %v5017_v33, %v5016_v44  ;;  %v4582_v34 = vpop.f32.mrb[107].mxu1  ;;  %v4989_v53 = vld [vmem:[#allocation3 + $0x86] sm:$0xff] }
 0x549   : > { %v4753_v49 = vadd.f32 %v10218_v21, %v4715_v40  ;;  %v4716_v62 = vmax.f32 %v4580_v27, %v4582_v34  ;;  %v5018_v43 = vmax.f32 %v4960_v24, %v4989_v53 }
 0x54a   : > { %7316 = vmatmul.mubr.bf16.gmra.mrb[92].mxu0 %v5038_v8 }
 0x54b   : > { %7319 = vmatprep.mubr.msk.bf16.mxu0 %vm8699_vm1, %v8698_v20  ;;  %v4784_v2 = vmax.f32 %v4753_v49, 0.0  ;;  %v10456_v14 = vadd.f32 %v10218_v21, %v4716_v62 }
 0x54c   : > { %v4961_v55 = vld [vmem:[#allocation3 + $0x8c] sm:$0xff] }
 0x54d   : > { %v4990_v9 = vld [vmem:[#allocation3 + $0x8e] sm:$0xff]  ;;  %4815 = vst [vmem:[#allocation3 + $0xa0] sm:$0xff] %v4784_v2  ;;  %v4785_v51 = vmax.f32 %v10456_v14, 0.0  ;;  %v4586_v38 = vpop.f32.mrb[108].mxu1 }
 0x54e   : > { %v4872_v57 = vld [vmem:[#allocation3 + $0x8a] sm:$0xff]  ;;  %v5019_v36 = vmax.f32 %v4961_v55, %v4990_v9  ;;  %v4588_v33 = vpop.f32.mrb[109].mxu1  ;;  %v4873_v52 = vld [vmem:[#allocation3 + $0x92] sm:$0xff] }
 0x54f   : > { %v10459_v44 = vmax.f32 %v4781_v19, %v4872_v57  ;;  %4816 = vst [vmem:[#allocation3 + $0xa8] sm:$0xff] %v4785_v51  ;;  %v4717_v60 = vmax.f32 %v4586_v38, %v4588_v33  ;;  %v4590_v40 = vpop.f32.mrb[110].mxu1  ;;  %v10463_v49 = vmax.f32 %v4782_v25, %v4873_v52  ;;  %v4962_v19 = vld [vmem:[#allocation3 + $0x94] sm:$0xff] }
 0x550   : > { %v5039_v27 = vpack.c.bf16 %v5019_v36, %v5018_v43  ;;  %v4592_v34 = vpop.f32.mrb[111].mxu1  ;;  %v4991_v24 = vld [vmem:[#allocation3 + $0x96] sm:$0xff] }
 0x551   : > { %v4755_v62 = vadd.f32 %v10218_v21, %v4717_v60  ;;  %v4718_v14 = vmax.f32 %v4590_v40, %v4592_v34  ;;  %v5020_v33 = vmax.f32 %v4962_v19, %v4991_v24 }
 0x552   : > { %7320 = vmatmul.mubr.bf16.gmra.mrb[96].mxu0 %v5039_v27 }
 0x553   : > { %7323 = vmatprep.mubr.msk.bf16.mxu0 %vm8699_vm1, %v8698_v20  ;;  %v4786_v55 = vmax.f32 %v4755_v62, 0.0  ;;  %v10471_v9 = vadd.f32 %v10218_v21, %v4718_v14 }
 0x554   : > { %v4963_v57 = vld [vmem:[#allocation3 + $0x9c] sm:$0xff] }
 0x555   : > { %v4992_v38 = vld [vmem:[#allocation3 + $0x9e] sm:$0xff]  ;;  %4817 = vst [vmem:[#allocation3 + $0xb0] sm:$0xff] %v4786_v55  ;;  %v4787_v43 = vmax.f32 %v10471_v9, 0.0  ;;  %v4596_v36 = vpop.f32.mrb[112].mxu1 }
 0x556   : > { %v4874_v25 = vld [vmem:[#allocation3 + $0x9a] sm:$0xff]  ;;  %v5021_v52 = vmax.f32 %v4963_v57, %v4992_v38  ;;  %v4598_v40 = vpop.f32.mrb[113].mxu1  ;;  %v4875_v27 = vld [vmem:[#allocation3 + $0xa2] sm:$0xff] }
 0x557   : > { %v10474_v60 = vmax.f32 %v4783_v30, %v4874_v25  ;;  %4818 = vst [vmem:[#allocation3 + $0xb8] sm:$0xff] %v4787_v43  ;;  %v4719_v34 = vmax.f32 %v4596_v36, %v4598_v40  ;;  %v4600_v53 = vpop.f32.mrb[114].mxu1  ;;  %v10478_v50 = vmax.f32 %v4784_v2, %v4875_v27  ;;  %v4964_v30 = vld [vmem:[#allocation3 + $0xa4] sm:$0xff] }
 0x558   : > { %v5040_v62 = vpack.c.bf16 %v5021_v52, %v5020_v33  ;;  %v4602_v41 = vpop.f32.mrb[115].mxu1  ;;  %v4993_v19 = vld [vmem:[#allocation3 + $0xa6] sm:$0xff] }
 0x559   : > { %v4757_v8 = vadd.f32 %v10218_v21, %v4719_v34  ;;  %v4720_v9 = vmax.f32 %v4600_v53, %v4602_v41  ;;  %v5022_v53 = vmax.f32 %v4964_v30, %v4993_v19 }
 0x55a   : > { %7324 = vmatmul.mubr.bf16.gmra.mrb[100].mxu0 %v5040_v62 }
 0x55b   : > { %7327 = vmatprep.mubr.msk.bf16.mxu0 %vm8699_vm1, %v8698_v20  ;;  %v4788_v57 = vmax.f32 %v4757_v8, 0.0  ;;  %v10486_v38 = vadd.f32 %v10218_v21, %v4720_v9 }
 0x55c   : > { %v4965_v25 = vld [vmem:[#allocation3 + $0xac] sm:$0xff] }
 0x55d   : > { %v4994_v36 = vld [vmem:[#allocation3 + $0xae] sm:$0xff]  ;;  %4819 = vst [vmem:[#allocation3 + $0xc0] sm:$0xff] %v4788_v57  ;;  %v4789_v33 = vmax.f32 %v10486_v38, 0.0  ;;  %v4606_v41 = vpop.f32.mrb[116].mxu1 }
 0x55e   : > { %v4876_v2 = vld [vmem:[#allocation3 + $0xaa] sm:$0xff]  ;;  %v5023_v52 = vmax.f32 %v4965_v25, %v4994_v36  ;;  %v4608_v27 = vpop.f32.mrb[117].mxu1  ;;  %v4877_v34 = vld [vmem:[#allocation3 + $0xb2] sm:$0xff] }
 0x55f   : > { %v10489_v40 = vmax.f32 %v4785_v51, %v4876_v2  ;;  %4820 = vst [vmem:[#allocation3 + $0xc8] sm:$0xff] %v4789_v33  ;;  %v4721_v62 = vmax.f32 %v4606_v41, %v4608_v27  ;;  %v4610_v24 = vpop.f32.mrb[118].mxu1  ;;  %v10493_v10 = vmax.f32 %v4786_v55, %v4877_v34  ;;  %v4966_v51 = vld [vmem:[#allocation3 + $0xb4] sm:$0xff] }
 0x560   : > { %v5041_v8 = vpack.c.bf16 %v5023_v52, %v5022_v53  ;;  %v4612_v14 = vpop.f32.mrb[119].mxu1  ;;  %v4995_v30 = vld [vmem:[#allocation3 + $0xb6] sm:$0xff] }
 0x561   : > { %v4759_v63 = vadd.f32 %v10218_v21, %v4721_v62  ;;  %v4722_v38 = vmax.f32 %v4610_v24, %v4612_v14  ;;  %v5024_v27 = vmax.f32 %v4966_v51, %v4995_v30 }
 0x562   : > { %7328 = vmatmul.mubr.bf16.gmra.mrb[104].mxu0 %v5041_v8 }
 0x563   : > { %7331 = vmatprep.mubr.msk.bf16.mxu0 %vm8699_vm1, %v8698_v20  ;;  %v4790_v25 = vmax.f32 %v4759_v63, 0.0  ;;  %v4760_v36 = vadd.f32 %v10218_v21, %v4722_v38 }
 0x564   : > { %v4967_v2 = vld [vmem:[#allocation3 + $0xbc] sm:$0xff] }
 0x565   : > { %v4996_v41 = vld [vmem:[#allocation3 + $0xbe] sm:$0xff]  ;;  %4821 = vst [vmem:[#allocation3 + $0xd0] sm:$0xff] %v4790_v25  ;;  %v4791_v55 = vmax.f32 %v4760_v36, 0.0  ;;  %v4616_v52 = vpop.f32.mrb[120].mxu1 }
 0x566   : > { %v4878_v53 = vld [vmem:[#allocation3 + $0xba] sm:$0xff]  ;;  %v5025_v14 = vmax.f32 %v4967_v2, %v4996_v41  ;;  %v4618_v34 = vpop.f32.mrb[121].mxu1  ;;  %v4879_v62 = vld [vmem:[#allocation3 + $0xc2] sm:$0xff] }
 0x567   : > { %v10501_v24 = vmax.f32 %v4787_v43, %v4878_v53  ;;  %4822 = vst [vmem:[#allocation3 + $0xd8] sm:$0xff] %v4791_v55  ;;  %v4723_v8 = vmax.f32 %v4616_v52, %v4618_v34  ;;  %v4620_v9 = vpop.f32.mrb[122].mxu1  ;;  %v10505_v19 = vmax.f32 %v4788_v57, %v4879_v62  ;;  %v4968_v43 = vld [vmem:[#allocation3 + $0xc4] sm:$0xff] }
 0x568   : > { %v5042_v61 = vpack.c.bf16 %v5025_v14, %v5024_v27  ;;  %v4622_v38 = vpop.f32.mrb[123].mxu1  ;;  %v4997_v51 = vld [vmem:[#allocation3 + $0xc6] sm:$0xff] }
 0x569   : > { %v4761_v58 = vadd.f32 %v10218_v21, %v4723_v8  ;;  %v4724_v36 = vmax.f32 %v4620_v9, %v4622_v38  ;;  %v5026_v34 = vmax.f32 %v4968_v43, %v4997_v51 }
 0x56a   : > { %7332 = vmatmul.mubr.bf16.gmra.mrb[108].mxu0 %v5042_v61 }
 0x56b   : > { %7335 = vmatprep.mubr.msk.bf16.mxu0 %vm8699_vm1, %v8698_v20  ;;  %v4792_v2 = vmax.f32 %v4761_v58, 0.0  ;;  %v4762_v41 = vadd.f32 %v10218_v21, %v4724_v36 }
 0x56c   : > { %v4969_v53 = vld [vmem:[#allocation3 + $0xcc] sm:$0xff] }
 0x56d   : > { %v4998_v52 = vld [vmem:[#allocation3 + $0xce] sm:$0xff]  ;;  %4823 = vst [vmem:[#allocation3 + $0xe0] sm:$0xff] %v4792_v2  ;;  %v4793_v57 = vmax.f32 %v4762_v41, 0.0  ;;  %v4626_v14 = vpop.f32.mrb[124].mxu1 }
 0x56e   : > { %v4880_v27 = vld [vmem:[#allocation3 + $0xca] sm:$0xff]  ;;  %v5027_v9 = vmax.f32 %v4969_v53, %v4998_v52  ;;  %v4628_v62 = vpop.f32.mrb[125].mxu1  ;;  %v4881_v8 = vld [vmem:[#allocation3 + $0xd2] sm:$0xff] }
 0x56f   : > { %v10513_v61 = vmax.f32 %v4789_v33, %v4880_v27  ;;  %4824 = vst [vmem:[#allocation3 + $0xe8] sm:$0xff] %v4793_v57  ;;  %v4725_v38 = vmax.f32 %v4626_v14, %v4628_v62  ;;  %v4630_v63 = vpop.f32.mrb[126].mxu1  ;;  %v10517_v30 = vmax.f32 %v4790_v25, %v4881_v8  ;;  %v4970_v33 = vld [vmem:[#allocation3 + $0xd4] sm:$0xff] }
 0x570   : > { %v5043_v13 = vpack.c.bf16 %v5027_v9, %v5026_v34  ;;  %v4631_v36 = vpop.f32.mrb[127].mxu1  ;;  %v4999_v43 = vld [vmem:[#allocation3 + $0xd6] sm:$0xff] }
 0x571   : > { %v4925_v58 = vpack.c.bf16 %v10513_v61, %v10505_v19  ;;  %v4763_v48 = vadd.f32 %v10218_v21, %v4725_v38  ;;  %v5520_v51 = vpack.c.bf16 %v10517_v30, %v10513_v61  ;;  %v5028_v52 = vmax.f32 %v4970_v33, %v4999_v43  ;;  %v8596_v38 = vld [vmem:[%s10952_s5 + $0x88] sm:$0xff]   ;;  %v8597_v36 = vld [vmem:[%s10952_s5 + $0x90] sm:$0xff]  }
 0x572   : > { %7336 = vmatmul.mubr.bf16.gmra.mrb[112].mxu0 %v5043_v13  ;;  %v5757_v61 = vld [vmem:[#allocation3 + $0x16] sm:$0xff] }
 0x573   : > { %7339 = vmatprep.mubr.msk.bf16.mxu0 %vm8699_vm1, %v8698_v20  ;;  %v4794_v41 = vmax.f32 %v4763_v48, 0.0 }
 0x574   : > { %v4971_v63 = vld [vmem:[#allocation3 + $0xdc] sm:$0xff]  ;;  %v4972_v34 = vld [vmem:[#allocation3 + $0xe4] sm:$0x1]  ;;  %v5001_v9 = vld [vmem:[#allocation3 + $0xe6] sm:$0x1] }
 0x575   : > { %v5000_v53 = vld [vmem:[#allocation3 + $0xde] sm:$0xff]  ;;  %4825 = vst [vmem:[#allocation3 + $0xf0] sm:$0x7] %v4794_v41 }
 0x576   : > { %v5029_v27 = vmax.f32 %v4971_v63, %v5000_v53  ;;  %v4882_v57 = vld [vmem:[#allocation3 + $0xda] sm:$0xff]  ;;  %v10526_v14 = vld [vmem:[#allocation3 + $0xe2] sm:$0xff] }
 0x577   : > { %v10524_v25 = vmax.f32 %v4791_v55, %v4882_v57  ;;  %v10529_v13 = vmax.f32 %v4792_v2, %v10526_v14  ;;  %v5030_v55 = vmax.f32 %v4972_v34, %v5001_v9  ;;  %v8595_v2 = vld [vmem:[%s10952_s5 + $0x80] sm:$0xff]  }
 0x578   : > { %v5044_v21 = vpack.c.bf16 %v5029_v27, %v5028_v52  ;;  %v4854_v53 = vld [vmem:[#allocation3 + $0xe0] sm:$0x1]  ;;  %v4883_v52 = vld [vmem:[#allocation3 + $0xe2] sm:$0x1] }
 0x579   : > { %v4926_v62 = vpack.c.bf16 %v10524_v25, %v10517_v30  ;;  %v5521_v48 = vpack.c.bf16 %v10529_v13, %v10524_v25  ;;  %v5045_v8 = vpack.c.bf16 %v5030_v55, %v5030_v55  ;;  %v4912_v27 = vmax.f32 %v4854_v53, %v4883_v52  ;;  %v8603_v9 = vld [vmem:[%s10952_s5 + $0xc0] sm:$0xff]   ;;  %v5728_v30 = vld [vmem:[#allocation3 + $0x14] sm:$0xff] }
 0x57a   : > { %7340 = vmatmul.mubr.bf16.gmra.mrb[116].mxu0 %v5044_v21  ;;  %v5786_v53 = vmax.f32 %v5728_v30, %v5757_v61  ;;  %v8611_v25 = vld [vmem:[%s10952_s5 + $0x100] sm:$0xff]  }
 0x57b   : > { %7343 = vmatprep.mubr.msk.bf16.mxu0 %vm8699_vm1, %v8698_v20  ;;  %v4927_v57 = vpack.c.bf16 %v4912_v27, %v4912_v27  ;;  %v5737_v30 = vld [vmem:[#allocation3 + $0x5c] sm:$0xff] }
 0x57c   : > { %v5766_v61 = vld [vmem:[#allocation3 + $0x5e] sm:$0xff] }
 0x582   : > { %7344 = vmatmul.mubr.bf16.gmra.mrb[120].mxu0 %v5045_v8  ;;  %v8605_v8 = vld [vmem:[%s10952_s5 + $0xd0] sm:$0xff]  }
 0x583   : > { %7363 = vmatprep.mubr.msk.bf16.mxu0 %vm8699_vm1, %v8698_v20 }
 0x58a   : > { %7364 = vmatmul.mubr.bf16.vlgmr.msra.gmra.mrb[64].mxu0 %v4913_v6  ;;  %v11002_v6 = vpack.c.bf16 %v10304_v45, %v10300_v59  ;;  %v8602_v59 = vld [vmem:[%s10952_s5 + $0xb8] sm:$0xff]   ;;  %v11004_v45 = vpack.c.bf16 %v10376_v31, %v10372_v1  ;;  %v11007_v1 = vpack.c.bf16 %v10444_v17, %v10431_v22  ;;  %v11008_v31 = vpack.c.bf16 %v10459_v44, %v10448_v11 }
 0x58b   : > { %7424 = vmatpush3.bf16.msra.mxu0 %v8595_v2  ;;  %7367 = vmatprep.mubr.msk.bf16.mxu0 %vm8699_vm1, %v8698_v20 }
 0x58c   : > { %7425 = vmatprep.subr.bf16.mxu0 %v8698_v20 }
 0x58f   : > { %7426 = vmatpush3.bf16.msra.mxu0 %v8596_v38 }
 0x590   : > { %7427 = vmatprep.subr.bf16.mxu0 %v8698_v20 }
 0x592   : > { %7368 = vmatmul.mubr.bf16.gmra.mrb[124].mxu0 %v4914_v23  ;;  %v11003_v23 = vpack.c.bf16 %v10340_v0, %v10336_v47  ;;  %v11005_v47 = vpack.c.bf16 %v10403_v7, %v10399_v28  ;;  %v11006_v0 = vpack.c.bf16 %v10427_v16, %v10411_v35  ;;  %v11009_v28 = vpack.c.bf16 %v10474_v60, %v10463_v49 }
 0x593   : > { %7371 = vmatprep.mubr.msk.bf16.mxu0 %vm8699_vm1, %v8698_v20  ;;  %7428 = vmatpush3.bf16.msra.mxu0 %v8597_v36  ;;  %v11010_v7 = vpack.c.bf16 %v10489_v40, %v10478_v50  ;;  %v11011_v35 = vpack.c.bf16 %v10501_v24, %v10493_v10 }
 0x594   : > { %7429 = vmatprep.subr.bf16.mxu0 %v8698_v20 }
 0x597   : > { %7430 = vmatpush3.bf16.msra.mxu0 %v8598_v26  ;;  %v8607_v26 = vld [vmem:[%s10952_s5 + $0xe0] sm:$0xff]  }
 0x598   : > { %7431 = vmatprep.subr.bf16.mxu0 %v8698_v20 }
 0x59a   : > { %7372 = vmatmul.mubr.bf16.gmra.mrb[72].mxu0 %v11002_v6  ;;  %v8609_v6 = vld [vmem:[%s10952_s5 + $0xf0] sm:$0xff]  }
 0x59b   : > { %7375 = vmatprep.mubr.msk.bf16.mxu0 %vm8699_vm1, %v8698_v20  ;;  %7432 = vmatpush3.bf16.msra.mxu0 %v8599_v5 }
 0x59c   : > { %7433 = vmatprep.subr.bf16.mxu0 %v8698_v20 }
 0x59f   : > { %7434 = vmatpush3.bf16.msra.mxu0 %v8600_v15 }
 0x5a0   : > { %7435 = vmatprep.subr.bf16.mxu0 %v8698_v20 }
 0x5a2   : > { %7376 = vmatmul.mubr.bf16.gmra.mrb[128].mxu0 %v11003_v23 }
 0x5a3   : > { %7379 = vmatprep.mubr.msk.bf16.mxu0 %vm8699_vm1, %v8698_v20  ;;  %7436 = vmatpush3.bf16.msra.mxu0 %v8601_v29 }
 0x5a4   : > { %7437 = vmatprep.subr.bf16.mxu0 %v8698_v20 }
 0x5a7   : > { %7438 = vmatpush3.bf16.msra.mxu0 %v8602_v59 }
 0x5a8   : > { %7499 = vmatprep.subr.bf16.mxu0 %v8698_v20 }
 0x5aa   : > { %7380 = vmatmul.mubr.bf16.gmra.mrb[80].mxu0 %v11004_v45 }
 0x5ab   : > { %7383 = vmatprep.mubr.msk.bf16.mxu0 %vm8699_vm1, %v8698_v20 }
 0x5b2   : > { %7384 = vmatmul.mubr.bf16.gmra.mrb[132].mxu0 %v11005_v47 }
 0x5b3   : > { %7387 = vmatprep.mubr.msk.bf16.mxu0 %vm8699_vm1, %v8698_v20 }
 0x5ba   : > { %7388 = vmatmul.mubr.bf16.gmra.mrb[88].mxu0 %v11006_v0 }
 0x5bb   : > { %7391 = vmatprep.mubr.msk.bf16.mxu0 %vm8699_vm1, %v8698_v20 }
 0x5c2   : > { %7392 = vmatmul.mubr.bf16.gmra.mrb[136].mxu0 %v11007_v1  ;;  %v11012_v1 = vpack.c.bf16 %v10431_v22, %v10427_v16  ;;  %v11015_v16 = vpack.c.bf16 %v10478_v50, %v10474_v60 }
 0x5c3   : > { %7395 = vmatprep.mubr.msk.bf16.mxu0 %vm8699_vm1, %v8698_v20 }
 0x5ca   : > { %7396 = vmatmul.mubr.bf16.gmra.mrb[96].mxu0 %v11008_v31 }
 0x5cb   : > { %7399 = vmatprep.mubr.msk.bf16.mxu0 %vm8699_vm1, %v8698_v20 }
 0x5d2   : > { %7400 = vmatmul.mubr.bf16.gmra.mrb[140].mxu0 %v11009_v28 }
 0x5d3   : > { %7403 = vmatprep.mubr.msk.bf16.mxu0 %vm8699_vm1, %v8698_v20 }
 0x5da   : > { %7404 = vmatmul.mubr.bf16.gmra.mrb[104].mxu0 %v11010_v7 }
 0x5db   : > { %7407 = vmatprep.mubr.msk.bf16.mxu0 %vm8699_vm1, %v8698_v20 }
 0x5e2   : > { %7408 = vmatmul.mubr.bf16.gmra.mrb[144].mxu0 %v11011_v35  ;;  %v11014_v35 = vpack.c.bf16 %v10463_v49, %v10459_v44  ;;  %v11017_v44 = vpack.c.bf16 %v10505_v19, %v10501_v24 }
 0x5e3   : > { %7411 = vmatprep.mubr.msk.bf16.mxu0 %vm8699_vm1, %v8698_v20 }
 0x5ea   : > { %7412 = vmatmul.mubr.bf16.gmra.mrb[112].mxu0 %v4925_v58 }
 0x5eb   : > { %7415 = vmatprep.mubr.msk.bf16.mxu0 %vm8699_vm1, %v8698_v20 }
 0x5ed   : > { %v5152_v33 = vpop.f32.mrb[68].mxu0 }
 0x5ee   : > { %v7293_v43 = vpop.f32.mrb[69].mxu0 }
 0x5ef   : > { %v5154_v41 = vpop.f32.mrb[70].mxu0  ;;  %v11016_v43 = vpack.c.bf16 %v10493_v10, %v10489_v40  ;;  %v5449_v40 = vld [vmem:[#allocation3 + $0xe8] sm:$0x1] }
 0x5f0   : > { %v7294_v63 = vpop.f32.mrb[71].mxu0  ;;  %v5478_v41 = vld [vmem:[#allocation3 + $0xea] sm:$0x1] }
 0x5f1   : > { %v5507_v19 = vmax.f32 %v5449_v40, %v5478_v41  ;;  %v5756_v63 = vld [vmem:[#allocation3 + $0xe] sm:$0xff] }
 0x5f2   : > { %7416 = vmatmul.mubr.bf16.gmra.mrb[148].mxu0 %v4926_v62  ;;  %v8604_v62 = vld [vmem:[%s10952_s5 + $0xc8] sm:$0xff]  }
 0x5f3   : > { %7419 = vmatprep.mubr.msk.bf16.mxu0 %vm8699_vm1, %v8698_v20  ;;  %v5522_v24 = vpack.c.bf16 %v5507_v19, %v5507_v19  ;;  %v5738_v19 = vld [vmem:[#allocation3 + $0x64] sm:$0xff] }
 0x5fa   : > { %7420 = vmatmul.mubr.bf16.gmra.mrb[120].mxu0 %v4927_v57 }
 0x5fb   : > { %7439 = vmatprep.mubr.msk.bf16.mxu0 %vm8699_vm1, %v8698_v20 }
 0x5fd   : > { %v5165_v58 = vpop.f32.mrb[76].mxu0 }
 0x5fe   : > { %v7301_v21 = vpop.f32.mrb[77].mxu0 }
 0x5ff   : > { %v5167_v34 = vpop.f32.mrb[78].mxu0  ;;  %v5730_v21 = vld [vmem:[#allocation3 + $0x24] sm:$0xff] }
 0x600   : > { %v7302_v55 = vpop.f32.mrb[79].mxu0  ;;  %v5759_v34 = vld [vmem:[#allocation3 + $0x26] sm:$0xff] }
 0x601   : > { %v5758_v55 = vld [vmem:[#allocation3 + $0x1e] sm:$0xff] }
 0x602   : > { %7440 = vmatmul.mubr.bf16.vlgmr.msra.gmra.mrb[64].mxu0 %v10256_v42  ;;  %v8606_v42 = vld [vmem:[%s10952_s5 + $0xd8] sm:$0xff]  }
 0x603   : > { %7500 = vmatpush3.bf16.msra.mxu0 %v8603_v9  ;;  %7443 = vmatprep.mubr.msk.bf16.mxu0 %vm8699_vm1, %v8698_v20  ;;  %v5729_v9 = vld [vmem:[#allocation3 + $0x1c] sm:$0xff] }
 0x604   : > { %7501 = vmatprep.subr.bf16.mxu0 %v8698_v20 }
 0x607   : > { %7502 = vmatpush3.bf16.msra.mxu0 %v8604_v62  ;;  %v8612_v62 = vld [vmem:[%s10952_s5 + $0x108] sm:$0xff]  }
 0x608   : > { %7503 = vmatprep.subr.bf16.mxu0 %v8698_v20 }
 0x60a   : > { %7444 = vmatmul.mubr.bf16.gmra.mrb[152].mxu0 %v10286_v46  ;;  %v8608_v46 = vld [vmem:[%s10952_s5 + $0xe8] sm:$0xff]  }
 0x60b   : > { %7447 = vmatprep.mubr.msk.bf16.mxu0 %vm8699_vm1, %v8698_v20  ;;  %7504 = vmatpush3.bf16.msra.mxu0 %v8605_v8  ;;  %v5788_v8 = vmax.f32 %v5730_v21, %v5759_v34 }
 0x60c   : > { %7505 = vmatprep.subr.bf16.mxu0 %v8698_v20 }
 0x60d   : > { %v5178_v2 = vpop.f32.mrb[84].mxu0 }
 0x60e   : > { %v7309_v38 = vpop.f32.mrb[85].mxu0  ;;  %v8613_v2 = vld [vmem:[%s10952_s5 + $0x110] sm:$0xff]  }
 0x60f   : > { %v5180_v36 = vpop.f32.mrb[86].mxu0  ;;  %7506 = vmatpush3.bf16.msra.mxu0 %v8606_v42  ;;  %v5787_v42 = vmax.f32 %v5729_v9, %v5758_v55 }
 0x610   : > { %v7310_v5 = vpop.f32.mrb[87].mxu0  ;;  %7507 = vmatprep.subr.bf16.mxu0 %v8698_v20  ;;  %v5732_v36 = vld [vmem:[#allocation3 + $0x34] sm:$0xff] }
 0x611   : > { %v5815_v38 = vpack.c.bf16 %v5788_v8, %v5787_v42  ;;  %v5731_v5 = vld [vmem:[#allocation3 + $0x2c] sm:$0xff]  ;;  %v5741_v42 = vld [vmem:[#allocation3 + $0x7c] sm:$0xff] }
 0x612   : > { %7448 = vmatmul.mubr.bf16.gmra.mrb[72].mxu0 %v10322_v54  ;;  %v8610_v54 = vld [vmem:[%s10952_s5 + $0xf8] sm:$0xff]   ;;  %v5771_v8 = vld [vmem:[#allocation3 + $0x86] sm:$0xff] }
 0x613   : > { %7451 = vmatprep.mubr.msk.bf16.mxu0 %vm8699_vm1, %v8698_v20  ;;  %7508 = vmatpush3.bf16.msra.mxu0 %v8607_v26  ;;  %v5761_v26 = vld [vmem:[#allocation3 + $0x36] sm:$0xff] }
 0x614   : > { %7509 = vmatprep.subr.bf16.mxu0 %v8698_v20 }
 0x617   : > { %7510 = vmatpush3.bf16.msra.mxu0 %v8608_v46  ;;  %v5760_v46 = vld [vmem:[#allocation3 + $0x2e] sm:$0xff] }
 0x618   : > { %7511 = vmatprep.subr.bf16.mxu0 %v8698_v20 }
 0x61a   : > { %7452 = vmatmul.mubr.bf16.gmra.mrb[156].mxu0 %v10358_v3 }
 0x61b   : > { %7455 = vmatprep.mubr.msk.bf16.mxu0 %vm8699_vm1, %v8698_v20  ;;  %7512 = vmatpush3.bf16.msra.mxu0 %v8609_v6  ;;  %v8614_v6 = vld [vmem:[%s10952_s5 + $0x118] sm:$0xff]  }
 0x61c   : > { %7513 = vmatprep.subr.bf16.mxu0 %v8698_v20 }
 0x61d   : > { %v5191_v15 = vpop.f32.mrb[92].mxu0 }
 0x61e   : > { %v7317_v29 = vpop.f32.mrb[93].mxu0 }
 0x61f   : > { %v5193_v23 = vpop.f32.mrb[94].mxu0  ;;  %7514 = vmatpush3.bf16.msra.mxu0 %v8610_v54  ;;  %v5790_v54 = vmax.f32 %v5732_v36, %v5761_v26 }
 0x620   : > { %v7318_v59 = vpop.f32.mrb[95].mxu0  ;;  %7575 = vmatprep.subr.bf16.mxu0 %v8698_v20  ;;  %v5789_v23 = vmax.f32 %v5731_v5, %v5760_v46  ;;  %v5744_v5 = vld [vmem:[#allocation3 + $0x94] sm:$0xff] }
 0x621   : > { %v5773_v46 = vld [vmem:[#allocation3 + $0x96] sm:$0xff] }
 0x622   : > { %7456 = vmatmul.mubr.bf16.gmra.mrb[80].mxu0 %v10388_v56  ;;  %v11013_v56 = vpack.c.bf16 %v10448_v11, %v10444_v17 }
 0x623   : > { %7459 = vmatprep.mubr.msk.bf16.mxu0 %vm8699_vm1, %v8698_v20 }
 0x62a   : > { %7460 = vmatmul.mubr.bf16.gmra.mrb[160].mxu0 %v10419_v4 }
 0x62b   : > { %7463 = vmatprep.mubr.msk.bf16.mxu0 %vm8699_vm1, %v8698_v20 }
 0x62d   : > { %v5204_v3 = vpop.f32.mrb[100].mxu0 }
 0x62e   : > { %v7325_v45 = vpop.f32.mrb[101].mxu0  ;;  %v8615_v3 = vld [vmem:[%s10952_s5 + $0x120] sm:$0xff]  }
 0x62f   : > { %v5206_v47 = vpop.f32.mrb[102].mxu0 }
 0x630   : > { %v7326_v0 = vpop.f32.mrb[103].mxu0  ;;  %v5816_v47 = vpack.c.bf16 %v5790_v54, %v5789_v23  ;;  %v5772_v54 = vld [vmem:[#allocation3 + $0x8e] sm:$0xff] }
 0x631   : > { %v5734_v0 = vld [vmem:[#allocation3 + $0x44] sm:$0xff] }
 0x632   : > { %7464 = vmatmul.mubr.bf16.gmra.mrb[88].mxu0 %v11012_v1  ;;  %v5763_v1 = vld [vmem:[#allocation3 + $0x46] sm:$0xff] }
 0x633   : > { %7467 = vmatprep.mubr.msk.bf16.mxu0 %vm8699_vm1, %v8698_v20 }
 0x63a   : > { %7468 = vmatmul.mubr.bf16.gmra.mrb[164].mxu0 %v11013_v56  ;;  %v5733_v56 = vld [vmem:[#allocation3 + $0x3c] sm:$0xff] }
 0x63b   : > { %7471 = vmatprep.mubr.msk.bf16.mxu0 %vm8699_vm1, %v8698_v20 }
 0x63d   : > { %v5217_v4 = vpop.f32.mrb[108].mxu0 }
 0x63e   : > { %v7333_v31 = vpop.f32.mrb[109].mxu0  ;;  %v5762_v4 = vld [vmem:[#allocation3 + $0x3e] sm:$0xff] }
 0x63f   : > { %v5219_v28 = vpop.f32.mrb[110].mxu0  ;;  %v8616_v31 = vld [vmem:[%s10952_s5 + $0x128] sm:$0xff]  }
 0x640   : > { %v7334_v7 = vpop.f32.mrb[111].mxu0  ;;  %v5792_v28 = vmax.f32 %v5734_v0, %v5763_v1  ;;  %v5746_v0 = vld [vmem:[#allocation3 + $0xa4] sm:$0xff] }
 0x641   : > { %v5791_v7 = vmax.f32 %v5733_v56, %v5762_v4  ;;  %v5775_v1 = vld [vmem:[#allocation3 + $0xa6] sm:$0xff]  ;;  %v5745_v56 = vld [vmem:[#allocation3 + $0x9c] sm:$0xff] }
 0x642   : > { %7472 = vmatmul.mubr.bf16.gmra.mrb[96].mxu0 %v11014_v35  ;;  %v8617_v35 = vld [vmem:[%s10952_s5 + $0x130] sm:$0xff]   ;;  %v5774_v4 = vld [vmem:[#allocation3 + $0x9e] sm:$0xff] }
 0x643   : > { %7475 = vmatprep.mubr.msk.bf16.mxu0 %vm8699_vm1, %v8698_v20 }
 0x64a   : > { %7476 = vmatmul.mubr.bf16.gmra.mrb[168].mxu0 %v11015_v16  ;;  %v5817_v16 = vpack.c.bf16 %v5792_v28, %v5791_v7  ;;  %v5803_v28 = vmax.f32 %v5745_v56, %v5774_v4  ;;  %v6043_v4 = vld [vmem:[#allocation3 + $0x60] sm:$0xff] }
 0x64b   : > { %7479 = vmatprep.mubr.msk.bf16.mxu0 %vm8699_vm1, %v8698_v20 }
 0x64d   : > { %v5230_v22 = vpop.f32.mrb[116].mxu0 }
 0x64e   : > { %v7341_v17 = vpop.f32.mrb[117].mxu0  ;;  %v5736_v22 = vld [vmem:[#allocation3 + $0x54] sm:$0xff] }
 0x64f   : > { %v5232_v11 = vpop.f32.mrb[118].mxu0  ;;  %v5765_v17 = vld [vmem:[#allocation3 + $0x56] sm:$0xff] }
 0x650   : > { %v7342_v33 = vpop.f32.mrb[119].mxu0  ;;  %v5735_v11 = vld [vmem:[#allocation3 + $0x4c] sm:$0xff] }
 0x651   : > { %v5764_v33 = vld [vmem:[#allocation3 + $0x4e] sm:$0xff] }
 0x652   : > { %7480 = vmatmul.mubr.bf16.gmra.mrb[104].mxu0 %v11016_v43  ;;  %v8618_v43 = vld [vmem:[%s10952_s5 + $0x138] sm:$0xff]  }
 0x653   : > { %7483 = vmatprep.mubr.msk.bf16.mxu0 %vm8699_vm1, %v8698_v20 }
 0x65a   : > { %7484 = vmatmul.mubr.bf16.gmra.mrb[172].mxu0 %v11017_v44  ;;  %v5794_v44 = vmax.f32 %v5736_v22, %v5765_v17  ;;  %v5747_v22 = vld [vmem:[#allocation3 + $0xac] sm:$0xff] }
 0x65b   : > { %7487 = vmatprep.mubr.msk.bf16.mxu0 %vm8699_vm1, %v8698_v20  ;;  %v5776_v17 = vld [vmem:[#allocation3 + $0xae] sm:$0xff] }
 0x662   : > { %7488 = vmatmul.mubr.bf16.gmra.mrb[112].mxu0 %v5520_v51  ;;  %v5727_v51 = vld [vmem:[#allocation3 + $0xc] sm:$0xff] }
 0x663   : > { %7491 = vmatprep.mubr.msk.bf16.mxu0 %vm8699_vm1, %v8698_v20  ;;  %v5785_v57 = vmax.f32 %v5727_v51, %v5756_v63  ;;  %v5795_v63 = vmax.f32 %v5737_v30, %v5766_v61 }
 0x665   : > { %v5331_v50 = vpop.f32.mrb[124].mxu0 }
 0x666   : > { %v7369_v10 = vpop.f32.mrb[125].mxu0 }
 0x667   : > { %v5333_v49 = vpop.f32.mrb[126].mxu0 }
 0x668   : > { %v7370_v60 = vpop.f32.mrb[127].mxu0  ;;  %v5793_v49 = vmax.f32 %v5735_v11, %v5764_v33 }
 0x66a   : > { %7492 = vmatmul.mubr.bf16.gmra.mrb[176].mxu0 %v5521_v48  ;;  %v5814_v48 = vpack.c.bf16 %v5786_v53, %v5785_v57  ;;  %v5818_v41 = vpack.c.bf16 %v5794_v44, %v5793_v49  ;;  %v5739_v57 = vld [vmem:[#allocation3 + $0x6c] sm:$0xff]  ;;  %v5805_v44 = vmax.f32 %v5747_v22, %v5776_v17 }
 0x66b   : > { %7495 = vmatprep.mubr.msk.bf16.mxu0 %vm8699_vm1, %v8698_v20  ;;  %v6045_v17 = vld [vmem:[#allocation3 + $0x70] sm:$0xff] }
 0x672   : > { %7496 = vmatmul.mubr.bf16.gmra.mrb[120].mxu0 %v5522_v24  ;;  %v5767_v24 = vld [vmem:[#allocation3 + $0x66] sm:$0xff] }
 0x673   : > { %7515 = vmatprep.mubr.msk.bf16.mxu0 %vm8699_vm1, %v8698_v20  ;;  %v5796_v51 = vmax.f32 %v5738_v19, %v5767_v24  ;;  %v5778_v19 = vld [vmem:[#allocation3 + $0xbe] sm:$0xff] }
 0x675   : > { %v5344_v52 = vpop.f32.mrb[128].mxu0  ;;  %v5819_v53 = vpack.c.bf16 %v5796_v51, %v5795_v63  ;;  %v5752_v51 = vld [vmem:[#allocation3 + $0xd4] sm:$0xff] }
 0x676   : > { %v7377_v27 = vpop.f32.mrb[129].mxu0  ;;  %v5740_v52 = vld [vmem:[#allocation3 + $0x74] sm:$0xff] }
 0x677   : > { %v5346_v58 = vpop.f32.mrb[130].mxu0  ;;  %v5769_v27 = vld [vmem:[#allocation3 + $0x76] sm:$0xff] }
 0x678   : > { %v7378_v13 = vpop.f32.mrb[131].mxu0  ;;  %v5768_v58 = vld [vmem:[#allocation3 + $0x6e] sm:$0xff]  ;;  %v5781_v63 = vld [vmem:[#allocation3 + $0xd6] sm:$0xff] }
 0x679   : > { %v5797_v21 = vmax.f32 %v5739_v57, %v5768_v58 }
 0x67a   : > { %7516 = vmatmul.mubr.bf16.vlgmr.msra.gmra.mrb[64].mxu0 %v5814_v48 }
 0x67b   : > { %7576 = vmatpush3.bf16.msra.mxu0 %v8611_v25  ;;  %7519 = vmatprep.mubr.msk.bf16.mxu0 %vm8699_vm1, %v8698_v20  ;;  %v5798_v25 = vmax.f32 %v5740_v52, %v5769_v27  ;;  %v5780_v52 = vld [vmem:[#allocation3 + $0xce] sm:$0xff]  ;;  %v5810_v27 = vmax.f32 %v5752_v51, %v5781_v63 }
 0x67c   : > { %7577 = vmatprep.subr.bf16.mxu0 %v8698_v20 }
 0x67d   : > { %v5820_v55 = vpack.c.bf16 %v5798_v25, %v5797_v21  ;;  %v5754_v25 = vld [vmem:[#allocation3 + $0xe4] sm:$0xff] }
 0x67e   : > { %v5782_v21 = vld [vmem:[#allocation3 + $0xde] sm:$0xff] }
 0x67f   : > { %7578 = vmatpush3.bf16.msra.mxu0 %v8612_v62  ;;  %v5742_v62 = vld [vmem:[#allocation3 + $0x84] sm:$0xff] }
 0x680   : > { %7579 = vmatprep.subr.bf16.mxu0 %v8698_v20 }
 0x682   : > { %7520 = vmatmul.mubr.bf16.gmra.mrb[180].mxu0 %v5815_v38  ;;  %v5800_v38 = vmax.f32 %v5742_v62, %v5771_v8 }
 0x683   : > { %7523 = vmatprep.mubr.msk.bf16.mxu0 %vm8699_vm1, %v8698_v20  ;;  %7580 = vmatpush3.bf16.msra.mxu0 %v8613_v2  ;;  %v5770_v2 = vld [vmem:[#allocation3 + $0x7e] sm:$0xff] }
 0x684   : > { %7581 = vmatprep.subr.bf16.mxu0 %v8698_v20  ;;  %v5799_v36 = vmax.f32 %v5741_v42, %v5770_v2 }
 0x685   : > { %v5357_v15 = vpop.f32.mrb[132].mxu0 }
 0x686   : > { %v7385_v29 = vpop.f32.mrb[133].mxu0  ;;  %v5821_v26 = vpack.c.bf16 %v5800_v38, %v5799_v36  ;;  %v5802_v15 = vmax.f32 %v5744_v5, %v5773_v46  ;;  %v5755_v38 = vld [vmem:[#allocation3 + $0xec] sm:$0x1]  ;;  %v5784_v36 = vld [vmem:[#allocation3 + $0xee] sm:$0x1] }
 0x687   : > { %v5359_v59 = vpop.f32.mrb[134].mxu0  ;;  %7582 = vmatpush3.bf16.msra.mxu0 %v8614_v6  ;;  %v5743_v6 = vld [vmem:[#allocation3 + $0x8c] sm:$0xff] }
 0x688   : > { %v7386_v45 = vpop.f32.mrb[135].mxu0  ;;  %7583 = vmatprep.subr.bf16.mxu0 %v8698_v20  ;;  %v5801_v59 = vmax.f32 %v5743_v6, %v5772_v54 }
 0x68a   : > { %7524 = vmatmul.mubr.bf16.gmra.mrb[72].mxu0 %v5816_v47  ;;  %v5822_v47 = vpack.c.bf16 %v5802_v15, %v5801_v59 }
 0x68b   : > { %7527 = vmatprep.mubr.msk.bf16.mxu0 %vm8699_vm1, %v8698_v20  ;;  %7584 = vmatpush3.bf16.msra.mxu0 %v8615_v3 }
 0x68c   : > { %7585 = vmatprep.subr.bf16.mxu0 %v8698_v20 }
 0x68f   : > { %7586 = vmatpush3.bf16.msra.mxu0 %v8616_v31  ;;  %v5804_v31 = vmax.f32 %v5746_v0, %v5775_v1  ;;  %v6073_v0 = vld [vmem:[#allocation3 + $0x6a] sm:$0xff] }
 0x690   : > { %7587 = vmatprep.subr.bf16.mxu0 %v8698_v20  ;;  %v6044_v1 = vld [vmem:[#allocation3 + $0x68] sm:$0xff] }
 0x691   : > { %v5823_v7 = vpack.c.bf16 %v5804_v31, %v5803_v28  ;;  %v6102_v56 = vmax.f32 %v6044_v1, %v6073_v0  ;;  %v6087_v0 = vld [vmem:[#allocation3 + $0xda] sm:$0xff] }
 0x692   : > { %7528 = vmatmul.mubr.bf16.gmra.mrb[184].mxu0 %v5817_v16  ;;  %v5777_v16 = vld [vmem:[#allocation3 + $0xb6] sm:$0xff] }
 0x693   : > { %7531 = vmatprep.mubr.msk.bf16.mxu0 %vm8699_vm1, %v8698_v20  ;;  %7588 = vmatpush3.bf16.msra.mxu0 %v8617_v35  ;;  %v5748_v35 = vld [vmem:[#allocation3 + $0xb4] sm:$0xff] }
 0x694   : > { %7589 = vmatprep.subr.bf16.mxu0 %v8698_v20  ;;  %v5806_v11 = vmax.f32 %v5748_v35, %v5777_v16  ;;  %v6074_v35 = vld [vmem:[#allocation3 + $0x72] sm:$0xff] }
 0x695   : > { %v5370_v50 = vpop.f32.mrb[136].mxu0  ;;  %v6058_v1 = vld [vmem:[#allocation3 + $0xd8] sm:$0xff] }
 0x696   : > { %v7393_v10 = vpop.f32.mrb[137].mxu0  ;;  %v5824_v49 = vpack.c.bf16 %v5806_v11, %v5805_v44  ;;  %v6103_v11 = vmax.f32 %v6045_v17, %v6074_v35  ;;  %v6060_v35 = vld [vmem:[#allocation3 + $0xe8] sm:$0xff]  ;;  %v6059_v17 = vld [vmem:[#allocation3 + $0xe0] sm:$0xff] }
 0x697   : > { %v5372_v60 = vpop.f32.mrb[138].mxu0  ;;  %7590 = vmatpush3.bf16.msra.mxu0 %v8618_v43 }
 0x698   : > { %v7394_v40 = vpop.f32.mrb[139].mxu0  ;;  %v5750_v60 = vld [vmem:[#allocation3 + $0xc4] sm:$0xff] }
 0x699   : > { %v5779_v40 = vld [vmem:[#allocation3 + $0xc6] sm:$0xff] }
 0x69a   : > { %7532 = vmatmul.mubr.bf16.gmra.mrb[80].mxu0 %v5818_v41  ;;  %v5749_v41 = vld [vmem:[#allocation3 + $0xbc] sm:$0xff]  ;;  %v5808_v24 = vmax.f32 %v5750_v60, %v5779_v40 }
 0x69b   : > { %7535 = vmatprep.mubr.msk.bf16.mxu0 %vm8699_vm1, %v8698_v20  ;;  %v5807_v30 = vmax.f32 %v5749_v41, %v5778_v19  ;;  %v6047_v40 = vld [vmem:[#allocation3 + $0x80] sm:$0xff] }
 0x69d   : > { %v5825_v61 = vpack.c.bf16 %v5808_v24, %v5807_v30  ;;  %v6079_v24 = vld [vmem:[#allocation3 + $0x9a] sm:$0xff] }
 0x69e   : > { %v6050_v30 = vld [vmem:[#allocation3 + $0x98] sm:$0xff] }
 0x69f   : > { %v6108_v51 = vmax.f32 %v6050_v30, %v6079_v24  ;;  %v8622_v30 = vld [vmem:[%s10954_s7 + $0x18] sm:$0xff]  }
 0x6a2   : > { %7536 = vmatmul.mubr.bf16.gmra.mrb[188].mxu0 %v5819_v53  ;;  %v5751_v53 = vld [vmem:[#allocation3 + $0xcc] sm:$0xff] }
 0x6a3   : > { %7539 = vmatprep.mubr.msk.bf16.mxu0 %vm8699_vm1, %v8698_v20  ;;  %v5809_v57 = vmax.f32 %v5751_v53, %v5780_v52  ;;  %v6049_v53 = vld [vmem:[#allocation3 + $0x90] sm:$0xff] }
 0x6a5   : > { %v5383_v13 = vpop.f32.mrb[140].mxu0  ;;  %v5826_v58 = vpack.c.bf16 %v5810_v27, %v5809_v57 }
 0x6a6   : > { %v7401_v48 = vpop.f32.mrb[141].mxu0  ;;  %v5783_v13 = vld [vmem:[#allocation3 + $0xe6] sm:$0xff] }
 0x6a7   : > { %v5385_v34 = vpop.f32.mrb[142].mxu0  ;;  %v5753_v48 = vld [vmem:[#allocation3 + $0xdc] sm:$0xff] }
 0x6a8   : > { %v7402_v9 = vpop.f32.mrb[143].mxu0  ;;  %v5812_v34 = vmax.f32 %v5754_v25, %v5783_v13  ;;  %v5811_v62 = vmax.f32 %v5753_v48, %v5782_v21  ;;  %v6081_v13 = vld [vmem:[#allocation3 + $0xaa] sm:$0xff]  ;;  %v6080_v21 = vld [vmem:[#allocation3 + $0xa2] sm:$0xff] }
 0x6a9   : > { %v6052_v48 = vld [vmem:[#allocation3 + $0xa8] sm:$0xff] }
 0x6aa   : > { %7540 = vmatmul.mubr.bf16.gmra.mrb[88].mxu0 %v5820_v55  ;;  %v5827_v2 = vpack.c.bf16 %v5812_v34, %v5811_v62  ;;  %v6110_v34 = vmax.f32 %v6052_v48, %v6081_v13  ;;  %v8624_v13 = vld [vmem:[%s10954_s7 + $0x28] sm:$0xff]  }
 0x6ab   : > { %7543 = vmatprep.mubr.msk.bf16.mxu0 %vm8699_vm1, %v8698_v20 }
 0x6b2   : > { %7544 = vmatmul.mubr.bf16.gmra.mrb[192].mxu0 %v5821_v26  ;;  %v5813_v26 = vmax.f32 %v5755_v38, %v5784_v36  ;;  %v6082_v38 = vld [vmem:[#allocation3 + $0xb2] sm:$0xff] }
 0x6b3   : > { %7547 = vmatprep.mubr.msk.bf16.mxu0 %vm8699_vm1, %v8698_v20 }
 0x6b4   : > { %v5828_v5 = vpack.c.bf16 %v5813_v26, %v5813_v26 }
 0x6b5   : > { %v5396_v29 = vpop.f32.mrb[144].mxu0 }
 0x6b6   : > { %v7409_v23 = vpop.f32.mrb[145].mxu0 }
 0x6b7   : > { %v5398_v3 = vpop.f32.mrb[146].mxu0 }
 0x6b8   : > { %v7410_v45 = vpop.f32.mrb[147].mxu0 }
 0x6ba   : > { %7548 = vmatmul.mubr.bf16.gmra.mrb[96].mxu0 %v5822_v47 }
 0x6bb   : > { %7551 = vmatprep.mubr.msk.bf16.mxu0 %vm8699_vm1, %v8698_v20 }
 0x6c2   : > { %7552 = vmatmul.mubr.bf16.gmra.mrb[196].mxu0 %v5823_v7  ;;  %v6046_v7 = vld [vmem:[#allocation3 + $0x78] sm:$0xff] }
 0x6c3   : > { %7555 = vmatprep.mubr.msk.bf16.mxu0 %vm8699_vm1, %v8698_v20 }
 0x6c5   : > { %v5409_v33 = vpop.f32.mrb[148].mxu0 }
 0x6c6   : > { %v7417_v43 = vpop.f32.mrb[149].mxu0 }
 0x6c7   : > { %v5411_v50 = vpop.f32.mrb[150].mxu0 }
 0x6c8   : > { %v7418_v10 = vpop.f32.mrb[151].mxu0  ;;  %v6077_v50 = vld [vmem:[#allocation3 + $0x8a] sm:$0xff] }
 0x6c9   : > { %v6048_v10 = vld [vmem:[#allocation3 + $0x88] sm:$0xff] }
 0x6ca   : > { %7556 = vmatmul.mubr.bf16.gmra.mrb[104].mxu0 %v5824_v49  ;;  %v6076_v49 = vld [vmem:[#allocation3 + $0x82] sm:$0xff]  ;;  %v6106_v60 = vmax.f32 %v6048_v10, %v6077_v50  ;;  %v6061_v50 = vld [vmem:[#allocation3 + $0xf0] sm:$0x1]  ;;  %v6090_v10 = vld [vmem:[#allocation3 + $0xf2] sm:$0x1] }
 0x6cb   : > { %7559 = vmatprep.mubr.msk.bf16.mxu0 %vm8699_vm1, %v8698_v20  ;;  %v6105_v41 = vmax.f32 %v6047_v40, %v6076_v49  ;;  %v6119_v49 = vmax.f32 %v6061_v50, %v6090_v10  ;;  %v8621_v40 = vld [vmem:[%s10954_s7 + $0x10] sm:$0xff]  }
 0x6cd   : > { %v6127_v19 = vpack.c.bf16 %v6106_v60, %v6105_v41  ;;  %v6134_v60 = vpack.c.bf16 %v6119_v49, %v6119_v49 }
 0x6d2   : > { %7560 = vmatmul.mubr.bf16.gmra.mrb[200].mxu0 %v5825_v61  ;;  %v6078_v61 = vld [vmem:[#allocation3 + $0x92] sm:$0xff] }
 0x6d3   : > { %7563 = vmatprep.mubr.msk.bf16.mxu0 %vm8699_vm1, %v8698_v20  ;;  %v6107_v27 = vmax.f32 %v6049_v53, %v6078_v61 }
 0x6d5   : > { %v6128_v25 = vpack.c.bf16 %v6108_v51, %v6107_v27 }
 0x6da   : > { %7564 = vmatmul.mubr.bf16.gmra.mrb[112].mxu0 %v5826_v58 }
 0x6db   : > { %7567 = vmatprep.mubr.msk.bf16.mxu0 %vm8699_vm1, %v8698_v20 }
 0x6dd   : > { %v5629_v9 = vpop.f32.mrb[152].mxu0 }
 0x6de   : > { %v7445_v55 = vpop.f32.mrb[153].mxu0  ;;  %v6051_v9 = vld [vmem:[#allocation3 + $0xa0] sm:$0xff] }
 0x6df   : > { %v5631_v8 = vpop.f32.mrb[154].mxu0  ;;  %v6109_v55 = vmax.f32 %v6051_v9, %v6080_v21 }
 0x6e0   : > { %v7446_v42 = vpop.f32.mrb[155].mxu0  ;;  %v8619_v8 = vld [vmem:[%s10954_s7] sm:$0xff]  }
 0x6e1   : > { %v6129_v62 = vpack.c.bf16 %v6110_v34, %v6109_v55  ;;  %v6083_v42 = vld [vmem:[#allocation3 + $0xba] sm:$0xff]  ;;  %7652 = vmatpush3.bf16.msra.mxu1 %v8619_v8  ;;  %v8625_v55 = vld [vmem:[%s10954_s7 + $0x30] sm:$0xff]  }
 0x6e2   : > { %7568 = vmatmul.mubr.bf16.gmra.mrb[204].mxu0 %v5827_v2  ;;  %v6054_v2 = vld [vmem:[#allocation3 + $0xb8] sm:$0xff]  ;;  %7653 = vmatprep.subr.bf16.mxu1 %v8698_v20 }
 0x6e3   : > { %7571 = vmatprep.mubr.msk.bf16.mxu0 %vm8699_vm1, %v8698_v20  ;;  %v6112_v36 = vmax.f32 %v6054_v2, %v6083_v42 }
 0x6ea   : > { %7572 = vmatmul.mubr.bf16.gmra.mrb[120].mxu0 %v5828_v5  ;;  %v6053_v5 = vld [vmem:[#allocation3 + $0xb0] sm:$0xff] }
 0x6eb   : > { %7591 = vmatprep.mubr.msk.bf16.mxu0 %vm8699_vm1, %v8698_v20 }
 0x6ed   : > { %v5642_v46 = vpop.f32.mrb[156].mxu0 }
 0x6ee   : > { %v7453_v6 = vpop.f32.mrb[157].mxu0 }
 0x6ef   : > { %v5644_v54 = vpop.f32.mrb[158].mxu0  ;;  %v6111_v6 = vmax.f32 %v6053_v5, %v6082_v38  ;;  %v8626_v38 = vld [vmem:[%s10954_s7 + $0x38] ss:$0 sps:$4 sm:$0xff]  }
 0x6f0   : > { %v7454_v15 = vpop.f32.mrb[159].mxu0 }
 0x6f2   : > { %7592 = vmatmul.mubr.bf16.vlgmr.msra.gmra.mrb[64].mxu0 %v10293_v37 }
 0x6f3   : > { %7595 = vmatprep.mubr.msk.bf16.mxu0 %vm8699_vm1, %v8698_v20 }
 0x6fa   : > { %7596 = vmatmul.mubr.bf16.gmra.mrb[208].mxu0 %v10329_v32 }
 0x6fb   : > { %7599 = vmatprep.mubr.msk.bf16.mxu0 %vm8699_vm1, %v8698_v20 }
 0x6fd   : > { %v5655_v29 = vpop.f32.mrb[160].mxu0 }
 0x6fe   : > { %v7461_v23 = vpop.f32.mrb[161].mxu0  ;;  %v6130_v29 = vpack.c.bf16 %v6112_v36, %v6111_v6  ;;  %v6456_v36 = vsel %vm6366_vm2, %v8626_v38, 0 }
 0x6ff   : > { %v5657_v59 = vpop.f32.mrb[162].mxu0  ;;  %v6085_v23 = vld [vmem:[#allocation3 + $0xca] sm:$0xff] }
 0x700   : > { %v7462_v3 = vpop.f32.mrb[163].mxu0  ;;  %v6056_v59 = vld [vmem:[#allocation3 + $0xc8] sm:$0xff] }
 0x701   : > { %v6084_v3 = vld [vmem:[#allocation3 + $0xc2] sm:$0xff] }
 0x702   : > { %7600 = vmatmul.mubr.bf16.gmra.mrb[72].mxu0 %v10365_v12  ;;  %v6072_v12 = vld [vmem:[#allocation3 + $0x62] sm:$0xff] }
 0x703   : > { %7603 = vmatprep.mubr.msk.bf16.mxu0 %vm8699_vm1, %v8698_v20  ;;  %v6101_v31 = vmax.f32 %v6043_v4, %v6072_v12  ;;  %v6086_v12 = vld [vmem:[#allocation3 + $0xd2] sm:$0xff] }
 0x704   : > { %v6057_v4 = vld [vmem:[#allocation3 + $0xd0] sm:$0xff] }
 0x705   : > { %v6125_v28 = vpack.c.bf16 %v6102_v56, %v6101_v31  ;;  %v6116_v56 = vmax.f32 %v6058_v1, %v6087_v0  ;;  %v6115_v31 = vmax.f32 %v6057_v4, %v6086_v12 }
 0x70a   : > { %7604 = vmatmul.mubr.bf16.gmra.mrb[212].mxu0 %v10394_v39  ;;  %v6075_v39 = vld [vmem:[#allocation3 + $0x7a] sm:$0xff] }
 0x70b   : > { %7607 = vmatprep.mubr.msk.bf16.mxu0 %vm8699_vm1, %v8698_v20  ;;  %v6104_v16 = vmax.f32 %v6046_v7, %v6075_v39  ;;  %v8620_v39 = vld [vmem:[%s10954_s7 + $0x8] sm:$0xff]  }
 0x70c   : > { %v6089_v7 = vld [vmem:[#allocation3 + $0xea] sm:$0xff]  ;;  %7654 = vmatpush3.bf16.msra.mxu1 %v8620_v39 }
 0x70d   : > { %v5668_v37 = vpop.f32.mrb[164].mxu0  ;;  %v6126_v44 = vpack.c.bf16 %v6104_v16, %v6103_v11  ;;  %7655 = vmatprep.subr.bf16.mxu1 %v8698_v20  ;;  %v6118_v16 = vmax.f32 %v6060_v35, %v6089_v7  ;;  %v6117_v11 = vmax.f32 %v6059_v17, %v10526_v14 }
 0x70e   : > { %v7469_v45 = vpop.f32.mrb[165].mxu0  ;;  %v6114_v37 = vmax.f32 %v6056_v59, %v6085_v23 }
 0x70f   : > { %v5670_v32 = vpop.f32.mrb[166].mxu0  ;;  %v6055_v45 = vld [vmem:[#allocation3 + $0xc0] sm:$0xff] }
 0x710   : > { %v7470_v47 = vpop.f32.mrb[167].mxu0  ;;  %v6113_v32 = vmax.f32 %v6055_v45, %v6084_v3  ;;  %7656 = vmatpush3.bf16.msra.mxu1 %v8621_v40 }
 0x711   : > { %7657 = vmatprep.subr.bf16.mxu1 %v8698_v20 }
 0x712   : > { %7608 = vmatmul.mubr.bf16.gmra.mrb[80].mxu0 %v10413_v18  ;;  %v6131_v47 = vpack.c.bf16 %v6114_v37, %v6113_v32 }
 0x713   : > { %7611 = vmatprep.mubr.msk.bf16.mxu0 %vm8699_vm1, %v8698_v20 }
 0x714   : > { %7658 = vmatpush3.bf16.msra.mxu1 %v8622_v30 }
 0x715   : > { %7659 = vmatprep.subr.bf16.mxu1 %v8698_v20 }
 0x71a   : > { %7612 = vmatmul.mubr.bf16.gmra.mrb[216].mxu0 %v6125_v28  ;;  %v6132_v28 = vpack.c.bf16 %v6116_v56, %v6115_v31 }
 0x71b   : > { %7615 = vmatprep.mubr.msk.bf16.mxu0 %vm8699_vm1, %v8698_v20 }
 0x71d   : > { %v5681_v22 = vpop.f32.mrb[168].mxu0 }
 0x71e   : > { %v7477_v18 = vpop.f32.mrb[169].mxu0 }
 0x71f   : > { %v5683_v33 = vpop.f32.mrb[170].mxu0 }
 0x720   : > { %v7478_v43 = vpop.f32.mrb[171].mxu0 }
 0x722   : > { %7616 = vmatmul.mubr.bf16.gmra.mrb[88].mxu0 %v6126_v44  ;;  %v6133_v44 = vpack.c.bf16 %v6118_v16, %v6117_v11 }
 0x723   : > { %7619 = vmatprep.mubr.msk.bf16.mxu0 %vm8699_vm1, %v8698_v20 }
 0x72a   : > { %7620 = vmatmul.mubr.bf16.gmra.mrb[220].mxu0 %v6127_v19 }
 0x72b   : > { %7623 = vmatprep.mubr.msk.bf16.mxu0 %vm8699_vm1, %v8698_v20 }
 0x72d   : > { %v5694_v63 = vpop.f32.mrb[172].mxu0 }
 0x72e   : > { %v7485_v52 = vpop.f32.mrb[173].mxu0 }
 0x72f   : > { %v5696_v57 = vpop.f32.mrb[174].mxu0  ;;  %v8623_v52 = vld [vmem:[%s10954_s7 + $0x20] sm:$0xff]  }
 0x730   : > { %v7486_v58 = vpop.f32.mrb[175].mxu0  ;;  %7660 = vmatpush3.bf16.msra.mxu1 %v8623_v52 }
 0x731   : > { %7661 = vmatprep.subr.bf16.mxu1 %v8698_v20 }
 0x732   : > { %7624 = vmatmul.mubr.bf16.gmra.mrb[96].mxu0 %v6128_v25 }
 0x733   : > { %7627 = vmatprep.mubr.msk.bf16.mxu0 %vm8699_vm1, %v8698_v20 }
 0x734   : > { %7662 = vmatpush3.bf16.msra.mxu1 %v8624_v13 }
 0x735   : > { %7663 = vmatprep.subr.bf16.mxu1 %v8698_v20 }
 0x738   : > { %7664 = vmatpush3.bf16.msra.mxu1 %v8625_v55 }
 0x739   : > { %7665 = vmatprep.subr.bf16.mxu1 %v8698_v20 }
 0x73a   : > { %7628 = vmatmul.mubr.bf16.gmra.mrb[224].mxu0 %v6129_v62 }
 0x73b   : > { %7631 = vmatprep.mubr.msk.bf16.mxu0 %vm8699_vm1, %v8698_v20 }
 0x73c   : > { %7666 = vmatpush3.bf16.msra.mxu1 %v6456_v36 }
 0x73d   : > { %v5707_v26 = vpop.f32.mrb[176].mxu0  ;;  %7671 = vmatprep.subr.bf16.mxu1 %v8698_v20 }
 0x73e   : > { %v7493_v46 = vpop.f32.mrb[177].mxu0 }
 0x73f   : > { %v5709_v54 = vpop.f32.mrb[178].mxu0 }
 0x740   : > { %v7494_v15 = vpop.f32.mrb[179].mxu0 }
 0x742   : > { %7632 = vmatmul.mubr.bf16.gmra.mrb[104].mxu0 %v6130_v29 }
 0x743   : > { %7635 = vmatprep.mubr.msk.bf16.mxu0 %vm8699_vm1, %v8698_v20 }
 0x74a   : > { %7636 = vmatmul.mubr.bf16.gmra.mrb[228].mxu0 %v6131_v47 }
 0x74b   : > { %7639 = vmatprep.mubr.msk.bf16.mxu0 %vm8699_vm1, %v8698_v20 }
 0x752   : > { %7640 = vmatmul.mubr.bf16.gmra.mrb[112].mxu0 %v6132_v28 }
 0x753   : > { %7643 = vmatprep.mubr.msk.bf16.mxu0 %vm8699_vm1, %v8698_v20 }
 0x755   : > { %v5935_v22 = vpop.f32.mrb[180].mxu0 }
 0x756   : > { %v7521_v18 = vpop.f32.mrb[181].mxu0 }
 0x757   : > { %v5937_v33 = vpop.f32.mrb[182].mxu0 }
 0x758   : > { %v7522_v43 = vpop.f32.mrb[183].mxu0 }
 0x75a   : > { %7644 = vmatmul.mubr.bf16.gmra.mrb[232].mxu0 %v6133_v44 }
 0x75b   : > { %7647 = vmatprep.mubr.msk.bf16.mxu0 %vm8699_vm1, %v8698_v20 }
 0x762   : > { %7648 = vmatmul.mubr.bf16.gmra.mrb[120].mxu0 %v6134_v60 }
 0x765   : > { %v5948_v14 = vpop.f32.mrb[184].mxu0 }
 0x766   : > { %v7529_v41 = vpop.f32.mrb[185].mxu0 }
 0x767   : > { %v5950_v19 = vpop.f32.mrb[186].mxu0 }
 0x768   : > { %v7530_v24 = vpop.f32.mrb[187].mxu0 }
 0x775   : > { %v5961_v61 = vpop.f32.mrb[188].mxu0 }
 0x776   : > { %v7537_v51 = vpop.f32.mrb[189].mxu0 }
 0x777   : > { %v5963_v63 = vpop.f32.mrb[190].mxu0 }
 0x778   : > { %v7538_v53 = vpop.f32.mrb[191].mxu0 }
 0x785   : > { %v5974_v27 = vpop.f32.mrb[192].mxu0 }
 0x786   : > { %v7545_v57 = vpop.f32.mrb[193].mxu0 }
 0x787   : > { %v5976_v58 = vpop.f32.mrb[194].mxu0 }
 0x788   : > { %v7546_v25 = vpop.f32.mrb[195].mxu0 }
 0x795   : > { %v5987_v48 = vpop.f32.mrb[196].mxu0 }
 0x796   : > { %v7553_v21 = vpop.f32.mrb[197].mxu0 }
 0x797   : > { %v5989_v34 = vpop.f32.mrb[198].mxu0 }
 0x798   : > { %v7554_v9 = vpop.f32.mrb[199].mxu0 }
 0x7a5   : > { %v6000_v62 = vpop.f32.mrb[200].mxu0 }
 0x7a6   : > { %v7561_v8 = vpop.f32.mrb[201].mxu0 }
 0x7a7   : > { %v6002_v42 = vpop.f32.mrb[202].mxu0 }
 0x7a8   : > { %v7562_v2 = vpop.f32.mrb[203].mxu0 }
 0x7b5   : > { %v6013_v26 = vpop.f32.mrb[204].mxu0 }
 0x7b6   : > { %v7569_v5 = vpop.f32.mrb[205].mxu0 }
 0x7b7   : > { %v6015_v46 = vpop.f32.mrb[206].mxu0 }
 0x7b8   : > { %v7570_v6 = vpop.f32.mrb[207].mxu0 }
 0x7c5   : > { %v6234_v54 = vpop.f32.mrb[64].mxu0 }
 0x7c6   : > { %v7593_v15 = vpop.f32.mrb[65].mxu0 }
 0x7c7   : > { %v6237_v29 = vpop.f32.mrb[66].mxu0 }
 0x7c8   : > { %v7594_v23 = vpop.f32.mrb[67].mxu0 }
 0x7cd   : > { %v6241_v59 = vpop.f32.mrb[208].mxu0 }
 0x7ce   : > { %v7597_v3 = vpop.f32.mrb[209].mxu0 }
 0x7cf   : > { %v6243_v37 = vpop.f32.mrb[210].mxu0 }
 0x7d0   : > { %v7598_v45 = vpop.f32.mrb[211].mxu0 }
 0x7d1   : > { %v7117_v45 = vld [vmem:[%s10953_s6] ss:$0 sm:$0xff] }
 0x7d5   : > { %v6247_v32 = vpop.f32.mrb[72].mxu0 }
 0x7d6   : > { %v6340_v47 = vrot.slane %v6247_v32, 7  ;;  %v7601_v0 = vpop.f32.mrb[73].mxu0 }
 0x7d7   : > { %v6250_v1 = vpop.f32.mrb[74].mxu0 }
 0x7d8   : > { %v6361_v12 = vsel %vm6360_vm3, %v6234_v54, %v6340_v47  ;;  %v7602_v56 = vpop.f32.mrb[75].mxu0 }
 0x7dd   : > { %v6254_v4 = vpop.f32.mrb[212].mxu0 }
 0x7de   : > { %v7605_v31 = vpop.f32.mrb[213].mxu0  ;;  %v8627_v4 = vld [vmem:[%s10956_s9] sm:$0xff]  }
 0x7df   : > { %v6256_v28 = vpop.f32.mrb[214].mxu0 }
 0x7e0   : > { %v7606_v39 = vpop.f32.mrb[215].mxu0  ;;  %v8628_v28 = vld [vmem:[%s10956_s9 + $0x8] sm:$0xff]  }
 0x7e1   : > { %v8629_v39 = vld [vmem:[%s10956_s9 + $0x10] sm:$0xff]  }
 0x7e5   : > { %v6260_v7 = vpop.f32.mrb[80].mxu0 }
 0x7e6   : > { %v6343_v35 = vrot.slane %v6260_v7, 6  ;;  %v7609_v16 = vpop.f32.mrb[81].mxu0  ;;  %v8630_v7 = vld [vmem:[%s10956_s9 + $0x18] sm:$0xff]  }
 0x7e7   : > { %v6263_v22 = vpop.f32.mrb[82].mxu0  ;;  %v8632_v16 = vld [vmem:[%s10956_s9 + $0x28] ss:$0 sps:$4 sm:$0x33]  }
 0x7e8   : > { %v6363_v17 = vsel %vm6362_vm4, %v6361_v12, %v6343_v35  ;;  %v7610_v18 = vpop.f32.mrb[83].mxu0  ;;  %v8631_v35 = vld [vmem:[%s10956_s9 + $0x20] sm:$0xff]   ;;  %v6556_v22 = vsel %vm6362_vm4, %v8632_v16, 0 }
 0x7ed   : > { %v6267_v11 = vpop.f32.mrb[216].mxu0 }
 0x7ee   : > { %v7613_v33 = vpop.f32.mrb[217].mxu0 }
 0x7ef   : > { %v6269_v43 = vpop.f32.mrb[218].mxu0 }
 0x7f0   : > { %v7614_v44 = vpop.f32.mrb[219].mxu0 }
 0x7f5   : > { %v6273_v50 = vpop.f32.mrb[88].mxu0 }
 0x7f6   : > { %v6346_v10 = vrot.slane %v6273_v50, 5  ;;  %v7617_v49 = vpop.f32.mrb[89].mxu0 }
 0x7f7   : > { %v6276_v60 = vpop.f32.mrb[90].mxu0 }
 0x7f8   : > { %v6365_v40 = vsel %vm6364_vm5, %v6363_v17, %v6346_v10  ;;  %v7618_v14 = vpop.f32.mrb[91].mxu0  ;;  %v7118_v17 = vld [vmem:[%s10955_s8] ss:$0 sm:$0xff] }
 0x7fd   : > { %v6280_v41 = vpop.f32.mrb[220].mxu0 }
 0x7fe   : > { %v7621_v19 = vpop.f32.mrb[221].mxu0 }
 0x7ff   : > { %v6282_v24 = vpop.f32.mrb[222].mxu0 }
 0x800   : > { %v7622_v30 = vpop.f32.mrb[223].mxu0 }
 0x805   : > { %v6286_v61 = vpop.f32.mrb[96].mxu0 }
 0x806   : > { %v6349_v51 = vrot.slane %v6286_v61, 4  ;;  %v7625_v63 = vpop.f32.mrb[97].mxu0 }
 0x807   : > { %v6289_v53 = vpop.f32.mrb[98].mxu0 }
 0x808   : > { %v7626_v52 = vpop.f32.mrb[99].mxu0  ;;  %v6367_v27 = vsel %vm6366_vm2, %v6365_v40, %v6349_v51 }
 0x80d   : > { %v6293_v57 = vpop.f32.mrb[224].mxu0 }
 0x80e   : > { %v7629_v58 = vpop.f32.mrb[225].mxu0 }
 0x80f   : > { %v6295_v25 = vpop.f32.mrb[226].mxu0 }
 0x810   : > { %v7630_v13 = vpop.f32.mrb[227].mxu0 }
 0x815   : > { %v6299_v48 = vpop.f32.mrb[104].mxu0 }
 0x816   : > { %v6352_v21 = vrot.slane %v6299_v48, 3  ;;  %v7633_v34 = vpop.f32.mrb[105].mxu0 }
 0x817   : > { %v6302_v9 = vpop.f32.mrb[106].mxu0 }
 0x818   : > { %v7634_v55 = vpop.f32.mrb[107].mxu0  ;;  %v6369_v62 = vsel %vm6368_vm6, %v6367_v27, %v6352_v21 }
 0x81d   : > { %v6306_v8 = vpop.f32.mrb[228].mxu0 }
 0x81e   : > { %v7637_v42 = vpop.f32.mrb[229].mxu0 }
 0x81f   : > { %v6308_v2 = vpop.f32.mrb[230].mxu0 }
 0x820   : > { %v7638_v38 = vpop.f32.mrb[231].mxu0 }
 0x825   : > { %v6312_v36 = vpop.f32.mrb[112].mxu0 }
 0x826   : > { %v6355_v26 = vrot.slane %v6312_v36, 2  ;;  %v7641_v5 = vpop.f32.mrb[113].mxu0 }
 0x827   : > { %v6315_v46 = vpop.f32.mrb[114].mxu0 }
 0x828   : > { %v7642_v6 = vpop.f32.mrb[115].mxu0  ;;  %v6371_v54 = vsel %vm6370_vm7, %v6369_v62, %v6355_v26 }
 0x82d   : > { %v6319_v15 = vpop.f32.mrb[232].mxu0 }
 0x82e   : > { %v7645_v29 = vpop.f32.mrb[233].mxu0 }
 0x82f   : > { %v6321_v23 = vpop.f32.mrb[234].mxu0 }
 0x830   : > { %v7646_v59 = vpop.f32.mrb[235].mxu0 }
 0x835   : > { %v6325_v3 = vpop.f32.mrb[120].mxu0 }
 0x836   : > { %v6358_v37 = vrot.slane %v6325_v3, 1  ;;  %v7649_v32 = vpop.f32.mrb[121].mxu0 }
 0x837   : > { %v6328_v47 = vpop.f32.mrb[122].mxu0 }
 0x838   : > { %v6373_v0 = vsel %vm6372_vm8, %v6371_v54, %v6358_v37  ;;  %v7650_v1 = vpop.f32.mrb[123].mxu0 }
 0x839   : > { %v6381_v12 = vadd.f32 %v7117_v45, %v6373_v0 }
 0x83b   : > { %v6382_v56 = vmax.f32 %v6381_v12, 0.0 }
 0x83d   : > { %v6383_v31 = vpack.c.bf16 %v6382_v56, %v6382_v56 }
 0x83f   : > { %7668 = vmatmul.mubr.msk.bf16.vlgmr.msra.gmra.mrb[128].mxu1 %vm6451_vm9, %v6383_v31 }
 0x840   : > { %7672 = vmatpush3.bf16.msra.mxu1 %v8627_v4  ;;  %7683 = vmatprep.mubr.msk.bf16.mxu1 %vm8699_vm1, %v8698_v20 }
 0x841   : > { %7673 = vmatprep.subr.bf16.mxu1 %v8698_v20 }
 0x844   : > { %7674 = vmatpush3.bf16.msra.mxu1 %v8628_v28 }
 0x845   : > { %7675 = vmatprep.subr.bf16.mxu1 %v8698_v20 }
 0x848   : > { %7676 = vmatpush3.bf16.msra.mxu1 %v8629_v39 }
 0x849   : > { %7677 = vmatprep.subr.bf16.mxu1 %v8698_v20 }
 0x84c   : > { %7678 = vmatpush3.bf16.msra.mxu1 %v8630_v7 }
 0x84d   : > { %7679 = vmatprep.subr.bf16.mxu1 %v8698_v20 }
 0x850   : > { %7680 = vmatpush3.bf16.msra.mxu1 %v8631_v35 }
 0x851   : > { %7681 = vmatprep.subr.bf16.mxu1 %v8698_v20  ;;  %v7128_v20 = vld [vmem:[%s10957_s10] ss:$0 sm:$0xff] }
 0x854   : > { %7682 = vmatpush3.bf16.msra.mxu1 %v6556_v22 }
 0x912   : > { %v6492_v18 = vpop.f32.mrb[128].mxu1 }
 0x913   : > { %v6493_v11 = vadd.f32 %v7118_v17, %v6492_v18  ;;  %v7669_v33 = vpop.f32.mrb[129].mxu1 }
 0x914   : > { %v6495_v43 = vpop.f32.mrb[130].mxu1 }
 0x915   : > { %v6498_v44 = vmax.f32 %v6493_v11, 0.0  ;;  %v7670_v50 = vpop.f32.mrb[131].mxu1 }
 0x917   : > { %v6499_v10 = vpack.c.bf16 %v6498_v44, %v6498_v44 }
 0x919   : > { %7684 = vmatmul.mubr.msk.bf16.vlgmr.msra.gmra.mrb[132].mxu1 %vm6551_vm10, %v6499_v10 }
 0x9ec   : > { %v6592_v49 = vpop.f32.mrb[132].mxu1 }
 0x9ed   : > { %v6593_v60 = vadd.f32 %v7128_v20, %v6592_v49  ;;  %v7685_v40 = vpop.f32.mrb[133].mxu1 }
 0x9ee   : > { %v6595_v14 = vpop.f32.mrb[134].mxu1 }
 0x9ef   : > { %6598 = vst [vmem:[%s380_s12] sm:$0xff] %v6593_v60  ;;  %v7686_v41 = vpop.f32.mrb[135].mxu1 }
 0x9f0   : > { %8646 = shalt.err (!%p8643_p3)
}
 0x9f1   : > { %s8647_s25 = scalar_lea.hbm %s10905_s15, 128  ;;  %s8651_s12 = scalar_lea.hbm %s10958_s11, 256 }
 0x9f2   : > { %p8648_p4 = scmp.ne.s32.totalorder %s10905_s15, %s8647_s25  ;;  %p8652_p9 = scmp.lt.u32.totalorder %s10905_s15, %s10958_s11 }
 0x9f3   : > { %p8653_p10 = scmp.lt.u32.totalorder %s8651_s12, %s8647_s25  ;;  %p8655_p12 = scmp.lt.u32.totalorder %s8647_s25, %s10905_s15 }
 0x9f4   : > { %p8649_p7 = pnand %p8648_p4, %p8799_p5 }
 0x9f5   : > { %p8654_p11 = por %p8653_p10, %p8652_p9 }
 0x9f6   : > { %p8650_p8 = pneg %p8649_p7 }
 0x9f7   : > { %p8656_p13 = por %p8655_p12, %p8654_p11 }
 0x9f9   : > { %p8657_p0 = pnand %p8656_p13, %p8650_p8 }
 0x9fb   : > { %8660 = shalt.err (!%p8657_p0)
}
 0x9fc   : > { %8327 = dma.vmem_to_hbm [thread:$0]  (%p8799_p5), %s10907_s26, 128, %s10905_s15, %s6600_s14  }
 0x9fd PF: > { %p8333_p1 = scmp.ge.s32.totalorder %s8695_s20, 2  ;;  %s6625_s21 = sand.u32 1, %s8683_s17  }
 0x9fe   : > { %s6626_s22 = scalar_lea.sflag [#allocation5], %s6625_s21 }
 0x9ff   : > { %p8330_p2 = pnand %p8333_p1, %p8803_p6 }
 0xa01   : > { %8678 = dma.done.wait (!%p8330_p2), %s6626_s22, 128  }
 0xa02   : > { %8680 = vsyncadd (!%p8330_p2), %s6626_s22, 4294967168  ;;  %s11018_s29 = sld [smem:[#allocation7_spill]]  ;;  %s11019_s19 = sld [smem:[#allocation8_spill]] }
 0xa03   : > { %p21_p3 = scmp.ge.s32.totalorder %s8786_s23, 4   ;;  %s11020_s17 = smov %s8687_s18 }
 0xa04   : > { %s11022_s20 = smov %s8786_s23 }
 0xa05   :  { %23 = sbr.rel (!%p21_p3) target bundleno = 3 (0x3), region = 111 }
 0xa08   : > { %s11021_s18 = smov %s11018_s29 }
 0xa0c   :  { %6631 = vsyncpa [#allocation5], 1 }
 0xa0d   :  { %6633 = vsyncpa [#allocation5 + $0x1], 1 }

</bundles_post_ra>
